<compile_context>
chip_gen: v6e
topology: v6e:2x2x1
jax: 0.10.0
libtpu: 0.0.40
codegen_flags: <defaults>
</compile_context>

<pallas_src>
import jax
import jax.numpy as jnp
from jax.experimental import pallas as pl
from jax.experimental.pallas import tpu as pltpu


def decoder_kernel(encproj_ref, encgi_ref, wh_ref, w2_ref, bi_ref, bhn_ref,
                   wout_ref, bout_ref, embg_ref, sosgi_ref,
                   out_ref, attn_ref):
    B, S, A = encproj_ref.shape
    T = out_ref.shape[0]
    O = out_ref.shape[2]
    H = bhn_ref.shape[1]
    H3 = 3 * H

    # ---------------- hoisted, loop-invariant values ----------------
    encproj = encproj_ref[...]                            # (B, S, A)   enc @ W1_e + b1
    enc_gi = encgi_ref[...]                               # (B, S, 3H)  enc @ W_ic^T
    w_h = wh_ref[...]                                     # (H, A+3H)   [W1_h | Whh^T]
    w_out = wout_ref[...]                                 # (H, O)
    emb_g = embg_ref[...]                                 # (O, 3H)     emb @ Wie^T
    w2_b = jnp.broadcast_to(w2_ref[...], (B, S, A))       # hoisted broadcasts: no per-step
    bi_b = jnp.broadcast_to(bi_ref[...], (B, H3))         #  re-materialization of constants
    bhn_b = jnp.broadcast_to(bhn_ref[...], (B, H))
    bout_b = jnp.broadcast_to(bout_ref[...], (B, O))
    iota_o = jax.lax.broadcasted_iota(jnp.int32, (B, O), 1)

    def step(t, carry):
        h, gi_emb = carry                                 # (B, H) f32, (B, 3H) f32

        # MXU #1: fused h-side matmul -> attention hidden-projection + GRU hidden gates
        hf = jnp.dot(h.astype(w_h.dtype), w_h,
                     preferred_element_type=jnp.float32)  # (B, A+3H)
        h_proj = hf[:, :A]
        gh = hf[:, A:]

        # attention: softmax_s( w2 . relu(encproj + W1_h h) ); b2 is constant over s -> cancels.
        # Keepdims layout throughout: S stays on sublanes, no lane<->sublane relayout.
        act = jnp.maximum(encproj + h_proj[:, None, :], 0.0)            # (B, S, A)
        scores = jnp.sum(act * w2_b, axis=-1, keepdims=True)            # (B, S, 1)
        m = jnp.max(scores, axis=1, keepdims=True)                      # (B, 1, 1)
        e = jnp.exp(scores - m)
        attn_w = e / jnp.sum(e, axis=1, keepdims=True)                  # (B, S, 1), exact
        attn_ref[t] = attn_w                                            # stored in keepdims layout

        # GRU input-gate context term: sum_s attn[b,s] * (enc @ W_ic^T)[b,s,:]
        # (replaces the per-step context @ W_ic MXU matmul; pure VPU + sublane reduce)
        gi_ctx = jnp.sum(attn_w * enc_gi, axis=1)                       # (B, 3H)

        # single-step GRU (PyTorch gate order r, z, n); bih+bhh pre-summed for r/z in wrapper
        gi = gi_ctx + gi_emb + bi_b
        r = jax.nn.sigmoid(gi[:, :H] + gh[:, :H])
        z = jax.nn.sigmoid(gi[:, H:2 * H] + gh[:, H:2 * H])
        n = jnp.tanh(gi[:, 2 * H:] + r * (gh[:, 2 * H:] + bhn_b))
        h_new = (1.0 - z) * n + z * h

        # MXU #2: output projection
        logits = jnp.dot(h_new.astype(w_out.dtype), w_out,
                         preferred_element_type=jnp.float32) + bout_b   # (B, O)
        out_ref[t] = logits

        # greedy argmax ("first max", like torch/jnp argmax) -> next-step GRU input-gate term
        # MXU #3: one-hot @ (emb @ Wie^T)  (fine at toy O; see TODO for large vocab)
        mmax = jnp.max(logits, axis=-1, keepdims=True)
        idx = jnp.min(jnp.where(logits == mmax, iota_o, O), axis=-1, keepdims=True)  # (B, 1)
        onehot = (iota_o == idx).astype(emb_g.dtype)                                 # (B, O)
        gi_emb_new = jnp.dot(onehot, emb_g, preferred_element_type=jnp.float32)      # (B, 3H)
        return h_new, gi_emb_new

    h0 = jnp.zeros((B, H), jnp.float32)
    gi0 = jnp.broadcast_to(sosgi_ref[...], (B, H3))

    if T <= 32:
        # fully unrolled: every step visible to the LLO scheduler, all store indices static
        carry = (h0, gi0)
        for t in range(T):
            carry = step(t, carry)
    else:
        # large-T fallback: partially unrolled so cross-step overlap stays visible;
        # dynamic-index stores out_ref[t] / attn_ref[t] (first-axis) are supported.
        _ = jax.lax.fori_loop(0, T, step, (h0, gi0), unroll=4)


def gru_attention_decoder(encoder_output_sbe, params, max_length, *,
                          weights_dtype=jnp.float32):
    """encoder_output_sbe: (S, B, 2*Eh), PyTorch layout. Returns (output, total_attention).

    weights_dtype: dtype of the MXU-facing weights inside the kernel (bf16 recommended at
    production sizes; f32 default keeps the toy test bit-close to the reference).
    """
    S, B, E2 = encoder_output_sbe.shape
    w1, b1 = params["w1"], params["b1"]
    w2 = params["w2"]                   # (1, A); b2 is dropped (cancels in the softmax)
    wih, whh = params["wih"], params["whh"]
    bih, bhh = params["bih"], params["bhh"]
    wout, bout = params["wout"], params["bout"]
    emb = params["emb"]
    sos = params["sos"]

    A = w1.shape[0]
    H = whh.shape[1]
    O = wout.shape[0]
    T = max_length
    f32 = jnp.float32

    enc_bse = jnp.transpose(encoder_output_sbe, (1, 0, 2)).astype(f32)      # (B, S, 2Eh)

    # attention weights (PyTorch concat order: [hidden, encoder_output])
    w1h_t = jnp.asarray(w1[:, :H].T, f32)             # (H, A)
    w1e_t = jnp.asarray(w1[:, H:].T, f32)             # (2Eh, A)
    b1_row = jnp.asarray(b1[None, :], f32)            # (1, A)
    w2_3d = jnp.asarray(w2.reshape(1, 1, A), f32)     # (1, 1, A)

    # GRU weights (input concat order: [context, embedding]); fused h-side weight
    wic_t = jnp.asarray(wih[:, :E2].T, f32)           # (2Eh, 3H)
    wie_t = jnp.asarray(wih[:, E2:].T, f32)           # (Emb, 3H)
    whh_t = jnp.asarray(whh.T, f32)                   # (H, 3H)
    w_h_fused = jnp.concatenate([w1h_t, whh_t], axis=1).astype(weights_dtype)  # (H, A+3H)
    bi_fused = jnp.concatenate([bih[:2 * H] + bhh[:2 * H],
                                bih[2 * H:]])[None, :].astype(f32)             # (1, 3H)
    bhh_n = jnp.asarray(bhh[2 * H:][None, :], f32)    # (1, H)

    wout_t = jnp.asarray(wout.T, f32).astype(weights_dtype)   # (H, O)
    bout_row = jnp.asarray(bout[None, :], f32)                # (1, O)

    # ---- loop-invariant encoder projections: ONE fused matmul, done here (XLA) so it
    # ---- overlaps with the pallas_call input DMAs; raw enc never enters the kernel.
    enc_w_fused = jnp.concatenate([w1e_t, wic_t], axis=1)                    # (2Eh, A+3H)
    enc_fused = enc_bse.reshape(B * S, E2) @ enc_w_fused                     # (B*S, A+3H)
    encproj = enc_fused[:, :A].reshape(B, S, A) + b1_row                     # (B, S, A)  (+b1 folded)
    enc_gi = enc_fused[:, A:].reshape(B, S, 3 * H)                           # (B, S, 3H)

    # embedding pre-multiplied by the GRU's embedding input weights (one-time, loop-invariant)
    emb_gru_f32 = jnp.asarray(emb, f32) @ wie_t       # (O, 3H)
    sos_gi = emb_gru_f32[sos][None, :]                # (1, 3H)  f32 carry init
    emb_gru = emb_gru_f32.astype(weights_dtype)       # MXU operand

    in_arrays = [encproj, enc_gi, w_h_fused, w2_3d, bi_fused, bhh_n,
                 wout_t, bout_row, emb_gru, sos_gi]

    def full_spec(shape):
        nd = len(shape)
        return pl.BlockSpec(shape, lambda i, _nd=nd: (0,) * _nd)

    in_specs = [full_spec(a.shape) for a in in_arrays]

    out_shape = (
        jax.ShapeDtypeStruct((T, B, O), f32),         # logits per step
        jax.ShapeDtypeStruct((T, B, S, 1), f32),      # attention per step (keepdims layout)
    )
    out_specs = [
        pl.BlockSpec((T, B, O), lambda i: (0, 0, 0)),
        pl.BlockSpec((T, B, S, 1), lambda i: (0, 0, 0, 0)),
    ]

    grid_spec = pltpu.PrefetchScalarGridSpec(
        num_scalar_prefetch=0,
        grid=(1,),                                    # whole decode in one kernel invocation
        in_specs=in_specs,
        out_specs=out_specs,
    )

    # set vmem_limit_bytes only when the resident slabs would exceed the scoped default
    resident = 2 * sum(int(a.size) * a.dtype.itemsize for a in in_arrays)      # dbl-buffered inputs
    resident += 2 * 4 * (T * B * O + T * B * S)                                # dbl-buffered outputs
    compiler_kwargs = dict(dimension_semantics=("arbitrary",))                 # recurrent; sequential
    if resident > 12 * 1024 * 1024:
        compiler_kwargs["vmem_limit_bytes"] = min(int(resident * 1.25) + (4 << 20),
                                                  100 * 1024 * 1024)

    output, attn_tbs1 = pl.pallas_call(
        decoder_kernel,
        out_shape=out_shape,
        grid_spec=grid_spec,
        compiler_params=pltpu.CompilerParams(**compiler_kwargs),
    )(*in_arrays)

    # squeeze + transpose once in XLA (off the kernel's critical path): (T,B,S,1) -> (B,S,T)
    total_attention = jnp.transpose(attn_tbs1[..., 0], (1, 2, 0))
    return output, total_attention


# ----------------------------- pure-JAX reference ---------------------------------
def reference(encoder_output_sbe, params, max_length):
    S, B, E2 = encoder_output_sbe.shape
    w1, b1 = params["w1"], params["b1"]
    w2, b2 = params["w2"], params["b2"]
    wih, whh = params["wih"], params["whh"]
    bih, bhh = params["bih"], params["bhh"]
    wout, bout = params["wout"], params["bout"]
    emb = params["emb"]
    sos = params["sos"]
    H = whh.shape[1]
    Emb = emb.shape[1]

    enc = encoder_output_sbe
    hidden = jnp.zeros((1, B, H), jnp.float32)
    inp = jnp.broadcast_to(emb[sos][None, None, :], (1, B, Emb))
    outs, attns = [], []
    for _ in range(max_length):
        dec = jnp.broadcast_to(hidden, (S, B, H))
        attn_in = jnp.concatenate([dec, enc], axis=2)           # (S, B, H+2Eh)
        attn_in = jnp.transpose(attn_in, (1, 0, 2))             # (B, S, H+2Eh)
        a1 = jnp.maximum(attn_in @ w1.T + b1, 0.0)
        a2 = a1 @ w2.T + b2                                     # (B, S, 1)
        attn = jax.nn.softmax(a2, axis=1)
        attns.append(attn[:, :, 0])
        ctx = jnp.einsum("bes,bsk->bek", jnp.transpose(enc, (1, 2, 0)), attn)  # (B,2Eh,1)
        ctx = jnp.transpose(ctx, (2, 0, 1))                     # (1, B, 2Eh)
        x = jnp.concatenate([ctx, inp], axis=2)[0]              # (B, 2Eh+Emb)
        h = hidden[0]
        gi = x @ wih.T + bih
        gh = h @ whh.T + bhh
        r = jax.nn.sigmoid(gi[:, :H] + gh[:, :H])
        z = jax.nn.sigmoid(gi[:, H:2 * H] + gh[:, H:2 * H])
        n = jnp.tanh(gi[:, 2 * H:] + r * gh[:, 2 * H:])
        h_new = (1.0 - z) * n + z * h
        hidden = h_new[None]
        logits = h_new @ wout.T + bout
        outs.append(logits)
        idx = jnp.argmax(logits, axis=1)
        inp = emb[idx][None]
    return jnp.stack(outs), jnp.stack(attns, axis=-1)


if __name__ == "__main__":
    # small shapes consistent with the module
    S, B = 8, 2            # encoder seq len, batch
    enc_hidden = 16        # encoder_hidden -> encoder_output feature dim = 2*enc_hidden
    E2 = 2 * enc_hidden
    H = 32                 # decoder_hidden
    A = 32                 # attn_hidden
    Emb = 16               # embedding_dim
    O = 16                 # output_dim
    T = 8                  # max_length
    sos = 1

    key = jax.random.PRNGKey(0)
    ks = jax.random.split(key, 13)
    s = 0.1
    params = dict(
        w1=jax.random.normal(ks[0], (A, H + E2), jnp.float32) * s,
        b1=jax.random.normal(ks[1], (A,), jnp.float32) * s,
        w2=jax.random.normal(ks[2], (1, A), jnp.float32) * s,
        b2=jax.random.normal(ks[3], (1,), jnp.float32) * s,
        wih=jax.random.normal(ks[4], (3 * H, E2 + Emb), jnp.float32) * s,
        whh=jax.random.normal(ks[5], (3 * H, H), jnp.float32) * s,
        bih=jax.random.normal(ks[6], (3 * H,), jnp.float32) * s,
        bhh=jax.random.normal(ks[7], (3 * H,), jnp.float32) * s,
        wout=jax.random.normal(ks[8], (O, H), jnp.float32) * s,
        bout=jax.random.normal(ks[9], (O,), jnp.float32) * s,
        emb=jax.random.normal(ks[10], (O, Emb), jnp.float32) * s,
        sos=sos,
    )
    encoder_output = jax.random.normal(ks[11], (S, B, E2), jnp.float32)

    out, total_attn = gru_attention_decoder(encoder_output, params, T)
    out = jax.block_until_ready(out)
    total_attn = jax.block_until_ready(total_attn)

    out_ref, attn_ref = reference(encoder_output, params, T)
    assert out.shape == (T, B, O) and total_attn.shape == (B, S, T)
    # exact softmax reciprocal restored; remaining difference vs the reference is only matmul
    # fusion / reassociation (hoisted enc @ [W1_e | W_ic], split h-side matmul), ~1e-6 level.
    assert jnp.allclose(out, out_ref, atol=5e-4, rtol=5e-4), "output mismatch"
    assert jnp.allclose(total_attn, attn_ref, atol=5e-4, rtol=5e-4), "attention mismatch"

    print("KERNEL_OK")
</pallas_src>

<mosaic_0001>
module attributes {stable_mosaic.version = 11 : i64} {
  func.func @decoder_kernel(%arg0: i32, %arg1: memref<2x8x32xf32, #tpu.memory_space<vmem>>, %arg2: memref<2x8x96xf32, #tpu.memory_space<vmem>>, %arg3: memref<32x128xf32, #tpu.memory_space<vmem>>, %arg4: memref<1x1x32xf32, #tpu.memory_space<vmem>>, %arg5: memref<1x96xf32, #tpu.memory_space<vmem>>, %arg6: memref<1x32xf32, #tpu.memory_space<vmem>>, %arg7: memref<32x16xf32, #tpu.memory_space<vmem>>, %arg8: memref<1x16xf32, #tpu.memory_space<vmem>>, %arg9: memref<16x96xf32, #tpu.memory_space<vmem>>, %arg10: memref<1x96xf32, #tpu.memory_space<vmem>>, %arg11: memref<8x2x16xf32, #tpu.memory_space<vmem>>, %arg12: memref<8x2x8x1xf32, #tpu.memory_space<vmem>>) attributes {dimension_semantics = [#tpu.dimension_semantics<arbitrary>], iteration_bounds = array<i64: 1>, scalar_prefetch = 0 : i64, scratch_operands = 0 : i64, tpu.core_type = #tpu.core_type<tc>, window_params = [{pipeline_mode = #tpu.pipeline_mode<synchronous>, transform_indices = @transform_0, window_bounds = array<i64: 2, 8, 32>}, {pipeline_mode = #tpu.pipeline_mode<synchronous>, transform_indices = @transform_1, window_bounds = array<i64: 2, 8, 96>}, {pipeline_mode = #tpu.pipeline_mode<synchronous>, transform_indices = @transform_2, window_bounds = array<i64: 32, 128>}, {pipeline_mode = #tpu.pipeline_mode<synchronous>, transform_indices = @transform_3, window_bounds = array<i64: 1, 1, 32>}, {pipeline_mode = #tpu.pipeline_mode<synchronous>, transform_indices = @transform_4, window_bounds = array<i64: 1, 96>}, {pipeline_mode = #tpu.pipeline_mode<synchronous>, transform_indices = @transform_5, window_bounds = array<i64: 1, 32>}, {pipeline_mode = #tpu.pipeline_mode<synchronous>, transform_indices = @transform_6, window_bounds = array<i64: 32, 16>}, {pipeline_mode = #tpu.pipeline_mode<synchronous>, transform_indices = @transform_7, window_bounds = array<i64: 1, 16>}, {pipeline_mode = #tpu.pipeline_mode<synchronous>, transform_indices = @transform_8, window_bounds = array<i64: 16, 96>}, {pipeline_mode = #tpu.pipeline_mode<synchronous>, transform_indices = @transform_9, window_bounds = array<i64: 1, 96>}, {pipeline_mode = #tpu.pipeline_mode<synchronous>, transform_indices = @transform_10, window_bounds = array<i64: 8, 2, 16>}, {pipeline_mode = #tpu.pipeline_mode<synchronous>, transform_indices = @transform_11, window_bounds = array<i64: 8, 2, 8, 1>}]} {
    %c0 = arith.constant 0 : index
    %c0_0 = arith.constant 0 : index
    %c0_1 = arith.constant 0 : index
    %0 = vector.load %arg1[%c0, %c0_0, %c0_1] : memref<2x8x32xf32, #tpu.memory_space<vmem>>, vector<2x8x32xf32>
    %c0_2 = arith.constant 0 : index
    %c0_3 = arith.constant 0 : index
    %c0_4 = arith.constant 0 : index
    %1 = vector.load %arg2[%c0_2, %c0_3, %c0_4] : memref<2x8x96xf32, #tpu.memory_space<vmem>>, vector<2x8x96xf32>
    %c0_5 = arith.constant 0 : index
    %c0_6 = arith.constant 0 : index
    %2 = vector.load %arg3[%c0_5, %c0_6] : memref<32x128xf32, #tpu.memory_space<vmem>>, vector<32x128xf32>
    %c0_7 = arith.constant 0 : index
    %c0_8 = arith.constant 0 : index
    %3 = vector.load %arg7[%c0_7, %c0_8] : memref<32x16xf32, #tpu.memory_space<vmem>>, vector<32x16xf32>
    %c0_9 = arith.constant 0 : index
    %c0_10 = arith.constant 0 : index
    %4 = vector.load %arg9[%c0_9, %c0_10] : memref<16x96xf32, #tpu.memory_space<vmem>>, vector<16x96xf32>
    %c0_11 = arith.constant 0 : index
    %c0_12 = arith.constant 0 : index
    %c0_13 = arith.constant 0 : index
    %5 = vector.load %arg4[%c0_11, %c0_12, %c0_13] : memref<1x1x32xf32, #tpu.memory_space<vmem>>, vector<1x1x32xf32>
    %6 = vector.shape_cast %5 : vector<1x1x32xf32> to vector<1x1x32xf32>
    %7 = vector.broadcast %6 : vector<1x1x32xf32> to vector<2x8x32xf32>
    %c0_14 = arith.constant 0 : index
    %c0_15 = arith.constant 0 : index
    %8 = vector.load %arg5[%c0_14, %c0_15] : memref<1x96xf32, #tpu.memory_space<vmem>>, vector<1x96xf32>
    %9 = vector.shape_cast %8 : vector<1x96xf32> to vector<1x96xf32>
    %10 = vector.broadcast %9 : vector<1x96xf32> to vector<2x96xf32>
    %c0_16 = arith.constant 0 : index
    %c0_17 = arith.constant 0 : index
    %11 = vector.load %arg6[%c0_16, %c0_17] : memref<1x32xf32, #tpu.memory_space<vmem>>, vector<1x32xf32>
    %12 = vector.shape_cast %11 : vector<1x32xf32> to vector<1x32xf32>
    %13 = vector.broadcast %12 : vector<1x32xf32> to vector<2x32xf32>
    %c0_18 = arith.constant 0 : index
    %c0_19 = arith.constant 0 : index
    %14 = vector.load %arg8[%c0_18, %c0_19] : memref<1x16xf32, #tpu.memory_space<vmem>>, vector<1x16xf32>
    %15 = vector.shape_cast %14 : vector<1x16xf32> to vector<1x16xf32>
    %16 = vector.broadcast %15 : vector<1x16xf32> to vector<2x16xf32>
    %17 = tpu.iota {dimensions = array<i32: 1>} : vector<2x16xi32>
    %cst = arith.constant 0.000000e+00 : f32
    %18 = vector.broadcast %cst : f32 to vector<2x32xf32>
    %c0_20 = arith.constant 0 : index
    %c0_21 = arith.constant 0 : index
    %19 = vector.load %arg10[%c0_20, %c0_21] : memref<1x96xf32, #tpu.memory_space<vmem>>, vector<1x96xf32>
    %20 = vector.shape_cast %19 : vector<1x96xf32> to vector<1x96xf32>
    %21 = vector.broadcast %20 : vector<1x96xf32> to vector<2x96xf32>
    %cst_22 = arith.constant dense<0.000000e+00> : vector<2x128xf32>
    %22 = tpu.matmul %18, %2, %cst_22 {dimension_numbers = #tpu.dot_dimension_numbers<[1], [0], [0], [1], [0, 0, 1, 1], [], []>} : vector<2x32xf32>, vector<32x128xf32>, vector<2x128xf32> -> vector<2x128xf32>
    %23 = vector.extract_strided_slice %22 {offsets = [0, 0], sizes = [2, 32], strides = [1, 1]} : vector<2x128xf32> to vector<2x32xf32>
    %24 = vector.extract_strided_slice %22 {offsets = [0, 32], sizes = [2, 96], strides = [1, 1]} : vector<2x128xf32> to vector<2x96xf32>
    %25 = vector.shape_cast %23 : vector<2x32xf32> to vector<2x1x32xf32>
    %26 = vector.broadcast %25 : vector<2x1x32xf32> to vector<2x8x32xf32>
    %27 = arith.addf %0, %26 : vector<2x8x32xf32>
    %cst_23 = arith.constant 0.000000e+00 : f32
    %28 = vector.broadcast %cst_23 : f32 to vector<2x8x32xf32>
    %29 = arith.maximumf %27, %28 : vector<2x8x32xf32>
    %30 = arith.mulf %29, %7 : vector<2x8x32xf32>
    %cst_24 = arith.constant dense<0.000000e+00> : vector<2x8xf32>
    %31 = vector.multi_reduction <add>, %30, %cst_24 [2] : vector<2x8x32xf32> to vector<2x8xf32>
    %32 = vector.shape_cast %31 : vector<2x8xf32> to vector<2x8x1xf32>
    %cst_25 = arith.constant dense<0xFF800000> : vector<2x1xf32>
    %33 = vector.multi_reduction <maximumf>, %32, %cst_25 [1] : vector<2x8x1xf32> to vector<2x1xf32>
    %34 = vector.shape_cast %33 : vector<2x1xf32> to vector<2x1x1xf32>
    %35 = vector.broadcast %34 : vector<2x1x1xf32> to vector<2x8x1xf32>
    %36 = arith.subf %32, %35 : vector<2x8x1xf32>
    %37 = math.exp %36 : vector<2x8x1xf32>
    %cst_26 = arith.constant dense<0.000000e+00> : vector<2x1xf32>
    %38 = vector.multi_reduction <add>, %37, %cst_26 [1] : vector<2x8x1xf32> to vector<2x1xf32>
    %39 = vector.shape_cast %38 : vector<2x1xf32> to vector<2x1x1xf32>
    %40 = vector.broadcast %39 : vector<2x1x1xf32> to vector<2x8x1xf32>
    %41 = arith.divf %37, %40 : vector<2x8x1xf32>
    %c0_27 = arith.constant 0 : index
    %c0_28 = arith.constant 0 : index
    %c0_29 = arith.constant 0 : index
    %c0_30 = arith.constant 0 : index
    %42 = vector.load %arg12[%c0_27, %c0_28, %c0_29, %c0_30] : memref<8x2x8x1xf32, #tpu.memory_space<vmem>>, vector<1x2x8x1xf32>
    %43 = vector.shape_cast %42 : vector<1x2x8x1xf32> to vector<2x8x1xf32>
    %44 = vector.shape_cast %41 : vector<2x8x1xf32> to vector<1x2x8x1xf32>
    tpu.vector_store %arg12[%c0_27, %c0_28, %c0_29, %c0_30], %44 {strides = array<i32>} : memref<8x2x8x1xf32, #tpu.memory_space<vmem>>, vector<1x2x8x1xf32>,
    %45 = vector.broadcast %41 : vector<2x8x1xf32> to vector<2x8x96xf32>
    %46 = arith.mulf %45, %1 : vector<2x8x96xf32>
    %cst_31 = arith.constant dense<0.000000e+00> : vector<2x96xf32>
    %47 = vector.multi_reduction <add>, %46, %cst_31 [1] : vector<2x8x96xf32> to vector<2x96xf32>
    %48 = arith.addf %47, %21 : vector<2x96xf32>
    %49 = arith.addf %48, %10 : vector<2x96xf32>
    %50 = vector.extract_strided_slice %49 {offsets = [0, 0], sizes = [2, 32], strides = [1, 1]} : vector<2x96xf32> to vector<2x32xf32>
    %51 = vector.extract_strided_slice %24 {offsets = [0, 0], sizes = [2, 32], strides = [1, 1]} : vector<2x96xf32> to vector<2x32xf32>
    %52 = arith.addf %50, %51 : vector<2x32xf32>
    %53 = arith.negf %52 : vector<2x32xf32>
    %54 = math.exp %53 : vector<2x32xf32>
    %cst_32 = arith.constant 1.000000e+00 : f32
    %55 = vector.broadcast %cst_32 : f32 to vector<2x32xf32>
    %56 = arith.addf %55, %54 : vector<2x32xf32>
    %57 = arith.divf %55, %56 : vector<2x32xf32>
    %58 = vector.extract_strided_slice %49 {offsets = [0, 32], sizes = [2, 32], strides = [1, 1]} : vector<2x96xf32> to vector<2x32xf32>
    %59 = vector.extract_strided_slice %24 {offsets = [0, 32], sizes = [2, 32], strides = [1, 1]} : vector<2x96xf32> to vector<2x32xf32>
    %60 = arith.addf %58, %59 : vector<2x32xf32>
    %61 = arith.negf %60 : vector<2x32xf32>
    %62 = math.exp %61 : vector<2x32xf32>
    %cst_33 = arith.constant 1.000000e+00 : f32
    %63 = vector.broadcast %cst_33 : f32 to vector<2x32xf32>
    %64 = arith.addf %63, %62 : vector<2x32xf32>
    %65 = arith.divf %63, %64 : vector<2x32xf32>
    %66 = vector.extract_strided_slice %49 {offsets = [0, 64], sizes = [2, 32], strides = [1, 1]} : vector<2x96xf32> to vector<2x32xf32>
    %67 = vector.extract_strided_slice %24 {offsets = [0, 64], sizes = [2, 32], strides = [1, 1]} : vector<2x96xf32> to vector<2x32xf32>
    %68 = arith.addf %67, %13 : vector<2x32xf32>
    %69 = arith.mulf %57, %68 : vector<2x32xf32>
    %70 = arith.addf %66, %69 : vector<2x32xf32>
    %71 = math.tanh %70 : vector<2x32xf32>
    %cst_34 = arith.constant 1.000000e+00 : f32
    %72 = vector.broadcast %cst_34 : f32 to vector<2x32xf32>
    %73 = arith.subf %72, %65 : vector<2x32xf32>
    %74 = arith.mulf %73, %71 : vector<2x32xf32>
    %75 = arith.mulf %65, %18 : vector<2x32xf32>
    %76 = arith.addf %74, %75 : vector<2x32xf32>
    %cst_35 = arith.constant dense<0.000000e+00> : vector<2x16xf32>
    %77 = tpu.matmul %76, %3, %cst_35 {dimension_numbers = #tpu.dot_dimension_numbers<[1], [0], [0], [1], [0, 0, 1, 1], [], []>} : vector<2x32xf32>, vector<32x16xf32>, vector<2x16xf32> -> vector<2x16xf32>
    %78 = arith.addf %77, %16 : vector<2x16xf32>
    %c0_36 = arith.constant 0 : index
    %c0_37 = arith.constant 0 : index
    %c0_38 = arith.constant 0 : index
    %79 = vector.load %arg11[%c0_36, %c0_37, %c0_38] : memref<8x2x16xf32, #tpu.memory_space<vmem>>, vector<1x2x16xf32>
    %80 = vector.shape_cast %79 : vector<1x2x16xf32> to vector<2x16xf32>
    %81 = vector.shape_cast %78 : vector<2x16xf32> to vector<1x2x16xf32>
    tpu.vector_store %arg11[%c0_36, %c0_37, %c0_38], %81 {strides = array<i32>} : memref<8x2x16xf32, #tpu.memory_space<vmem>>, vector<1x2x16xf32>,
    %cst_39 = arith.constant dense<0xFF800000> : vector<2xf32>
    %82 = vector.multi_reduction <maximumf>, %78, %cst_39 [1] : vector<2x16xf32> to vector<2xf32>
    %83 = vector.shape_cast %82 : vector<2xf32> to vector<2x1xf32>
    %84 = vector.broadcast %83 : vector<2x1xf32> to vector<2x16xf32>
    %85 = arith.cmpf oeq, %78, %84 : vector<2x16xf32>
    %c16_i32 = arith.constant 16 : i32
    %86 = vector.broadcast %c16_i32 : i32 to vector<2x16xi32>
    %87 = arith.select %85, %17, %86 : vector<2x16xi1>, vector<2x16xi32>
    %cst_40 = arith.constant dense<2147483647> : vector<2xi32>
    %88 = vector.multi_reduction <minsi>, %87, %cst_40 [1] : vector<2x16xi32> to vector<2xi32>
    %89 = vector.shape_cast %88 : vector<2xi32> to vector<2x1xi32>
    %90 = vector.broadcast %89 : vector<2x1xi32> to vector<2x16xi32>
    %91 = arith.cmpi eq, %17, %90 : vector<2x16xi32>
    %92 = arith.extui %91 : vector<2x16xi1> to vector<2x16xi32>
    %93 = arith.sitofp %92 : vector<2x16xi32> to vector<2x16xf32>
    %cst_41 = arith.constant dense<0.000000e+00> : vector<2x96xf32>
    %94 = tpu.matmul %93, %4, %cst_41 {dimension_numbers = #tpu.dot_dimension_numbers<[1], [0], [0], [1], [0, 0, 1, 1], [], []>} : vector<2x16xf32>, vector<16x96xf32>, vector<2x96xf32> -> vector<2x96xf32>
    %cst_42 = arith.constant dense<0.000000e+00> : vector<2x128xf32>
    %95 = tpu.matmul %76, %2, %cst_42 {dimension_numbers = #tpu.dot_dimension_numbers<[1], [0], [0], [1], [0, 0, 1, 1], [], []>} : vector<2x32xf32>, vector<32x128xf32>, vector<2x128xf32> -> vector<2x128xf32>
    %96 = vector.extract_strided_slice %95 {offsets = [0, 0], sizes = [2, 32], strides = [1, 1]} : vector<2x128xf32> to vector<2x32xf32>
    %97 = vector.extract_strided_slice %95 {offsets = [0, 32], sizes = [2, 96], strides = [1, 1]} : vector<2x128xf32> to vector<2x96xf32>
    %98 = vector.shape_cast %96 : vector<2x32xf32> to vector<2x1x32xf32>
    %99 = vector.broadcast %98 : vector<2x1x32xf32> to vector<2x8x32xf32>
    %100 = arith.addf %0, %99 : vector<2x8x32xf32>
    %cst_43 = arith.constant 0.000000e+00 : f32
    %101 = vector.broadcast %cst_43 : f32 to vector<2x8x32xf32>
    %102 = arith.maximumf %100, %101 : vector<2x8x32xf32>
    %103 = arith.mulf %102, %7 : vector<2x8x32xf32>
    %cst_44 = arith.constant dense<0.000000e+00> : vector<2x8xf32>
    %104 = vector.multi_reduction <add>, %103, %cst_44 [2] : vector<2x8x32xf32> to vector<2x8xf32>
    %105 = vector.shape_cast %104 : vector<2x8xf32> to vector<2x8x1xf32>
    %cst_45 = arith.constant dense<0xFF800000> : vector<2x1xf32>
    %106 = vector.multi_reduction <maximumf>, %105, %cst_45 [1] : vector<2x8x1xf32> to vector<2x1xf32>
    %107 = vector.shape_cast %106 : vector<2x1xf32> to vector<2x1x1xf32>
    %108 = vector.broadcast %107 : vector<2x1x1xf32> to vector<2x8x1xf32>
    %109 = arith.subf %105, %108 : vector<2x8x1xf32>
    %110 = math.exp %109 : vector<2x8x1xf32>
    %cst_46 = arith.constant dense<0.000000e+00> : vector<2x1xf32>
    %111 = vector.multi_reduction <add>, %110, %cst_46 [1] : vector<2x8x1xf32> to vector<2x1xf32>
    %112 = vector.shape_cast %111 : vector<2x1xf32> to vector<2x1x1xf32>
    %113 = vector.broadcast %112 : vector<2x1x1xf32> to vector<2x8x1xf32>
    %114 = arith.divf %110, %113 : vector<2x8x1xf32>
    %c1 = arith.constant 1 : index
    %c0_47 = arith.constant 0 : index
    %c0_48 = arith.constant 0 : index
    %c0_49 = arith.constant 0 : index
    %115 = vector.load %arg12[%c1, %c0_47, %c0_48, %c0_49] : memref<8x2x8x1xf32, #tpu.memory_space<vmem>>, vector<1x2x8x1xf32>
    %116 = vector.shape_cast %115 : vector<1x2x8x1xf32> to vector<2x8x1xf32>
    %117 = vector.shape_cast %114 : vector<2x8x1xf32> to vector<1x2x8x1xf32>
    tpu.vector_store %arg12[%c1, %c0_47, %c0_48, %c0_49], %117 {strides = array<i32>} : memref<8x2x8x1xf32, #tpu.memory_space<vmem>>, vector<1x2x8x1xf32>,
    %118 = vector.broadcast %114 : vector<2x8x1xf32> to vector<2x8x96xf32>
    %119 = arith.mulf %118, %1 : vector<2x8x96xf32>
    %cst_50 = arith.constant dense<0.000000e+00> : vector<2x96xf32>
    %120 = vector.multi_reduction <add>, %119, %cst_50 [1] : vector<2x8x96xf32> to vector<2x96xf32>
    %121 = arith.addf %120, %94 : vector<2x96xf32>
    %122 = arith.addf %121, %10 : vector<2x96xf32>
    %123 = vector.extract_strided_slice %122 {offsets = [0, 0], sizes = [2, 32], strides = [1, 1]} : vector<2x96xf32> to vector<2x32xf32>
    %124 = vector.extract_strided_slice %97 {offsets = [0, 0], sizes = [2, 32], strides = [1, 1]} : vector<2x96xf32> to vector<2x32xf32>
    %125 = arith.addf %123, %124 : vector<2x32xf32>
    %126 = arith.negf %125 : vector<2x32xf32>
    %127 = math.exp %126 : vector<2x32xf32>
    %cst_51 = arith.constant 1.000000e+00 : f32
    %128 = vector.broadcast %cst_51 : f32 to vector<2x32xf32>
    %129 = arith.addf %128, %127 : vector<2x32xf32>
    %130 = arith.divf %128, %129 : vector<2x32xf32>
    %131 = vector.extract_strided_slice %122 {offsets = [0, 32], sizes = [2, 32], strides = [1, 1]} : vector<2x96xf32> to vector<2x32xf32>
    %132 = vector.extract_strided_slice %97 {offsets = [0, 32], sizes = [2, 32], strides = [1, 1]} : vector<2x96xf32> to vector<2x32xf32>
    %133 = arith.addf %131, %132 : vector<2x32xf32>
    %134 = arith.negf %133 : vector<2x32xf32>
    %135 = math.exp %134 : vector<2x32xf32>
    %cst_52 = arith.constant 1.000000e+00 : f32
    %136 = vector.broadcast %cst_52 : f32 to vector<2x32xf32>
    %137 = arith.addf %136, %135 : vector<2x32xf32>
    %138 = arith.divf %136, %137 : vector<2x32xf32>
    %139 = vector.extract_strided_slice %122 {offsets = [0, 64], sizes = [2, 32], strides = [1, 1]} : vector<2x96xf32> to vector<2x32xf32>
    %140 = vector.extract_strided_slice %97 {offsets = [0, 64], sizes = [2, 32], strides = [1, 1]} : vector<2x96xf32> to vector<2x32xf32>
    %141 = arith.addf %140, %13 : vector<2x32xf32>
    %142 = arith.mulf %130, %141 : vector<2x32xf32>
    %143 = arith.addf %139, %142 : vector<2x32xf32>
    %144 = math.tanh %143 : vector<2x32xf32>
    %cst_53 = arith.constant 1.000000e+00 : f32
    %145 = vector.broadcast %cst_53 : f32 to vector<2x32xf32>
    %146 = arith.subf %145, %138 : vector<2x32xf32>
    %147 = arith.mulf %146, %144 : vector<2x32xf32>
    %148 = arith.mulf %138, %76 : vector<2x32xf32>
    %149 = arith.addf %147, %148 : vector<2x32xf32>
    %cst_54 = arith.constant dense<0.000000e+00> : vector<2x16xf32>
    %150 = tpu.matmul %149, %3, %cst_54 {dimension_numbers = #tpu.dot_dimension_numbers<[1], [0], [0], [1], [0, 0, 1, 1], [], []>} : vector<2x32xf32>, vector<32x16xf32>, vector<2x16xf32> -> vector<2x16xf32>
    %151 = arith.addf %150, %16 : vector<2x16xf32>
    %c1_55 = arith.constant 1 : index
    %c0_56 = arith.constant 0 : index
    %c0_57 = arith.constant 0 : index
    %152 = vector.load %arg11[%c1_55, %c0_56, %c0_57] : memref<8x2x16xf32, #tpu.memory_space<vmem>>, vector<1x2x16xf32>
    %153 = vector.shape_cast %152 : vector<1x2x16xf32> to vector<2x16xf32>
    %154 = vector.shape_cast %151 : vector<2x16xf32> to vector<1x2x16xf32>
    tpu.vector_store %arg11[%c1_55, %c0_56, %c0_57], %154 {strides = array<i32>} : memref<8x2x16xf32, #tpu.memory_space<vmem>>, vector<1x2x16xf32>,
    %cst_58 = arith.constant dense<0xFF800000> : vector<2xf32>
    %155 = vector.multi_reduction <maximumf>, %151, %cst_58 [1] : vector<2x16xf32> to vector<2xf32>
    %156 = vector.shape_cast %155 : vector<2xf32> to vector<2x1xf32>
    %157 = vector.broadcast %156 : vector<2x1xf32> to vector<2x16xf32>
    %158 = arith.cmpf oeq, %151, %157 : vector<2x16xf32>
    %c16_i32_59 = arith.constant 16 : i32
    %159 = vector.broadcast %c16_i32_59 : i32 to vector<2x16xi32>
    %160 = arith.select %158, %17, %159 : vector<2x16xi1>, vector<2x16xi32>
    %cst_60 = arith.constant dense<2147483647> : vector<2xi32>
    %161 = vector.multi_reduction <minsi>, %160, %cst_60 [1] : vector<2x16xi32> to vector<2xi32>
    %162 = vector.shape_cast %161 : vector<2xi32> to vector<2x1xi32>
    %163 = vector.broadcast %162 : vector<2x1xi32> to vector<2x16xi32>
    %164 = arith.cmpi eq, %17, %163 : vector<2x16xi32>
    %165 = arith.extui %164 : vector<2x16xi1> to vector<2x16xi32>
    %166 = arith.sitofp %165 : vector<2x16xi32> to vector<2x16xf32>
    %cst_61 = arith.constant dense<0.000000e+00> : vector<2x96xf32>
    %167 = tpu.matmul %166, %4, %cst_61 {dimension_numbers = #tpu.dot_dimension_numbers<[1], [0], [0], [1], [0, 0, 1, 1], [], []>} : vector<2x16xf32>, vector<16x96xf32>, vector<2x96xf32> -> vector<2x96xf32>
    %cst_62 = arith.constant dense<0.000000e+00> : vector<2x128xf32>
    %168 = tpu.matmul %149, %2, %cst_62 {dimension_numbers = #tpu.dot_dimension_numbers<[1], [0], [0], [1], [0, 0, 1, 1], [], []>} : vector<2x32xf32>, vector<32x128xf32>, vector<2x128xf32> -> vector<2x128xf32>
    %169 = vector.extract_strided_slice %168 {offsets = [0, 0], sizes = [2, 32], strides = [1, 1]} : vector<2x128xf32> to vector<2x32xf32>
    %170 = vector.extract_strided_slice %168 {offsets = [0, 32], sizes = [2, 96], strides = [1, 1]} : vector<2x128xf32> to vector<2x96xf32>
    %171 = vector.shape_cast %169 : vector<2x32xf32> to vector<2x1x32xf32>
    %172 = vector.broadcast %171 : vector<2x1x32xf32> to vector<2x8x32xf32>
    %173 = arith.addf %0, %172 : vector<2x8x32xf32>
    %cst_63 = arith.constant 0.000000e+00 : f32
    %174 = vector.broadcast %cst_63 : f32 to vector<2x8x32xf32>
    %175 = arith.maximumf %173, %174 : vector<2x8x32xf32>
    %176 = arith.mulf %175, %7 : vector<2x8x32xf32>
    %cst_64 = arith.constant dense<0.000000e+00> : vector<2x8xf32>
    %177 = vector.multi_reduction <add>, %176, %cst_64 [2] : vector<2x8x32xf32> to vector<2x8xf32>
    %178 = vector.shape_cast %177 : vector<2x8xf32> to vector<2x8x1xf32>
    %cst_65 = arith.constant dense<0xFF800000> : vector<2x1xf32>
    %179 = vector.multi_reduction <maximumf>, %178, %cst_65 [1] : vector<2x8x1xf32> to vector<2x1xf32>
    %180 = vector.shape_cast %179 : vector<2x1xf32> to vector<2x1x1xf32>
    %181 = vector.broadcast %180 : vector<2x1x1xf32> to vector<2x8x1xf32>
    %182 = arith.subf %178, %181 : vector<2x8x1xf32>
    %183 = math.exp %182 : vector<2x8x1xf32>
    %cst_66 = arith.constant dense<0.000000e+00> : vector<2x1xf32>
    %184 = vector.multi_reduction <add>, %183, %cst_66 [1] : vector<2x8x1xf32> to vector<2x1xf32>
    %185 = vector.shape_cast %184 : vector<2x1xf32> to vector<2x1x1xf32>
    %186 = vector.broadcast %185 : vector<2x1x1xf32> to vector<2x8x1xf32>
    %187 = arith.divf %183, %186 : vector<2x8x1xf32>
    %c2 = arith.constant 2 : index
    %c0_67 = arith.constant 0 : index
    %c0_68 = arith.constant 0 : index
    %c0_69 = arith.constant 0 : index
    %188 = vector.load %arg12[%c2, %c0_67, %c0_68, %c0_69] : memref<8x2x8x1xf32, #tpu.memory_space<vmem>>, vector<1x2x8x1xf32>
    %189 = vector.shape_cast %188 : vector<1x2x8x1xf32> to vector<2x8x1xf32>
    %190 = vector.shape_cast %187 : vector<2x8x1xf32> to vector<1x2x8x1xf32>
    tpu.vector_store %arg12[%c2, %c0_67, %c0_68, %c0_69], %190 {strides = array<i32>} : memref<8x2x8x1xf32, #tpu.memory_space<vmem>>, vector<1x2x8x1xf32>,
    %191 = vector.broadcast %187 : vector<2x8x1xf32> to vector<2x8x96xf32>
    %192 = arith.mulf %191, %1 : vector<2x8x96xf32>
    %cst_70 = arith.constant dense<0.000000e+00> : vector<2x96xf32>
    %193 = vector.multi_reduction <add>, %192, %cst_70 [1] : vector<2x8x96xf32> to vector<2x96xf32>
    %194 = arith.addf %193, %167 : vector<2x96xf32>
    %195 = arith.addf %194, %10 : vector<2x96xf32>
    %196 = vector.extract_strided_slice %195 {offsets = [0, 0], sizes = [2, 32], strides = [1, 1]} : vector<2x96xf32> to vector<2x32xf32>
    %197 = vector.extract_strided_slice %170 {offsets = [0, 0], sizes = [2, 32], strides = [1, 1]} : vector<2x96xf32> to vector<2x32xf32>
    %198 = arith.addf %196, %197 : vector<2x32xf32>
    %199 = arith.negf %198 : vector<2x32xf32>
    %200 = math.exp %199 : vector<2x32xf32>
    %cst_71 = arith.constant 1.000000e+00 : f32
    %201 = vector.broadcast %cst_71 : f32 to vector<2x32xf32>
    %202 = arith.addf %201, %200 : vector<2x32xf32>
    %203 = arith.divf %201, %202 : vector<2x32xf32>
    %204 = vector.extract_strided_slice %195 {offsets = [0, 32], sizes = [2, 32], strides = [1, 1]} : vector<2x96xf32> to vector<2x32xf32>
    %205 = vector.extract_strided_slice %170 {offsets = [0, 32], sizes = [2, 32], strides = [1, 1]} : vector<2x96xf32> to vector<2x32xf32>
    %206 = arith.addf %204, %205 : vector<2x32xf32>
    %207 = arith.negf %206 : vector<2x32xf32>
    %208 = math.exp %207 : vector<2x32xf32>
    %cst_72 = arith.constant 1.000000e+00 : f32
    %209 = vector.broadcast %cst_72 : f32 to vector<2x32xf32>
    %210 = arith.addf %209, %208 : vector<2x32xf32>
    %211 = arith.divf %209, %210 : vector<2x32xf32>
    %212 = vector.extract_strided_slice %195 {offsets = [0, 64], sizes = [2, 32], strides = [1, 1]} : vector<2x96xf32> to vector<2x32xf32>
    %213 = vector.extract_strided_slice %170 {offsets = [0, 64], sizes = [2, 32], strides = [1, 1]} : vector<2x96xf32> to vector<2x32xf32>
    %214 = arith.addf %213, %13 : vector<2x32xf32>
    %215 = arith.mulf %203, %214 : vector<2x32xf32>
    %216 = arith.addf %212, %215 : vector<2x32xf32>
    %217 = math.tanh %216 : vector<2x32xf32>
    %cst_73 = arith.constant 1.000000e+00 : f32
    %218 = vector.broadcast %cst_73 : f32 to vector<2x32xf32>
    %219 = arith.subf %218, %211 : vector<2x32xf32>
    %220 = arith.mulf %219, %217 : vector<2x32xf32>
    %221 = arith.mulf %211, %149 : vector<2x32xf32>
    %222 = arith.addf %220, %221 : vector<2x32xf32>
    %cst_74 = arith.constant dense<0.000000e+00> : vector<2x16xf32>
    %223 = tpu.matmul %222, %3, %cst_74 {dimension_numbers = #tpu.dot_dimension_numbers<[1], [0], [0], [1], [0, 0, 1, 1], [], []>} : vector<2x32xf32>, vector<32x16xf32>, vector<2x16xf32> -> vector<2x16xf32>
    %224 = arith.addf %223, %16 : vector<2x16xf32>
    %c2_75 = arith.constant 2 : index
    %c0_76 = arith.constant 0 : index
    %c0_77 = arith.constant 0 : index
    %225 = vector.load %arg11[%c2_75, %c0_76, %c0_77] : memref<8x2x16xf32, #tpu.memory_space<vmem>>, vector<1x2x16xf32>
    %226 = vector.shape_cast %225 : vector<1x2x16xf32> to vector<2x16xf32>
    %227 = vector.shape_cast %224 : vector<2x16xf32> to vector<1x2x16xf32>
    tpu.vector_store %arg11[%c2_75, %c0_76, %c0_77], %227 {strides = array<i32>} : memref<8x2x16xf32, #tpu.memory_space<vmem>>, vector<1x2x16xf32>,
    %cst_78 = arith.constant dense<0xFF800000> : vector<2xf32>
    %228 = vector.multi_reduction <maximumf>, %224, %cst_78 [1] : vector<2x16xf32> to vector<2xf32>
    %229 = vector.shape_cast %228 : vector<2xf32> to vector<2x1xf32>
    %230 = vector.broadcast %229 : vector<2x1xf32> to vector<2x16xf32>
    %231 = arith.cmpf oeq, %224, %230 : vector<2x16xf32>
    %c16_i32_79 = arith.constant 16 : i32
    %232 = vector.broadcast %c16_i32_79 : i32 to vector<2x16xi32>
    %233 = arith.select %231, %17, %232 : vector<2x16xi1>, vector<2x16xi32>
    %cst_80 = arith.constant dense<2147483647> : vector<2xi32>
    %234 = vector.multi_reduction <minsi>, %233, %cst_80 [1] : vector<2x16xi32> to vector<2xi32>
    %235 = vector.shape_cast %234 : vector<2xi32> to vector<2x1xi32>
    %236 = vector.broadcast %235 : vector<2x1xi32> to vector<2x16xi32>
    %237 = arith.cmpi eq, %17, %236 : vector<2x16xi32>
    %238 = arith.extui %237 : vector<2x16xi1> to vector<2x16xi32>
    %239 = arith.sitofp %238 : vector<2x16xi32> to vector<2x16xf32>
    %cst_81 = arith.constant dense<0.000000e+00> : vector<2x96xf32>
    %240 = tpu.matmul %239, %4, %cst_81 {dimension_numbers = #tpu.dot_dimension_numbers<[1], [0], [0], [1], [0, 0, 1, 1], [], []>} : vector<2x16xf32>, vector<16x96xf32>, vector<2x96xf32> -> vector<2x96xf32>
    %cst_82 = arith.constant dense<0.000000e+00> : vector<2x128xf32>
    %241 = tpu.matmul %222, %2, %cst_82 {dimension_numbers = #tpu.dot_dimension_numbers<[1], [0], [0], [1], [0, 0, 1, 1], [], []>} : vector<2x32xf32>, vector<32x128xf32>, vector<2x128xf32> -> vector<2x128xf32>
    %242 = vector.extract_strided_slice %241 {offsets = [0, 0], sizes = [2, 32], strides = [1, 1]} : vector<2x128xf32> to vector<2x32xf32>
    %243 = vector.extract_strided_slice %241 {offsets = [0, 32], sizes = [2, 96], strides = [1, 1]} : vector<2x128xf32> to vector<2x96xf32>
    %244 = vector.shape_cast %242 : vector<2x32xf32> to vector<2x1x32xf32>
    %245 = vector.broadcast %244 : vector<2x1x32xf32> to vector<2x8x32xf32>
    %246 = arith.addf %0, %245 : vector<2x8x32xf32>
    %cst_83 = arith.constant 0.000000e+00 : f32
    %247 = vector.broadcast %cst_83 : f32 to vector<2x8x32xf32>
    %248 = arith.maximumf %246, %247 : vector<2x8x32xf32>
    %249 = arith.mulf %248, %7 : vector<2x8x32xf32>
    %cst_84 = arith.constant dense<0.000000e+00> : vector<2x8xf32>
    %250 = vector.multi_reduction <add>, %249, %cst_84 [2] : vector<2x8x32xf32> to vector<2x8xf32>
    %251 = vector.shape_cast %250 : vector<2x8xf32> to vector<2x8x1xf32>
    %cst_85 = arith.constant dense<0xFF800000> : vector<2x1xf32>
    %252 = vector.multi_reduction <maximumf>, %251, %cst_85 [1] : vector<2x8x1xf32> to vector<2x1xf32>
    %253 = vector.shape_cast %252 : vector<2x1xf32> to vector<2x1x1xf32>
    %254 = vector.broadcast %253 : vector<2x1x1xf32> to vector<2x8x1xf32>
    %255 = arith.subf %251, %254 : vector<2x8x1xf32>
    %256 = math.exp %255 : vector<2x8x1xf32>
    %cst_86 = arith.constant dense<0.000000e+00> : vector<2x1xf32>
    %257 = vector.multi_reduction <add>, %256, %cst_86 [1] : vector<2x8x1xf32> to vector<2x1xf32>
    %258 = vector.shape_cast %257 : vector<2x1xf32> to vector<2x1x1xf32>
    %259 = vector.broadcast %258 : vector<2x1x1xf32> to vector<2x8x1xf32>
    %260 = arith.divf %256, %259 : vector<2x8x1xf32>
    %c3 = arith.constant 3 : index
    %c0_87 = arith.constant 0 : index
    %c0_88 = arith.constant 0 : index
    %c0_89 = arith.constant 0 : index
    %261 = vector.load %arg12[%c3, %c0_87, %c0_88, %c0_89] : memref<8x2x8x1xf32, #tpu.memory_space<vmem>>, vector<1x2x8x1xf32>
    %262 = vector.shape_cast %261 : vector<1x2x8x1xf32> to vector<2x8x1xf32>
    %263 = vector.shape_cast %260 : vector<2x8x1xf32> to vector<1x2x8x1xf32>
    tpu.vector_store %arg12[%c3, %c0_87, %c0_88, %c0_89], %263 {strides = array<i32>} : memref<8x2x8x1xf32, #tpu.memory_space<vmem>>, vector<1x2x8x1xf32>,
    %264 = vector.broadcast %260 : vector<2x8x1xf32> to vector<2x8x96xf32>
    %265 = arith.mulf %264, %1 : vector<2x8x96xf32>
    %cst_90 = arith.constant dense<0.000000e+00> : vector<2x96xf32>
    %266 = vector.multi_reduction <add>, %265, %cst_90 [1] : vector<2x8x96xf32> to vector<2x96xf32>
    %267 = arith.addf %266, %240 : vector<2x96xf32>
    %268 = arith.addf %267, %10 : vector<2x96xf32>
    %269 = vector.extract_strided_slice %268 {offsets = [0, 0], sizes = [2, 32], strides = [1, 1]} : vector<2x96xf32> to vector<2x32xf32>
    %270 = vector.extract_strided_slice %243 {offsets = [0, 0], sizes = [2, 32], strides = [1, 1]} : vector<2x96xf32> to vector<2x32xf32>
    %271 = arith.addf %269, %270 : vector<2x32xf32>
    %272 = arith.negf %271 : vector<2x32xf32>
    %273 = math.exp %272 : vector<2x32xf32>
    %cst_91 = arith.constant 1.000000e+00 : f32
    %274 = vector.broadcast %cst_91 : f32 to vector<2x32xf32>
    %275 = arith.addf %274, %273 : vector<2x32xf32>
    %276 = arith.divf %274, %275 : vector<2x32xf32>
    %277 = vector.extract_strided_slice %268 {offsets = [0, 32], sizes = [2, 32], strides = [1, 1]} : vector<2x96xf32> to vector<2x32xf32>
    %278 = vector.extract_strided_slice %243 {offsets = [0, 32], sizes = [2, 32], strides = [1, 1]} : vector<2x96xf32> to vector<2x32xf32>
    %279 = arith.addf %277, %278 : vector<2x32xf32>
    %280 = arith.negf %279 : vector<2x32xf32>
    %281 = math.exp %280 : vector<2x32xf32>
    %cst_92 = arith.constant 1.000000e+00 : f32
    %282 = vector.broadcast %cst_92 : f32 to vector<2x32xf32>
    %283 = arith.addf %282, %281 : vector<2x32xf32>
    %284 = arith.divf %282, %283 : vector<2x32xf32>
    %285 = vector.extract_strided_slice %268 {offsets = [0, 64], sizes = [2, 32], strides = [1, 1]} : vector<2x96xf32> to vector<2x32xf32>
    %286 = vector.extract_strided_slice %243 {offsets = [0, 64], sizes = [2, 32], strides = [1, 1]} : vector<2x96xf32> to vector<2x32xf32>
    %287 = arith.addf %286, %13 : vector<2x32xf32>
    %288 = arith.mulf %276, %287 : vector<2x32xf32>
    %289 = arith.addf %285, %288 : vector<2x32xf32>
    %290 = math.tanh %289 : vector<2x32xf32>
    %cst_93 = arith.constant 1.000000e+00 : f32
    %291 = vector.broadcast %cst_93 : f32 to vector<2x32xf32>
    %292 = arith.subf %291, %284 : vector<2x32xf32>
    %293 = arith.mulf %292, %290 : vector<2x32xf32>
    %294 = arith.mulf %284, %222 : vector<2x32xf32>
    %295 = arith.addf %293, %294 : vector<2x32xf32>
    %cst_94 = arith.constant dense<0.000000e+00> : vector<2x16xf32>
    %296 = tpu.matmul %295, %3, %cst_94 {dimension_numbers = #tpu.dot_dimension_numbers<[1], [0], [0], [1], [0, 0, 1, 1], [], []>} : vector<2x32xf32>, vector<32x16xf32>, vector<2x16xf32> -> vector<2x16xf32>
    %297 = arith.addf %296, %16 : vector<2x16xf32>
    %c3_95 = arith.constant 3 : index
    %c0_96 = arith.constant 0 : index
    %c0_97 = arith.constant 0 : index
    %298 = vector.load %arg11[%c3_95, %c0_96, %c0_97] : memref<8x2x16xf32, #tpu.memory_space<vmem>>, vector<1x2x16xf32>
    %299 = vector.shape_cast %298 : vector<1x2x16xf32> to vector<2x16xf32>
    %300 = vector.shape_cast %297 : vector<2x16xf32> to vector<1x2x16xf32>
    tpu.vector_store %arg11[%c3_95, %c0_96, %c0_97], %300 {strides = array<i32>} : memref<8x2x16xf32, #tpu.memory_space<vmem>>, vector<1x2x16xf32>,
    %cst_98 = arith.constant dense<0xFF800000> : vector<2xf32>
    %301 = vector.multi_reduction <maximumf>, %297, %cst_98 [1] : vector<2x16xf32> to vector<2xf32>
    %302 = vector.shape_cast %301 : vector<2xf32> to vector<2x1xf32>
    %303 = vector.broadcast %302 : vector<2x1xf32> to vector<2x16xf32>
    %304 = arith.cmpf oeq, %297, %303 : vector<2x16xf32>
    %c16_i32_99 = arith.constant 16 : i32
    %305 = vector.broadcast %c16_i32_99 : i32 to vector<2x16xi32>
    %306 = arith.select %304, %17, %305 : vector<2x16xi1>, vector<2x16xi32>
    %cst_100 = arith.constant dense<2147483647> : vector<2xi32>
    %307 = vector.multi_reduction <minsi>, %306, %cst_100 [1] : vector<2x16xi32> to vector<2xi32>
    %308 = vector.shape_cast %307 : vector<2xi32> to vector<2x1xi32>
    %309 = vector.broadcast %308 : vector<2x1xi32> to vector<2x16xi32>
    %310 = arith.cmpi eq, %17, %309 : vector<2x16xi32>
    %311 = arith.extui %310 : vector<2x16xi1> to vector<2x16xi32>
    %312 = arith.sitofp %311 : vector<2x16xi32> to vector<2x16xf32>
    %cst_101 = arith.constant dense<0.000000e+00> : vector<2x96xf32>
    %313 = tpu.matmul %312, %4, %cst_101 {dimension_numbers = #tpu.dot_dimension_numbers<[1], [0], [0], [1], [0, 0, 1, 1], [], []>} : vector<2x16xf32>, vector<16x96xf32>, vector<2x96xf32> -> vector<2x96xf32>
    %cst_102 = arith.constant dense<0.000000e+00> : vector<2x128xf32>
    %314 = tpu.matmul %295, %2, %cst_102 {dimension_numbers = #tpu.dot_dimension_numbers<[1], [0], [0], [1], [0, 0, 1, 1], [], []>} : vector<2x32xf32>, vector<32x128xf32>, vector<2x128xf32> -> vector<2x128xf32>
    %315 = vector.extract_strided_slice %314 {offsets = [0, 0], sizes = [2, 32], strides = [1, 1]} : vector<2x128xf32> to vector<2x32xf32>
    %316 = vector.extract_strided_slice %314 {offsets = [0, 32], sizes = [2, 96], strides = [1, 1]} : vector<2x128xf32> to vector<2x96xf32>
    %317 = vector.shape_cast %315 : vector<2x32xf32> to vector<2x1x32xf32>
    %318 = vector.broadcast %317 : vector<2x1x32xf32> to vector<2x8x32xf32>
    %319 = arith.addf %0, %318 : vector<2x8x32xf32>
    %cst_103 = arith.constant 0.000000e+00 : f32
    %320 = vector.broadcast %cst_103 : f32 to vector<2x8x32xf32>
    %321 = arith.maximumf %319, %320 : vector<2x8x32xf32>
    %322 = arith.mulf %321, %7 : vector<2x8x32xf32>
    %cst_104 = arith.constant dense<0.000000e+00> : vector<2x8xf32>
    %323 = vector.multi_reduction <add>, %322, %cst_104 [2] : vector<2x8x32xf32> to vector<2x8xf32>
    %324 = vector.shape_cast %323 : vector<2x8xf32> to vector<2x8x1xf32>
    %cst_105 = arith.constant dense<0xFF800000> : vector<2x1xf32>
    %325 = vector.multi_reduction <maximumf>, %324, %cst_105 [1] : vector<2x8x1xf32> to vector<2x1xf32>
    %326 = vector.shape_cast %325 : vector<2x1xf32> to vector<2x1x1xf32>
    %327 = vector.broadcast %326 : vector<2x1x1xf32> to vector<2x8x1xf32>
    %328 = arith.subf %324, %327 : vector<2x8x1xf32>
    %329 = math.exp %328 : vector<2x8x1xf32>
    %cst_106 = arith.constant dense<0.000000e+00> : vector<2x1xf32>
    %330 = vector.multi_reduction <add>, %329, %cst_106 [1] : vector<2x8x1xf32> to vector<2x1xf32>
    %331 = vector.shape_cast %330 : vector<2x1xf32> to vector<2x1x1xf32>
    %332 = vector.broadcast %331 : vector<2x1x1xf32> to vector<2x8x1xf32>
    %333 = arith.divf %329, %332 : vector<2x8x1xf32>
    %c4 = arith.constant 4 : index
    %c0_107 = arith.constant 0 : index
    %c0_108 = arith.constant 0 : index
    %c0_109 = arith.constant 0 : index
    %334 = vector.load %arg12[%c4, %c0_107, %c0_108, %c0_109] : memref<8x2x8x1xf32, #tpu.memory_space<vmem>>, vector<1x2x8x1xf32>
    %335 = vector.shape_cast %334 : vector<1x2x8x1xf32> to vector<2x8x1xf32>
    %336 = vector.shape_cast %333 : vector<2x8x1xf32> to vector<1x2x8x1xf32>
    tpu.vector_store %arg12[%c4, %c0_107, %c0_108, %c0_109], %336 {strides = array<i32>} : memref<8x2x8x1xf32, #tpu.memory_space<vmem>>, vector<1x2x8x1xf32>,
    %337 = vector.broadcast %333 : vector<2x8x1xf32> to vector<2x8x96xf32>
    %338 = arith.mulf %337, %1 : vector<2x8x96xf32>
    %cst_110 = arith.constant dense<0.000000e+00> : vector<2x96xf32>
    %339 = vector.multi_reduction <add>, %338, %cst_110 [1] : vector<2x8x96xf32> to vector<2x96xf32>
    %340 = arith.addf %339, %313 : vector<2x96xf32>
    %341 = arith.addf %340, %10 : vector<2x96xf32>
    %342 = vector.extract_strided_slice %341 {offsets = [0, 0], sizes = [2, 32], strides = [1, 1]} : vector<2x96xf32> to vector<2x32xf32>
    %343 = vector.extract_strided_slice %316 {offsets = [0, 0], sizes = [2, 32], strides = [1, 1]} : vector<2x96xf32> to vector<2x32xf32>
    %344 = arith.addf %342, %343 : vector<2x32xf32>
    %345 = arith.negf %344 : vector<2x32xf32>
    %346 = math.exp %345 : vector<2x32xf32>
    %cst_111 = arith.constant 1.000000e+00 : f32
    %347 = vector.broadcast %cst_111 : f32 to vector<2x32xf32>
    %348 = arith.addf %347, %346 : vector<2x32xf32>
    %349 = arith.divf %347, %348 : vector<2x32xf32>
    %350 = vector.extract_strided_slice %341 {offsets = [0, 32], sizes = [2, 32], strides = [1, 1]} : vector<2x96xf32> to vector<2x32xf32>
    %351 = vector.extract_strided_slice %316 {offsets = [0, 32], sizes = [2, 32], strides = [1, 1]} : vector<2x96xf32> to vector<2x32xf32>
    %352 = arith.addf %350, %351 : vector<2x32xf32>
    %353 = arith.negf %352 : vector<2x32xf32>
    %354 = math.exp %353 : vector<2x32xf32>
    %cst_112 = arith.constant 1.000000e+00 : f32
    %355 = vector.broadcast %cst_112 : f32 to vector<2x32xf32>
    %356 = arith.addf %355, %354 : vector<2x32xf32>
    %357 = arith.divf %355, %356 : vector<2x32xf32>
    %358 = vector.extract_strided_slice %341 {offsets = [0, 64], sizes = [2, 32], strides = [1, 1]} : vector<2x96xf32> to vector<2x32xf32>
    %359 = vector.extract_strided_slice %316 {offsets = [0, 64], sizes = [2, 32], strides = [1, 1]} : vector<2x96xf32> to vector<2x32xf32>
    %360 = arith.addf %359, %13 : vector<2x32xf32>
    %361 = arith.mulf %349, %360 : vector<2x32xf32>
    %362 = arith.addf %358, %361 : vector<2x32xf32>
    %363 = math.tanh %362 : vector<2x32xf32>
    %cst_113 = arith.constant 1.000000e+00 : f32
    %364 = vector.broadcast %cst_113 : f32 to vector<2x32xf32>
    %365 = arith.subf %364, %357 : vector<2x32xf32>
    %366 = arith.mulf %365, %363 : vector<2x32xf32>
    %367 = arith.mulf %357, %295 : vector<2x32xf32>
    %368 = arith.addf %366, %367 : vector<2x32xf32>
    %cst_114 = arith.constant dense<0.000000e+00> : vector<2x16xf32>
    %369 = tpu.matmul %368, %3, %cst_114 {dimension_numbers = #tpu.dot_dimension_numbers<[1], [0], [0], [1], [0, 0, 1, 1], [], []>} : vector<2x32xf32>, vector<32x16xf32>, vector<2x16xf32> -> vector<2x16xf32>
    %370 = arith.addf %369, %16 : vector<2x16xf32>
    %c4_115 = arith.constant 4 : index
    %c0_116 = arith.constant 0 : index
    %c0_117 = arith.constant 0 : index
    %371 = vector.load %arg11[%c4_115, %c0_116, %c0_117] : memref<8x2x16xf32, #tpu.memory_space<vmem>>, vector<1x2x16xf32>
    %372 = vector.shape_cast %371 : vector<1x2x16xf32> to vector<2x16xf32>
    %373 = vector.shape_cast %370 : vector<2x16xf32> to vector<1x2x16xf32>
    tpu.vector_store %arg11[%c4_115, %c0_116, %c0_117], %373 {strides = array<i32>} : memref<8x2x16xf32, #tpu.memory_space<vmem>>, vector<1x2x16xf32>,
    %cst_118 = arith.constant dense<0xFF800000> : vector<2xf32>
    %374 = vector.multi_reduction <maximumf>, %370, %cst_118 [1] : vector<2x16xf32> to vector<2xf32>
    %375 = vector.shape_cast %374 : vector<2xf32> to vector<2x1xf32>
    %376 = vector.broadcast %375 : vector<2x1xf32> to vector<2x16xf32>
    %377 = arith.cmpf oeq, %370, %376 : vector<2x16xf32>
    %c16_i32_119 = arith.constant 16 : i32
    %378 = vector.broadcast %c16_i32_119 : i32 to vector<2x16xi32>
    %379 = arith.select %377, %17, %378 : vector<2x16xi1>, vector<2x16xi32>
    %cst_120 = arith.constant dense<2147483647> : vector<2xi32>
    %380 = vector.multi_reduction <minsi>, %379, %cst_120 [1] : vector<2x16xi32> to vector<2xi32>
    %381 = vector.shape_cast %380 : vector<2xi32> to vector<2x1xi32>
    %382 = vector.broadcast %381 : vector<2x1xi32> to vector<2x16xi32>
    %383 = arith.cmpi eq, %17, %382 : vector<2x16xi32>
    %384 = arith.extui %383 : vector<2x16xi1> to vector<2x16xi32>
    %385 = arith.sitofp %384 : vector<2x16xi32> to vector<2x16xf32>
    %cst_121 = arith.constant dense<0.000000e+00> : vector<2x96xf32>
    %386 = tpu.matmul %385, %4, %cst_121 {dimension_numbers = #tpu.dot_dimension_numbers<[1], [0], [0], [1], [0, 0, 1, 1], [], []>} : vector<2x16xf32>, vector<16x96xf32>, vector<2x96xf32> -> vector<2x96xf32>
    %cst_122 = arith.constant dense<0.000000e+00> : vector<2x128xf32>
    %387 = tpu.matmul %368, %2, %cst_122 {dimension_numbers = #tpu.dot_dimension_numbers<[1], [0], [0], [1], [0, 0, 1, 1], [], []>} : vector<2x32xf32>, vector<32x128xf32>, vector<2x128xf32> -> vector<2x128xf32>
    %388 = vector.extract_strided_slice %387 {offsets = [0, 0], sizes = [2, 32], strides = [1, 1]} : vector<2x128xf32> to vector<2x32xf32>
    %389 = vector.extract_strided_slice %387 {offsets = [0, 32], sizes = [2, 96], strides = [1, 1]} : vector<2x128xf32> to vector<2x96xf32>
    %390 = vector.shape_cast %388 : vector<2x32xf32> to vector<2x1x32xf32>
    %391 = vector.broadcast %390 : vector<2x1x32xf32> to vector<2x8x32xf32>
    %392 = arith.addf %0, %391 : vector<2x8x32xf32>
    %cst_123 = arith.constant 0.000000e+00 : f32
    %393 = vector.broadcast %cst_123 : f32 to vector<2x8x32xf32>
    %394 = arith.maximumf %392, %393 : vector<2x8x32xf32>
    %395 = arith.mulf %394, %7 : vector<2x8x32xf32>
    %cst_124 = arith.constant dense<0.000000e+00> : vector<2x8xf32>
    %396 = vector.multi_reduction <add>, %395, %cst_124 [2] : vector<2x8x32xf32> to vector<2x8xf32>
    %397 = vector.shape_cast %396 : vector<2x8xf32> to vector<2x8x1xf32>
    %cst_125 = arith.constant dense<0xFF800000> : vector<2x1xf32>
    %398 = vector.multi_reduction <maximumf>, %397, %cst_125 [1] : vector<2x8x1xf32> to vector<2x1xf32>
    %399 = vector.shape_cast %398 : vector<2x1xf32> to vector<2x1x1xf32>
    %400 = vector.broadcast %399 : vector<2x1x1xf32> to vector<2x8x1xf32>
    %401 = arith.subf %397, %400 : vector<2x8x1xf32>
    %402 = math.exp %401 : vector<2x8x1xf32>
    %cst_126 = arith.constant dense<0.000000e+00> : vector<2x1xf32>
    %403 = vector.multi_reduction <add>, %402, %cst_126 [1] : vector<2x8x1xf32> to vector<2x1xf32>
    %404 = vector.shape_cast %403 : vector<2x1xf32> to vector<2x1x1xf32>
    %405 = vector.broadcast %404 : vector<2x1x1xf32> to vector<2x8x1xf32>
    %406 = arith.divf %402, %405 : vector<2x8x1xf32>
    %c5 = arith.constant 5 : index
    %c0_127 = arith.constant 0 : index
    %c0_128 = arith.constant 0 : index
    %c0_129 = arith.constant 0 : index
    %407 = vector.load %arg12[%c5, %c0_127, %c0_128, %c0_129] : memref<8x2x8x1xf32, #tpu.memory_space<vmem>>, vector<1x2x8x1xf32>
    %408 = vector.shape_cast %407 : vector<1x2x8x1xf32> to vector<2x8x1xf32>
    %409 = vector.shape_cast %406 : vector<2x8x1xf32> to vector<1x2x8x1xf32>
    tpu.vector_store %arg12[%c5, %c0_127, %c0_128, %c0_129], %409 {strides = array<i32>} : memref<8x2x8x1xf32, #tpu.memory_space<vmem>>, vector<1x2x8x1xf32>,
    %410 = vector.broadcast %406 : vector<2x8x1xf32> to vector<2x8x96xf32>
    %411 = arith.mulf %410, %1 : vector<2x8x96xf32>
    %cst_130 = arith.constant dense<0.000000e+00> : vector<2x96xf32>
    %412 = vector.multi_reduction <add>, %411, %cst_130 [1] : vector<2x8x96xf32> to vector<2x96xf32>
    %413 = arith.addf %412, %386 : vector<2x96xf32>
    %414 = arith.addf %413, %10 : vector<2x96xf32>
    %415 = vector.extract_strided_slice %414 {offsets = [0, 0], sizes = [2, 32], strides = [1, 1]} : vector<2x96xf32> to vector<2x32xf32>
    %416 = vector.extract_strided_slice %389 {offsets = [0, 0], sizes = [2, 32], strides = [1, 1]} : vector<2x96xf32> to vector<2x32xf32>
    %417 = arith.addf %415, %416 : vector<2x32xf32>
    %418 = arith.negf %417 : vector<2x32xf32>
    %419 = math.exp %418 : vector<2x32xf32>
    %cst_131 = arith.constant 1.000000e+00 : f32
    %420 = vector.broadcast %cst_131 : f32 to vector<2x32xf32>
    %421 = arith.addf %420, %419 : vector<2x32xf32>
    %422 = arith.divf %420, %421 : vector<2x32xf32>
    %423 = vector.extract_strided_slice %414 {offsets = [0, 32], sizes = [2, 32], strides = [1, 1]} : vector<2x96xf32> to vector<2x32xf32>
    %424 = vector.extract_strided_slice %389 {offsets = [0, 32], sizes = [2, 32], strides = [1, 1]} : vector<2x96xf32> to vector<2x32xf32>
    %425 = arith.addf %423, %424 : vector<2x32xf32>
    %426 = arith.negf %425 : vector<2x32xf32>
    %427 = math.exp %426 : vector<2x32xf32>
    %cst_132 = arith.constant 1.000000e+00 : f32
    %428 = vector.broadcast %cst_132 : f32 to vector<2x32xf32>
    %429 = arith.addf %428, %427 : vector<2x32xf32>
    %430 = arith.divf %428, %429 : vector<2x32xf32>
    %431 = vector.extract_strided_slice %414 {offsets = [0, 64], sizes = [2, 32], strides = [1, 1]} : vector<2x96xf32> to vector<2x32xf32>
    %432 = vector.extract_strided_slice %389 {offsets = [0, 64], sizes = [2, 32], strides = [1, 1]} : vector<2x96xf32> to vector<2x32xf32>
    %433 = arith.addf %432, %13 : vector<2x32xf32>
    %434 = arith.mulf %422, %433 : vector<2x32xf32>
    %435 = arith.addf %431, %434 : vector<2x32xf32>
    %436 = math.tanh %435 : vector<2x32xf32>
    %cst_133 = arith.constant 1.000000e+00 : f32
    %437 = vector.broadcast %cst_133 : f32 to vector<2x32xf32>
    %438 = arith.subf %437, %430 : vector<2x32xf32>
    %439 = arith.mulf %438, %436 : vector<2x32xf32>
    %440 = arith.mulf %430, %368 : vector<2x32xf32>
    %441 = arith.addf %439, %440 : vector<2x32xf32>
    %cst_134 = arith.constant dense<0.000000e+00> : vector<2x16xf32>
    %442 = tpu.matmul %441, %3, %cst_134 {dimension_numbers = #tpu.dot_dimension_numbers<[1], [0], [0], [1], [0, 0, 1, 1], [], []>} : vector<2x32xf32>, vector<32x16xf32>, vector<2x16xf32> -> vector<2x16xf32>
    %443 = arith.addf %442, %16 : vector<2x16xf32>
    %c5_135 = arith.constant 5 : index
    %c0_136 = arith.constant 0 : index
    %c0_137 = arith.constant 0 : index
    %444 = vector.load %arg11[%c5_135, %c0_136, %c0_137] : memref<8x2x16xf32, #tpu.memory_space<vmem>>, vector<1x2x16xf32>
    %445 = vector.shape_cast %444 : vector<1x2x16xf32> to vector<2x16xf32>
    %446 = vector.shape_cast %443 : vector<2x16xf32> to vector<1x2x16xf32>
    tpu.vector_store %arg11[%c5_135, %c0_136, %c0_137], %446 {strides = array<i32>} : memref<8x2x16xf32, #tpu.memory_space<vmem>>, vector<1x2x16xf32>,
    %cst_138 = arith.constant dense<0xFF800000> : vector<2xf32>
    %447 = vector.multi_reduction <maximumf>, %443, %cst_138 [1] : vector<2x16xf32> to vector<2xf32>
    %448 = vector.shape_cast %447 : vector<2xf32> to vector<2x1xf32>
    %449 = vector.broadcast %448 : vector<2x1xf32> to vector<2x16xf32>
    %450 = arith.cmpf oeq, %443, %449 : vector<2x16xf32>
    %c16_i32_139 = arith.constant 16 : i32
    %451 = vector.broadcast %c16_i32_139 : i32 to vector<2x16xi32>
    %452 = arith.select %450, %17, %451 : vector<2x16xi1>, vector<2x16xi32>
    %cst_140 = arith.constant dense<2147483647> : vector<2xi32>
    %453 = vector.multi_reduction <minsi>, %452, %cst_140 [1] : vector<2x16xi32> to vector<2xi32>
    %454 = vector.shape_cast %453 : vector<2xi32> to vector<2x1xi32>
    %455 = vector.broadcast %454 : vector<2x1xi32> to vector<2x16xi32>
    %456 = arith.cmpi eq, %17, %455 : vector<2x16xi32>
    %457 = arith.extui %456 : vector<2x16xi1> to vector<2x16xi32>
    %458 = arith.sitofp %457 : vector<2x16xi32> to vector<2x16xf32>
    %cst_141 = arith.constant dense<0.000000e+00> : vector<2x96xf32>
    %459 = tpu.matmul %458, %4, %cst_141 {dimension_numbers = #tpu.dot_dimension_numbers<[1], [0], [0], [1], [0, 0, 1, 1], [], []>} : vector<2x16xf32>, vector<16x96xf32>, vector<2x96xf32> -> vector<2x96xf32>
    %cst_142 = arith.constant dense<0.000000e+00> : vector<2x128xf32>
    %460 = tpu.matmul %441, %2, %cst_142 {dimension_numbers = #tpu.dot_dimension_numbers<[1], [0], [0], [1], [0, 0, 1, 1], [], []>} : vector<2x32xf32>, vector<32x128xf32>, vector<2x128xf32> -> vector<2x128xf32>
    %461 = vector.extract_strided_slice %460 {offsets = [0, 0], sizes = [2, 32], strides = [1, 1]} : vector<2x128xf32> to vector<2x32xf32>
    %462 = vector.extract_strided_slice %460 {offsets = [0, 32], sizes = [2, 96], strides = [1, 1]} : vector<2x128xf32> to vector<2x96xf32>
    %463 = vector.shape_cast %461 : vector<2x32xf32> to vector<2x1x32xf32>
    %464 = vector.broadcast %463 : vector<2x1x32xf32> to vector<2x8x32xf32>
    %465 = arith.addf %0, %464 : vector<2x8x32xf32>
    %cst_143 = arith.constant 0.000000e+00 : f32
    %466 = vector.broadcast %cst_143 : f32 to vector<2x8x32xf32>
    %467 = arith.maximumf %465, %466 : vector<2x8x32xf32>
    %468 = arith.mulf %467, %7 : vector<2x8x32xf32>
    %cst_144 = arith.constant dense<0.000000e+00> : vector<2x8xf32>
    %469 = vector.multi_reduction <add>, %468, %cst_144 [2] : vector<2x8x32xf32> to vector<2x8xf32>
    %470 = vector.shape_cast %469 : vector<2x8xf32> to vector<2x8x1xf32>
    %cst_145 = arith.constant dense<0xFF800000> : vector<2x1xf32>
    %471 = vector.multi_reduction <maximumf>, %470, %cst_145 [1] : vector<2x8x1xf32> to vector<2x1xf32>
    %472 = vector.shape_cast %471 : vector<2x1xf32> to vector<2x1x1xf32>
    %473 = vector.broadcast %472 : vector<2x1x1xf32> to vector<2x8x1xf32>
    %474 = arith.subf %470, %473 : vector<2x8x1xf32>
    %475 = math.exp %474 : vector<2x8x1xf32>
    %cst_146 = arith.constant dense<0.000000e+00> : vector<2x1xf32>
    %476 = vector.multi_reduction <add>, %475, %cst_146 [1] : vector<2x8x1xf32> to vector<2x1xf32>
    %477 = vector.shape_cast %476 : vector<2x1xf32> to vector<2x1x1xf32>
    %478 = vector.broadcast %477 : vector<2x1x1xf32> to vector<2x8x1xf32>
    %479 = arith.divf %475, %478 : vector<2x8x1xf32>
    %c6 = arith.constant 6 : index
    %c0_147 = arith.constant 0 : index
    %c0_148 = arith.constant 0 : index
    %c0_149 = arith.constant 0 : index
    %480 = vector.load %arg12[%c6, %c0_147, %c0_148, %c0_149] : memref<8x2x8x1xf32, #tpu.memory_space<vmem>>, vector<1x2x8x1xf32>
    %481 = vector.shape_cast %480 : vector<1x2x8x1xf32> to vector<2x8x1xf32>
    %482 = vector.shape_cast %479 : vector<2x8x1xf32> to vector<1x2x8x1xf32>
    tpu.vector_store %arg12[%c6, %c0_147, %c0_148, %c0_149], %482 {strides = array<i32>} : memref<8x2x8x1xf32, #tpu.memory_space<vmem>>, vector<1x2x8x1xf32>,
    %483 = vector.broadcast %479 : vector<2x8x1xf32> to vector<2x8x96xf32>
    %484 = arith.mulf %483, %1 : vector<2x8x96xf32>
    %cst_150 = arith.constant dense<0.000000e+00> : vector<2x96xf32>
    %485 = vector.multi_reduction <add>, %484, %cst_150 [1] : vector<2x8x96xf32> to vector<2x96xf32>
    %486 = arith.addf %485, %459 : vector<2x96xf32>
    %487 = arith.addf %486, %10 : vector<2x96xf32>
    %488 = vector.extract_strided_slice %487 {offsets = [0, 0], sizes = [2, 32], strides = [1, 1]} : vector<2x96xf32> to vector<2x32xf32>
    %489 = vector.extract_strided_slice %462 {offsets = [0, 0], sizes = [2, 32], strides = [1, 1]} : vector<2x96xf32> to vector<2x32xf32>
    %490 = arith.addf %488, %489 : vector<2x32xf32>
    %491 = arith.negf %490 : vector<2x32xf32>
    %492 = math.exp %491 : vector<2x32xf32>
    %cst_151 = arith.constant 1.000000e+00 : f32
    %493 = vector.broadcast %cst_151 : f32 to vector<2x32xf32>
    %494 = arith.addf %493, %492 : vector<2x32xf32>
    %495 = arith.divf %493, %494 : vector<2x32xf32>
    %496 = vector.extract_strided_slice %487 {offsets = [0, 32], sizes = [2, 32], strides = [1, 1]} : vector<2x96xf32> to vector<2x32xf32>
    %497 = vector.extract_strided_slice %462 {offsets = [0, 32], sizes = [2, 32], strides = [1, 1]} : vector<2x96xf32> to vector<2x32xf32>
    %498 = arith.addf %496, %497 : vector<2x32xf32>
    %499 = arith.negf %498 : vector<2x32xf32>
    %500 = math.exp %499 : vector<2x32xf32>
    %cst_152 = arith.constant 1.000000e+00 : f32
    %501 = vector.broadcast %cst_152 : f32 to vector<2x32xf32>
    %502 = arith.addf %501, %500 : vector<2x32xf32>
    %503 = arith.divf %501, %502 : vector<2x32xf32>
    %504 = vector.extract_strided_slice %487 {offsets = [0, 64], sizes = [2, 32], strides = [1, 1]} : vector<2x96xf32> to vector<2x32xf32>
    %505 = vector.extract_strided_slice %462 {offsets = [0, 64], sizes = [2, 32], strides = [1, 1]} : vector<2x96xf32> to vector<2x32xf32>
    %506 = arith.addf %505, %13 : vector<2x32xf32>
    %507 = arith.mulf %495, %506 : vector<2x32xf32>
    %508 = arith.addf %504, %507 : vector<2x32xf32>
    %509 = math.tanh %508 : vector<2x32xf32>
    %cst_153 = arith.constant 1.000000e+00 : f32
    %510 = vector.broadcast %cst_153 : f32 to vector<2x32xf32>
    %511 = arith.subf %510, %503 : vector<2x32xf32>
    %512 = arith.mulf %511, %509 : vector<2x32xf32>
    %513 = arith.mulf %503, %441 : vector<2x32xf32>
    %514 = arith.addf %512, %513 : vector<2x32xf32>
    %cst_154 = arith.constant dense<0.000000e+00> : vector<2x16xf32>
    %515 = tpu.matmul %514, %3, %cst_154 {dimension_numbers = #tpu.dot_dimension_numbers<[1], [0], [0], [1], [0, 0, 1, 1], [], []>} : vector<2x32xf32>, vector<32x16xf32>, vector<2x16xf32> -> vector<2x16xf32>
    %516 = arith.addf %515, %16 : vector<2x16xf32>
    %c6_155 = arith.constant 6 : index
    %c0_156 = arith.constant 0 : index
    %c0_157 = arith.constant 0 : index
    %517 = vector.load %arg11[%c6_155, %c0_156, %c0_157] : memref<8x2x16xf32, #tpu.memory_space<vmem>>, vector<1x2x16xf32>
    %518 = vector.shape_cast %517 : vector<1x2x16xf32> to vector<2x16xf32>
    %519 = vector.shape_cast %516 : vector<2x16xf32> to vector<1x2x16xf32>
    tpu.vector_store %arg11[%c6_155, %c0_156, %c0_157], %519 {strides = array<i32>} : memref<8x2x16xf32, #tpu.memory_space<vmem>>, vector<1x2x16xf32>,
    %cst_158 = arith.constant dense<0xFF800000> : vector<2xf32>
    %520 = vector.multi_reduction <maximumf>, %516, %cst_158 [1] : vector<2x16xf32> to vector<2xf32>
    %521 = vector.shape_cast %520 : vector<2xf32> to vector<2x1xf32>
    %522 = vector.broadcast %521 : vector<2x1xf32> to vector<2x16xf32>
    %523 = arith.cmpf oeq, %516, %522 : vector<2x16xf32>
    %c16_i32_159 = arith.constant 16 : i32
    %524 = vector.broadcast %c16_i32_159 : i32 to vector<2x16xi32>
    %525 = arith.select %523, %17, %524 : vector<2x16xi1>, vector<2x16xi32>
    %cst_160 = arith.constant dense<2147483647> : vector<2xi32>
    %526 = vector.multi_reduction <minsi>, %525, %cst_160 [1] : vector<2x16xi32> to vector<2xi32>
    %527 = vector.shape_cast %526 : vector<2xi32> to vector<2x1xi32>
    %528 = vector.broadcast %527 : vector<2x1xi32> to vector<2x16xi32>
    %529 = arith.cmpi eq, %17, %528 : vector<2x16xi32>
    %530 = arith.extui %529 : vector<2x16xi1> to vector<2x16xi32>
    %531 = arith.sitofp %530 : vector<2x16xi32> to vector<2x16xf32>
    %cst_161 = arith.constant dense<0.000000e+00> : vector<2x96xf32>
    %532 = tpu.matmul %531, %4, %cst_161 {dimension_numbers = #tpu.dot_dimension_numbers<[1], [0], [0], [1], [0, 0, 1, 1], [], []>} : vector<2x16xf32>, vector<16x96xf32>, vector<2x96xf32> -> vector<2x96xf32>
    %cst_162 = arith.constant dense<0.000000e+00> : vector<2x128xf32>
    %533 = tpu.matmul %514, %2, %cst_162 {dimension_numbers = #tpu.dot_dimension_numbers<[1], [0], [0], [1], [0, 0, 1, 1], [], []>} : vector<2x32xf32>, vector<32x128xf32>, vector<2x128xf32> -> vector<2x128xf32>
    %534 = vector.extract_strided_slice %533 {offsets = [0, 0], sizes = [2, 32], strides = [1, 1]} : vector<2x128xf32> to vector<2x32xf32>
    %535 = vector.extract_strided_slice %533 {offsets = [0, 32], sizes = [2, 96], strides = [1, 1]} : vector<2x128xf32> to vector<2x96xf32>
    %536 = vector.shape_cast %534 : vector<2x32xf32> to vector<2x1x32xf32>
    %537 = vector.broadcast %536 : vector<2x1x32xf32> to vector<2x8x32xf32>
    %538 = arith.addf %0, %537 : vector<2x8x32xf32>
    %cst_163 = arith.constant 0.000000e+00 : f32
    %539 = vector.broadcast %cst_163 : f32 to vector<2x8x32xf32>
    %540 = arith.maximumf %538, %539 : vector<2x8x32xf32>
    %541 = arith.mulf %540, %7 : vector<2x8x32xf32>
    %cst_164 = arith.constant dense<0.000000e+00> : vector<2x8xf32>
    %542 = vector.multi_reduction <add>, %541, %cst_164 [2] : vector<2x8x32xf32> to vector<2x8xf32>
    %543 = vector.shape_cast %542 : vector<2x8xf32> to vector<2x8x1xf32>
    %cst_165 = arith.constant dense<0xFF800000> : vector<2x1xf32>
    %544 = vector.multi_reduction <maximumf>, %543, %cst_165 [1] : vector<2x8x1xf32> to vector<2x1xf32>
    %545 = vector.shape_cast %544 : vector<2x1xf32> to vector<2x1x1xf32>
    %546 = vector.broadcast %545 : vector<2x1x1xf32> to vector<2x8x1xf32>
    %547 = arith.subf %543, %546 : vector<2x8x1xf32>
    %548 = math.exp %547 : vector<2x8x1xf32>
    %cst_166 = arith.constant dense<0.000000e+00> : vector<2x1xf32>
    %549 = vector.multi_reduction <add>, %548, %cst_166 [1] : vector<2x8x1xf32> to vector<2x1xf32>
    %550 = vector.shape_cast %549 : vector<2x1xf32> to vector<2x1x1xf32>
    %551 = vector.broadcast %550 : vector<2x1x1xf32> to vector<2x8x1xf32>
    %552 = arith.divf %548, %551 : vector<2x8x1xf32>
    %c7 = arith.constant 7 : index
    %c0_167 = arith.constant 0 : index
    %c0_168 = arith.constant 0 : index
    %c0_169 = arith.constant 0 : index
    %553 = vector.load %arg12[%c7, %c0_167, %c0_168, %c0_169] : memref<8x2x8x1xf32, #tpu.memory_space<vmem>>, vector<1x2x8x1xf32>
    %554 = vector.shape_cast %553 : vector<1x2x8x1xf32> to vector<2x8x1xf32>
    %555 = vector.shape_cast %552 : vector<2x8x1xf32> to vector<1x2x8x1xf32>
    tpu.vector_store %arg12[%c7, %c0_167, %c0_168, %c0_169], %555 {strides = array<i32>} : memref<8x2x8x1xf32, #tpu.memory_space<vmem>>, vector<1x2x8x1xf32>,
    %556 = vector.broadcast %552 : vector<2x8x1xf32> to vector<2x8x96xf32>
    %557 = arith.mulf %556, %1 : vector<2x8x96xf32>
    %cst_170 = arith.constant dense<0.000000e+00> : vector<2x96xf32>
    %558 = vector.multi_reduction <add>, %557, %cst_170 [1] : vector<2x8x96xf32> to vector<2x96xf32>
    %559 = arith.addf %558, %532 : vector<2x96xf32>
    %560 = arith.addf %559, %10 : vector<2x96xf32>
    %561 = vector.extract_strided_slice %560 {offsets = [0, 0], sizes = [2, 32], strides = [1, 1]} : vector<2x96xf32> to vector<2x32xf32>
    %562 = vector.extract_strided_slice %535 {offsets = [0, 0], sizes = [2, 32], strides = [1, 1]} : vector<2x96xf32> to vector<2x32xf32>
    %563 = arith.addf %561, %562 : vector<2x32xf32>
    %564 = arith.negf %563 : vector<2x32xf32>
    %565 = math.exp %564 : vector<2x32xf32>
    %cst_171 = arith.constant 1.000000e+00 : f32
    %566 = vector.broadcast %cst_171 : f32 to vector<2x32xf32>
    %567 = arith.addf %566, %565 : vector<2x32xf32>
    %568 = arith.divf %566, %567 : vector<2x32xf32>
    %569 = vector.extract_strided_slice %560 {offsets = [0, 32], sizes = [2, 32], strides = [1, 1]} : vector<2x96xf32> to vector<2x32xf32>
    %570 = vector.extract_strided_slice %535 {offsets = [0, 32], sizes = [2, 32], strides = [1, 1]} : vector<2x96xf32> to vector<2x32xf32>
    %571 = arith.addf %569, %570 : vector<2x32xf32>
    %572 = arith.negf %571 : vector<2x32xf32>
    %573 = math.exp %572 : vector<2x32xf32>
    %cst_172 = arith.constant 1.000000e+00 : f32
    %574 = vector.broadcast %cst_172 : f32 to vector<2x32xf32>
    %575 = arith.addf %574, %573 : vector<2x32xf32>
    %576 = arith.divf %574, %575 : vector<2x32xf32>
    %577 = vector.extract_strided_slice %560 {offsets = [0, 64], sizes = [2, 32], strides = [1, 1]} : vector<2x96xf32> to vector<2x32xf32>
    %578 = vector.extract_strided_slice %535 {offsets = [0, 64], sizes = [2, 32], strides = [1, 1]} : vector<2x96xf32> to vector<2x32xf32>
    %579 = arith.addf %578, %13 : vector<2x32xf32>
    %580 = arith.mulf %568, %579 : vector<2x32xf32>
    %581 = arith.addf %577, %580 : vector<2x32xf32>
    %582 = math.tanh %581 : vector<2x32xf32>
    %cst_173 = arith.constant 1.000000e+00 : f32
    %583 = vector.broadcast %cst_173 : f32 to vector<2x32xf32>
    %584 = arith.subf %583, %576 : vector<2x32xf32>
    %585 = arith.mulf %584, %582 : vector<2x32xf32>
    %586 = arith.mulf %576, %514 : vector<2x32xf32>
    %587 = arith.addf %585, %586 : vector<2x32xf32>
    %cst_174 = arith.constant dense<0.000000e+00> : vector<2x16xf32>
    %588 = tpu.matmul %587, %3, %cst_174 {dimension_numbers = #tpu.dot_dimension_numbers<[1], [0], [0], [1], [0, 0, 1, 1], [], []>} : vector<2x32xf32>, vector<32x16xf32>, vector<2x16xf32> -> vector<2x16xf32>
    %589 = arith.addf %588, %16 : vector<2x16xf32>
    %c7_175 = arith.constant 7 : index
    %c0_176 = arith.constant 0 : index
    %c0_177 = arith.constant 0 : index
    %590 = vector.load %arg11[%c7_175, %c0_176, %c0_177] : memref<8x2x16xf32, #tpu.memory_space<vmem>>, vector<1x2x16xf32>
    %591 = vector.shape_cast %590 : vector<1x2x16xf32> to vector<2x16xf32>
    %592 = vector.shape_cast %589 : vector<2x16xf32> to vector<1x2x16xf32>
    tpu.vector_store %arg11[%c7_175, %c0_176, %c0_177], %592 {strides = array<i32>} : memref<8x2x16xf32, #tpu.memory_space<vmem>>, vector<1x2x16xf32>,
    return
  }
  func.func @transform_0(%arg0: i32) -> (i32, i32, i32) {
    %c0_i32 = arith.constant 0 : i32
    %c0_i32_0 = arith.constant 0 : i32
    %c0_i32_1 = arith.constant 0 : i32
    %c0_i32_2 = arith.constant 0 : i32
    return %c0_i32, %c0_i32_0, %c0_i32_1 : i32, i32, i32
  }
  func.func @transform_1(%arg0: i32) -> (i32, i32, i32) {
    %c0_i32 = arith.constant 0 : i32
    %c0_i32_0 = arith.constant 0 : i32
    %c0_i32_1 = arith.constant 0 : i32
    %c0_i32_2 = arith.constant 0 : i32
    return %c0_i32, %c0_i32_0, %c0_i32_1 : i32, i32, i32
  }
  func.func @transform_2(%arg0: i32) -> (i32, i32) {
    %c0_i32 = arith.constant 0 : i32
    %c0_i32_0 = arith.constant 0 : i32
    %c0_i32_1 = arith.constant 0 : i32
    return %c0_i32, %c0_i32_0 : i32, i32
  }
  func.func @transform_3(%arg0: i32) -> (i32, i32, i32) {
    %c0_i32 = arith.constant 0 : i32
    %c0_i32_0 = arith.constant 0 : i32
    %c0_i32_1 = arith.constant 0 : i32
    %c0_i32_2 = arith.constant 0 : i32
    return %c0_i32, %c0_i32_0, %c0_i32_1 : i32, i32, i32
  }
  func.func @transform_4(%arg0: i32) -> (i32, i32) {
    %c0_i32 = arith.constant 0 : i32
    %c0_i32_0 = arith.constant 0 : i32
    %c0_i32_1 = arith.constant 0 : i32
    return %c0_i32, %c0_i32_0 : i32, i32
  }
  func.func @transform_5(%arg0: i32) -> (i32, i32) {
    %c0_i32 = arith.constant 0 : i32
    %c0_i32_0 = arith.constant 0 : i32
    %c0_i32_1 = arith.constant 0 : i32
    return %c0_i32, %c0_i32_0 : i32, i32
  }
  func.func @transform_6(%arg0: i32) -> (i32, i32) {
    %c0_i32 = arith.constant 0 : i32
    %c0_i32_0 = arith.constant 0 : i32
    %c0_i32_1 = arith.constant 0 : i32
    return %c0_i32, %c0_i32_0 : i32, i32
  }
  func.func @transform_7(%arg0: i32) -> (i32, i32) {
    %c0_i32 = arith.constant 0 : i32
    %c0_i32_0 = arith.constant 0 : i32
    %c0_i32_1 = arith.constant 0 : i32
    return %c0_i32, %c0_i32_0 : i32, i32
  }
  func.func @transform_8(%arg0: i32) -> (i32, i32) {
    %c0_i32 = arith.constant 0 : i32
    %c0_i32_0 = arith.constant 0 : i32
    %c0_i32_1 = arith.constant 0 : i32
    return %c0_i32, %c0_i32_0 : i32, i32
  }
  func.func @transform_9(%arg0: i32) -> (i32, i32) {
    %c0_i32 = arith.constant 0 : i32
    %c0_i32_0 = arith.constant 0 : i32
    %c0_i32_1 = arith.constant 0 : i32
    return %c0_i32, %c0_i32_0 : i32, i32
  }
  func.func @transform_10(%arg0: i32) -> (i32, i32, i32) {
    %c0_i32 = arith.constant 0 : i32
    %c0_i32_0 = arith.constant 0 : i32
    %c0_i32_1 = arith.constant 0 : i32
    %c0_i32_2 = arith.constant 0 : i32
    return %c0_i32, %c0_i32_0, %c0_i32_1 : i32, i32, i32
  }
  func.func @transform_11(%arg0: i32) -> (i32, i32, i32, i32) {
    %c0_i32 = arith.constant 0 : i32
    %c0_i32_0 = arith.constant 0 : i32
    %c0_i32_1 = arith.constant 0 : i32
    %c0_i32_2 = arith.constant 0 : i32
    %c0_i32_3 = arith.constant 0 : i32
    return %c0_i32, %c0_i32_0, %c0_i32_1, %c0_i32_2 : i32, i32, i32, i32
  }
}

</mosaic_0001>

<bundles_post_ra>
// kernel: tpu_custom_call.1
= control target key start
LH: loop header
LB: loop body
LE: loop exit
PB: predicated region body
PF: predicated region fallthrough
CT: control target
= control target key end

     0   :  { %17 = vsyncpa [#allocation3], 0  ;;  %s4943_s0 = inlined_call_operand.vmem [shape: f32[2,8,32], index: 0, kind: input, shape index: {}]   ;;  %s4944_s1 = inlined_call_operand.hbm [shape: f32[2,8,96], index: 1, kind: input, shape index: {}]   ;;  %s4945_s2 = inlined_call_operand.vmem [shape: f32[32,128], index: 2, kind: input, shape index: {}]   ;;  %s4946_s3 = inlined_call_operand.vmem [shape: f32[1,1,32], index: 3, kind: input, shape index: {}]   ;;  %s4947_s4 = inlined_call_operand.vmem [shape: f32[1,96], index: 4, kind: input, shape index: {}]   ;;  %s4948_s5 = inlined_call_operand.vmem [shape: f32[1,32], index: 5, kind: input, shape index: {}]   ;;  %s4949_s6 = inlined_call_operand.vmem [shape: f32[32,16], index: 6, kind: input, shape index: {}]   ;;  %s4950_s7 = inlined_call_operand.vmem [shape: f32[1,16], index: 7, kind: input, shape index: {}]   ;;  %s4951_s8 = inlined_call_operand.hbm [shape: f32[16,96], index: 8, kind: input, shape index: {}]   ;;  %s4952_s9 = inlined_call_operand.vmem [shape: f32[1,96], index: 9, kind: input, shape index: {}]   ;;  %s4953_s10 = inlined_call_operand.hbm [shape: f32[8,2,16], index: 10, kind: output, shape index: {0}]   ;;  %s4954_s11 = inlined_call_operand.vmem [shape: f32[8,2,8,1], index: 11, kind: output, shape index: {1}]  }
   0x1   :  { %18 = vsyncpa [#allocation6], 0 }
   0x2   :  { %19 = vsyncpa [#allocation4], 0  ;;  %s4004_s17 = smov [#allocation2]  }
   0x3   :  { %s27_s18 = sshll.u32 %s4004_s17, 4  ;;  %s28_s18 = int_to_ptr.vmem [resolvable:$true] %s27_s18 }
   0x4   :  { %s3946_s19 = scalar_lea.vmem %s28_s18, 256  ;;  %p3951_p1 = scmp.lt.s32.totalorder %s28_s18, %s28_s18 }
   0x5   :  { %p3947_p0 = scmp.ne.s32.totalorder %s28_s18, %s3946_s19  ;;  %p3952_p2 = scmp.lt.s32.totalorder %s3946_s19, %s3946_s19 }
   0x7   :  { %p3953_p3 = por %p3952_p2, %p3951_p1 }
   0x9   :  { %p3954_p4 = pnand %p3953_p3, %p3947_p0 }
   0xb   :  { %3957 = shalt.err (!%p3954_p4)
}
   0xc   :  { %s4005_s20 = smov 128   ;;  %s4006_s21 = smov 8  }
   0xd   :  { %33 = dma.hbm_to_vmem [thread:$0]  %s4944_s1, 256, %s28_s18, [#allocation3], %s4005_s20, %s4005_s20, %s4006_s21  }
   0xe   :  { %s4007_s24 = smov [#allocation5]  }
   0xf   :  { %s51_s25 = sshll.u32 %s4007_s24, 4  ;;  %s52_s25 = int_to_ptr.vmem [resolvable:$true] %s51_s25 }
  0x10   :  { %s3966_s26 = scalar_lea.vmem %s52_s25, 256  ;;  %p3971_p6 = scmp.lt.s32.totalorder %s52_s25, %s52_s25 }
  0x11   :  { %p3967_p5 = scmp.ne.s32.totalorder %s52_s25, %s3966_s26  ;;  %p3972_p7 = scmp.lt.s32.totalorder %s3966_s26, %s3966_s26 }
  0x13   :  { %p3973_p8 = por %p3972_p7, %p3971_p6 }
  0x15   :  { %p3974_p9 = pnand %p3973_p8, %p3967_p5 }
  0x17   :  { %3977 = shalt.err (!%p3974_p9)
}
  0x18   :  { %57 = dma.hbm_to_vmem [thread:$0]  %s4951_s8, 256, %s52_s25, [#allocation6], %s4005_s20, %s4005_s20, %s4006_s21  }
  0x19   :  { %3998 = dma.done.wait [#allocation3], 256  }
  0x1a   :  { %3999 = vsyncadd [#allocation3], 4294967040 }
  0x1b   :  { %4000 = dma.done.wait [#allocation6], 256  }
  0x1c   :  { %4001 = vsyncadd [#allocation6], 4294967040  ;;  %v4008_v0 = vmov 0.0   ;;  %vm4009_vm0 = vmmov 0   ;;  %v4091_v1 = vld [vmem:[%s4945_s2 + $0x18] sm:$0xff]  ;;  %v4096_v2 = vld [vmem:[%s4945_s2 + $0x10] sm:$0xff]  ;;  %v107_v6 = vlaneseq }
  0x1d   :  { %3509 = vmatprep.subr.mxu0 %v4008_v0  ;;  %3517 = vmatprep.mubr.msk.f32.mxu0 %vm4009_vm0, %v4008_v0  ;;  %v3346_v3 = vld [vmem:[%s4948_s5] ss:$0 sm:$0xff]  ;;  %v4106_v4 = vld [vmem:[%s4945_s2 + $0x8] sm:$0xff]  ;;  %s4010_s16 = smov 96   ;;  %v4011_v7 = vmov 1966171168  }
  0x1e   :  { %3520 = vmatprep.subr.mxu1 %v4008_v0  ;;  %3528 = vmatprep.mubr.msk.f32.mxu1 %vm4009_vm0, %v4008_v0  ;;  %v4114_v5 = vld [vmem:[%s4945_s2] sm:$0xff]  ;;  %v192_v8 = vunpack.c.l.s4 %v4011_v7  ;;  %v195_v10 = vshrl.u32 %v107_v6, 7  ;;  %v4144_v25 = vld [vmem:[%s4943_s0 + $0x8] sm:$0xff]  ;;  %s4012_s22 = smov 32   ;;  %vm116_vm1 = vcmask 261120   ;;  %vm269_vm2 = vcmask 7168  }
  0x1f   :  { %3510 = vmatpush3.msra.mxu0 %v4091_v1  ;;  %314 = vrot.lane.b32.xlu1 %v3346_v3, %s4010_s16  ;;  %v4137_v21 = vld [vmem:[%s4943_s0] sm:$0xff]  ;;  %vm274_vm3 = vcmask 785408   ;;  %vm359_vm4 = vcmask 1041409   ;;  %vm435_vm5 = vcmask 123904   ;;  %vm460_vm8 = vcmask 130048  }
  0x20   :  { %3511 = vmatprep.subr.mxu0 %v4008_v0  ;;  %v193_v9 = vunpack.c.0.s8 %v192_v8  ;;  %v4130_v17 = vsub.s32 0, %v195_v10  ;;  %v4154_v31 = vld [vmem:[%s4946_s3] ss:$0 sm:$0xff] }
  0x21   :  { %3512 = vmatpush3.msra.mxu0 %v4096_v2 }
  0x22   :  { %3513 = vmatprep.subr.mxu0 %v4008_v0  ;;  %v4124_v11 = vsub.s32 %v193_v9, %v195_v10 }
  0x23   :  { %3514 = vmatpush3.msra.mxu0 %v4106_v4 }
  0x24   :  { %3515 = vmatprep.subr.mxu0 %v4008_v0 }
  0x25   :  { %3516 = vmatpush3.msra.mxu0 %v4114_v5 }
  0x26   :  { %3518 = vmatmul.mubr.f32.vlgmr.msra.gmra.mxu0 %v4008_v0  ;;  %3531 = vmatprep.subr.mxu0 %v4008_v0 }
  0x27   :  { %3535 = vmatprep.mubr.msk.f32.mxu0 %vm4009_vm0, %v4008_v0 }
  0x91   :  { %v4126_v12 = vpop.permute.xlu1 %314 }
  0xe6   :  { %v186_v13 = vpop.f32.mrf.mxu0 }
  0xe7   :  { %v197_v14 = vrot.slane %v186_v13, %v4124_v11  ;;  %v317_v15 = vadd.f32 %v4126_v12, %v186_v13  ;;  %v293_v16 = vrot.slane %v186_v13, 1 }
  0xe8   :  { %v3519_v18 = vpop.f32.mrf.mxu0 }
  0xe9   :  { %v198_v19 = vcombine.high %v197_v14, %v197_v14  ;;  %v205_v20 = vrot.slane %v197_v14, %v4124_v11  ;;  %296 = vrot.lane.b32.xlu1 %v293_v16, %s4010_s16  ;;  %v319_v22 = vrot.slane %v317_v15, 1  ;;  %v4168_v18 = vld [vmem:[#allocation2] sm:$0xff] }
  0xeb   :  { %v212_v23 = vrot.slane %v198_v19, %v4124_v11  ;;  %v216_v24 = vrot.slane %v205_v20, %v4130_v17 }
  0xed   :  { %322 = vrot.lane.b32.xlu1 %v319_v22, %s4012_s22  ;;  %v220_v26 = vrot.slane %v212_v23, %v4130_v17  ;;  %v223_v27 = vadd.f32 %v216_v24, %v4137_v21 }
  0xef   :  { %v224_v28 = vadd.f32 %v220_v26, %v4144_v25  ;;  %v225_v30 = vmax.f32 %v223_v27, 0.0 }
  0xf1   :  { %320 = vrot.lane.b32.xlu1 %v317_v15, %s4012_s22  ;;  %v226_v29 = vmax.f32 %v224_v28, 0.0  ;;  %v227_v34 = vmul.f32 %v4154_v31, %v225_v30 }
  0xf3   :  { %v228_v32 = vmul.f32 %v4154_v31, %v226_v29  ;;  %v229_v35 = vsel %vm116_vm1, %v227_v34, 0.0  ;;  %v3348_v34 = vld [vmem:[%s4952_s9] ss:$0 sm:$0xff]  ;;  %s4013_s9 = smov 64  }
  0xf5   :  { %v232_v33 = vsel %vm116_vm1, %v228_v32, 0.0 }
  0xf6   :  { %233 = vadd.xlane.f32.xlu0 %v232_v33 }
  0xfa   :  { %230 = vadd.xlane.f32.xlu0 %v229_v35 }
 0x110   :  { %294 = vrot.lane.b32.xlu0 %v186_v13, %s4010_s16  ;;  %v4161_v13 = vld [vmem:[#allocation2 + $0x8] sm:$0xff] }
 0x17f   :  { %v234_v36 = vpop.xlane.xlu0 %233 }
 0x180   :  { %v241_v37 = vrot.slane %v234_v36, 4 }
 0x182   :  { %v242_v38 = vmax.f32 %v234_v36, %v241_v37  ;;  %v4183_v37 = vld [vmem:[%s4947_s4] ss:$0 sm:$0xff] }
 0x183   :  { %v231_v39 = vpop.xlane.xlu0 %230 }
 0x184   :  { %v243_v40 = vrot.slane %v242_v38, 2  ;;  %v235_v41 = vrot.slane %v231_v39, 4 }
 0x186   :  { %v244_v42 = vmax.f32 %v242_v38, %v243_v40  ;;  %v236_v43 = vmax.f32 %v231_v39, %v235_v41 }
 0x188   :  { %v245_v44 = vrot.slane %v244_v42, 1  ;;  %v237_v45 = vrot.slane %v236_v43, 2 }
 0x18a   :  { %v246_v46 = vmax.f32 %v244_v42, %v245_v44  ;;  %v238_v47 = vmax.f32 %v236_v43, %v237_v45  ;;  %v297_v42 = vpop.permute.xlu1 %296 }
 0x18c   :  { %v248_v48 = vsub.f32 %v234_v36, %v246_v46  ;;  %v239_v49 = vrot.slane %v238_v47, 1 }
 0x18e   :  { %v251_v50 = vmul.f32 1.442695, %v248_v48  ;;  %v240_v51 = vmax.f32 %v238_v47, %v239_v49  ;;  %v295_v47 = vpop.permute.xlu0 %294 }
 0x190   :  { %3746 = vpow2.f32 %v251_v50  ;;  %v247_v52 = vsub.f32 %v231_v39, %v240_v51 }
 0x192   :  { %v249_v53 = vmul.f32 1.442695, %v247_v52 }
 0x194   :  { %3748 = vpow2.f32 %v249_v53 }
 0x19d   :  { %v3747_v54 = vpop.eup %3746 }
 0x19e   :  { %v259_v55 = vrot.slane %v3747_v54, 4 }
 0x1a0   :  { %v260_v56 = vadd.f32 %v3747_v54, %v259_v55 }
 0x1a1   :  { %v3749_v57 = vpop.eup %3748 }
 0x1a2   :  { %v253_v58 = vrot.slane %v3749_v57, 4  ;;  %v261_v59 = vrot.slane %v260_v56, 2 }
 0x1a4   :  { %v254_v60 = vadd.f32 %v3749_v57, %v253_v58  ;;  %v262_v61 = vadd.f32 %v261_v59, %v260_v56 }
 0x1a6   :  { %v255_v62 = vrot.slane %v254_v60, 2  ;;  %v263_v63 = vrot.slane %v262_v61, 1 }
 0x1a8   :  { %v256_v3 = vadd.f32 %v255_v62, %v254_v60  ;;  %v264_v7 = vadd.f32 %v263_v63, %v262_v61 }
 0x1aa   :  { %v257_v8 = vrot.slane %v256_v3, 1  ;;  %3750 = vrcp.f32 %v264_v7  ;;  %v4197_v7 = vld [vmem:[%s4949_s6 + $0x10] sm:$0xff] }
 0x1ac   :  { %v258_v9 = vadd.f32 %v257_v8, %v256_v3  ;;  %v4192_v3 = vld [vmem:[%s4949_s6 + $0x18] sm:$0xff]  ;;  %v4204_v8 = vld [vmem:[%s4949_s6 + $0x8] sm:$0xff] }
 0x1ad   :  { %3521 = vmatpush3.msra.mxu1 %v4192_v3 }
 0x1ae   :  { %3752 = vrcp.f32 %v258_v9  ;;  %3522 = vmatprep.subr.mxu1 %v4008_v0 }
 0x1af   :  { %3523 = vmatpush3.msra.mxu1 %v4197_v7 }
 0x1b0   :  { %3524 = vmatprep.subr.mxu1 %v4008_v0 }
 0x1b1   :  { %3525 = vmatpush3.msra.mxu1 %v4204_v8 }
 0x1b2   :  { %3526 = vmatprep.subr.mxu1 %v4008_v0 }
 0x1b7   :  { %v3751_v10 = vpop.eup %3750 }
 0x1b8   :  { %v268_v14 = vmul.f32 %v3751_v10, %v3747_v54  ;;  %v323_v54 = vpop.permute.xlu1 %322  ;;  %v4212_v10 = vld [vmem:[%s4949_s6] sm:$0xff] }
 0x1b9   :  { %3527 = vmatpush3.msra.mxu1 %v4212_v10 }
 0x1ba   :  { %271 = vst.msk [vmem:[%s4954_s11 + $0x8] sm:$0xff] %vm269_vm2, %v268_v14  ;;  %v273_v15 = vmul.f32 %v268_v14, %v4161_v13  ;;  %3538 = vmatprep.subr.mxu1 %v4008_v0 }
 0x1bb   :  { %v3753_v16 = vpop.eup %3752 }
 0x1bc   :  { %v266_v19 = vmul.f32 %v3753_v16, %v3749_v57  ;;  %v282_v20 = vsel %vm274_vm3, %v273_v15, 0.0  ;;  %v321_v58 = vpop.permute.xlu1 %320 }
 0x1bd   :  { %v283_v22 = vrot.slane %v282_v20, 4 }
 0x1be   :  { %270 = vst.msk [vmem:[%s4954_s11] sm:$0xff] %vm269_vm2, %v266_v19  ;;  %v272_v23 = vmul.f32 %v266_v19, %v4168_v18 }
 0x1bf   :  { %v284_v24 = vadd.f32 %v283_v22, %v282_v20 }
 0x1c0   :  { %v275_v26 = vsel %vm274_vm3, %v272_v23, 0.0 }
 0x1c1   :  { %v276_v27 = vrot.slane %v275_v26, 4  ;;  %v285_v28 = vrot.slane %v284_v24, 2 }
 0x1c3   :  { %v277_v29 = vadd.f32 %v276_v27, %v275_v26  ;;  %v286_v30 = vadd.f32 %v285_v28, %v284_v24 }
 0x1c5   :  { %v278_v32 = vrot.slane %v277_v29, 2  ;;  %v287_v33 = vrot.slane %v286_v30, 1 }
 0x1c7   :  { %v279_v35 = vadd.f32 %v278_v32, %v277_v29  ;;  %v288_v36 = vadd.f32 %v287_v33, %v286_v30  ;;  %v4244_v33 = vld [vmem:[%s4950_s7] ss:$0 sm:$0xff] }
 0x1c9   :  { %v280_v38 = vrot.slane %v279_v35, 1  ;;  %v290_v39 = vadd.f32 %v3348_v34, %v288_v36 }
 0x1cb   :  { %v281_v40 = vadd.f32 %v280_v38, %v279_v35  ;;  %v292_v41 = vadd.f32 %v4183_v37, %v290_v39 }
 0x1cd   :  { %v289_v43 = vadd.f32 %v3348_v34, %v281_v40  ;;  %v301_v44 = vadd.f32 %v297_v42, %v292_v41 }
 0x1cf   :  { %v291_v45 = vadd.f32 %v4183_v37, %v289_v43  ;;  %v3350_v46 = vmul.f32 -1.442695, %v301_v44 }
 0x1d1   :  { %3754 = vpow2.f32 %v3350_v46  ;;  %v300_v48 = vadd.f32 %v295_v47, %v291_v45 }
 0x1d3   :  { %v3349_v49 = vmul.f32 -1.442695, %v300_v48 }
 0x1d5   :  { %3756 = vpow2.f32 %v3349_v49 }
 0x1de   :  { %v3755_v50 = vpop.eup %3754 }
 0x1df   :  { %v309_v51 = vadd.f32 1.0, %v3755_v50 }
 0x1e1   :  { %3758 = vrcp.f32 %v309_v51 }
 0x1e2   :  { %v3757_v52 = vpop.eup %3756 }
 0x1e3   :  { %v308_v53 = vadd.f32 1.0, %v3757_v52  ;;  %v4265_v52 = vand.u32 127, %v107_v6 }
 0x1e5   :  { %3760 = vrcp.f32 %v308_v53 }
 0x1ee   :  { %v3759_v55 = vpop.eup %3758 }
 0x1ef   :  { %v327_v56 = vmul.f32 %v3759_v55, %v323_v54  ;;  %v341_v15 = vsub.f32 1.0, %v3759_v55  ;;  %v353_v19 = vmul.f32 0.0, %v3759_v55 }
 0x1f1   :  { %332 = vrot.lane.b32.xlu1 %v327_v56, %s4013_s9 }
 0x1f2   :  { %v3761_v57 = vpop.eup %3760 }
 0x1f3   :  { %v326_v59 = vmul.f32 %v3761_v57, %v321_v58  ;;  %v340_v23 = vsub.f32 1.0, %v3761_v57  ;;  %v352_v26 = vmul.f32 0.0, %v3761_v57 }
 0x1f5   :  { %330 = vrot.lane.b32.xlu1 %v326_v59, %s4013_s9 }
 0x263   :  { %v333_v60 = vpop.permute.xlu1 %332 }
 0x264   :  { %v337_v61 = vadd.f32 %v333_v60, %v292_v41 }
 0x266   :  { %3762 = vtanh.f32 %v337_v61 }
 0x267   :  { %v331_v62 = vpop.permute.xlu1 %330 }
 0x268   :  { %v336_v63 = vadd.f32 %v331_v62, %v291_v45 }
 0x26a   :  { %3764 = vtanh.f32 %v336_v63 }
 0x273   :  { %v3763_v9 = vpop.eup %3762 }
 0x274   :  { %346 = vrot.lane.b32.xlu1 %v3763_v9, %s4010_s16 }
 0x277   :  { %v3765_v14 = vpop.eup %3764 }
 0x278   :  { %344 = vrot.lane.b32.xlu1 %v3765_v14, %s4010_s16 }
 0x2e6   :  { %v347_v16 = vpop.permute.xlu1 %346 }
 0x2e7   :  { %v351_v20 = vmul.f32 %v347_v16, %v341_v15 }
 0x2e9   :  { %v4219_v22 = vadd.f32 %v353_v19, %v351_v20 }
 0x2ea   :  { %v345_v24 = vpop.permute.xlu1 %344 }
 0x2eb   :  { %v350_v27 = vmul.f32 %v345_v24, %v340_v23  ;;  %v358_v28 = vrot.slane %v4219_v22, 7 }
 0x2ed   :  { %v4222_v29 = vadd.f32 %v352_v26, %v350_v27 }
 0x2ef   :  { %v360_v30 = vsel %vm359_vm4, %v358_v28, %v4222_v29 }
 0x2f0   :  { %361 = vrot.lane.b32.xlu0 %v360_v30, %s4010_s16 }
 0x362   :  { %v362_v32 = vpop.permute.xlu0 %361 }
 0x363   :  { %3529 = vmatmul.mubr.msk.f32.vlgmr.msra.gmra.mxu1 %vm116_vm1, %v362_v32 }
 0x364   :  { %3539 = vmatpush3.msra.mxu1 %v4091_v1  ;;  %3546 = vmatprep.mubr.msk.f32.mxu1 %vm4009_vm0, %v4008_v0 }
 0x365   :  { %3540 = vmatprep.subr.mxu1 %v4008_v0 }
 0x366   :  { %3541 = vmatpush3.msra.mxu1 %v4096_v2 }
 0x367   :  { %3542 = vmatprep.subr.mxu1 %v4008_v0 }
 0x368   :  { %3543 = vmatpush3.msra.mxu1 %v4106_v4 }
 0x369   :  { %3544 = vmatprep.subr.mxu1 %v4008_v0 }
 0x36a   :  { %3545 = vmatpush3.msra.mxu1 %v4114_v5 }
 0x36b   :  { %3547 = vmatmul.mubr.msk.f32.vlgmr.msra.gmra.mxu1 %vm116_vm1, %v362_v32  ;;  %3560 = vmatprep.subr.mxu1 %v4008_v0 }
 0x36c   :  { %3564 = vmatprep.mubr.msk.f32.mxu1 %vm4009_vm0, %v4008_v0 }
 0x423   :  { %v431_v34 = vpop.f32.mrf.mxu1 }
 0x424   :  { %v432_v35 = vadd.f32 %v4244_v33, %v431_v34 }
 0x425   :  { %v3530_v36 = vpop.f32.mrf.mxu1 }
 0x426   :  { %436 = vst.msk [vmem:[#allocation7] sm:$0x3] %vm435_vm5, %v432_v35  ;;  %v437_v38 = vsel %vm435_vm5, %v432_v35, -inf }
 0x427   :  { %438 = vmax.xlane.f32.xlu1 %v437_v38 }
 0x42b   :  { %v4249_v39 = vpop.f32.mrf.mxu1 }
 0x42c   :  { %v611_v40 = vrot.slane %v4249_v39, %v4124_v11  ;;  %v731_v49 = vadd.f32 %v4249_v39, %v4126_v12  ;;  %v710_v50 = vrot.slane %v4249_v39, 1 }
 0x42d   :  { %v3548_v41 = vpop.f32.mrf.mxu1 }
 0x42e   :  { %v612_v42 = vcombine.high %v611_v40, %v611_v40  ;;  %v733_v51 = vrot.slane %v731_v49, 1  ;;  %v619_v30 = vrot.slane %v611_v40, %v4124_v11  ;;  %v4286_v40 = vld [vmem:[#allocation5] sm:$0xff] }
 0x430   :  { %v626_v43 = vrot.slane %v612_v42, %v4124_v11  ;;  %v630_v32 = vrot.slane %v619_v30, %v4130_v17 }
 0x432   :  { %v634_v44 = vrot.slane %v626_v43, %v4130_v17  ;;  %v637_v34 = vadd.f32 %v630_v32, %v4137_v21 }
 0x434   :  { %v638_v45 = vadd.f32 %v634_v44, %v4144_v25  ;;  %v639_v36 = vmax.f32 %v637_v34, 0.0 }
 0x436   :  { %v640_v46 = vmax.f32 %v638_v45, 0.0  ;;  %v641_v43 = vmul.f32 %v4154_v31, %v639_v36  ;;  %v4281_v45 = vld [vmem:[#allocation5 + $0x8] sm:$0xff] }
 0x437   :  { %3532 = vmatpush3.msra.mxu0 %v4281_v45  ;;  %3561 = vmatpush3.msra.mxu1 %v4281_v45 }
 0x438   :  { %v642_v47 = vmul.f32 %v4154_v31, %v640_v46  ;;  %v643_v44 = vsel %vm116_vm1, %v641_v43, 0.0  ;;  %3533 = vmatprep.subr.mxu0 %v4008_v0  ;;  %3562 = vmatprep.subr.mxu1 %v4008_v0 }
 0x439   :  { %3534 = vmatpush3.msra.mxu0 %v4286_v40  ;;  %3563 = vmatpush3.msra.mxu1 %v4286_v40 }
 0x43a   :  { %v646_v48 = vsel %vm116_vm1, %v642_v47, 0.0  ;;  %3549 = vmatprep.subr.mxu0 %v4008_v0  ;;  %3578 = vmatprep.subr.mxu1 %v4008_v0 }
 0x43b   :  { %647 = vadd.xlane.f32.xlu1 %v646_v48 }
 0x44c   :  { %713 = vrot.lane.b32.xlu1 %v710_v50, %s4010_s16 }
 0x450   :  { %736 = vrot.lane.b32.xlu1 %v733_v51, %s4012_s22 }
 0x454   :  { %734 = vrot.lane.b32.xlu1 %v731_v49, %s4012_s22 }
 0x4b0   :  { %v439_v53 = vpop.xlane.xlu1 %438 }
 0x4b1   :  { %vm440_vm6 = vcmp.eq.f32.partialorder %v432_v35, %v439_v53 }
 0x4b2   :  { %v441_v54 = vsel %vm440_vm6, %v4265_v52, 16 }
 0x4b3   :  { %v442_v55 = vsel %vm435_vm5, %v441_v54, 2147483647 }
 0x4b4   :  { %v444_v56 = vshra.s32 %v442_v55, 16  ;;  %v443_v35 = vand.u32 65535, %v442_v55 }
 0x4b6   :  { %v446_v57 = vcvt.s32.f32 %v444_v56  ;;  %v445_v41 = vcvt.s32.f32 %v443_v35 }
 0x4b8   :  { %447 = vmin.xlane.f32.xlu0 %v446_v57 }
 0x4c4   :  { %v648_v58 = vpop.xlane.xlu1 %647 }
 0x4c5   :  { %v655_v59 = vrot.slane %v648_v58, 4 }
 0x4c7   :  { %v656_v60 = vmax.f32 %v648_v58, %v655_v59 }
 0x4c9   :  { %v657_v61 = vrot.slane %v656_v60, 2 }
 0x4cb   :  { %v658_v62 = vmax.f32 %v656_v60, %v657_v61 }
 0x4cd   :  { %v659_v63 = vrot.slane %v658_v62, 1 }
 0x4cf   :  { %v660_v9 = vmax.f32 %v658_v62, %v659_v63 }
 0x4d1   :  { %v662_v14 = vsub.f32 %v648_v58, %v660_v9 }
 0x4d3   :  { %v665_v15 = vmul.f32 1.442695, %v662_v14 }
 0x4d5   :  { %3766 = vpow2.f32 %v665_v15 }
 0x4e2   :  { %v3767_v6 = vpop.eup %3766 }
 0x4e3   :  { %v673_v16 = vrot.slane %v3767_v6, 4 }
 0x4e5   :  { %v674_v19 = vadd.f32 %v3767_v6, %v673_v16 }
 0x4e7   :  { %v675_v20 = vrot.slane %v674_v19, 2 }
 0x4e9   :  { %v676_v23 = vadd.f32 %v675_v20, %v674_v19 }
 0x4eb   :  { %v677_v24 = vrot.slane %v676_v23, 1 }
 0x4ed   :  { %v678_v26 = vadd.f32 %v677_v24, %v676_v23 }
 0x4ef   :  { %3768 = vrcp.f32 %v678_v26 }
 0x4fc   :  { %v3769_v27 = vpop.eup %3768 }
 0x4fd   :  { %v4269_v28 = vmul.f32 %v3769_v27, %v3767_v6 }
 0x4ff   :  { %3356 = vst.msk [vmem:[%s4954_s11 + $0x18] sm:$0xff] %vm269_vm2, %v4269_v28  ;;  %v687_v23 = vmul.f32 %v4269_v28, %v4161_v13 }
 0x501   :  { %v695_v26 = vsel %vm274_vm3, %v687_v23, 0.0 }
 0x502   :  { %v696_v30 = vrot.slane %v695_v26, 4 }
 0x504   :  { %v697_v34 = vadd.f32 %v696_v30, %v695_v26 }
 0x506   :  { %v698_v36 = vrot.slane %v697_v34, 2 }
 0x541   :  { %v448_v38 = vpop.xlane.xlu0 %447 }
 0x542   :  { %vm449_vm7 = vcmp.eq.f32.partialorder %v446_v57, %v448_v38  ;;  %v454_v46 = vcvt.f32.s32 %v448_v38 }
 0x543   :  { %v450_v42 = vsel %vm449_vm7, %v445_v41, inf  ;;  %v699_v41 = vadd.f32 %v698_v36, %v697_v34 }
 0x544   :  { %451 = vmin.xlane.f32.xlu0 %v450_v42  ;;  %v455_v48 = vshll.u32 %v454_v46, 16 }
 0x545   :  { %v700_v43 = vrot.slane %v699_v41, 1 }
 0x548   :  { %644 = vadd.xlane.f32.xlu0 %v643_v44 }
 0x55e   :  { %711 = vrot.lane.b32.xlu0 %v4249_v39, %s4010_s16 }
 0x5cd   :  { %v452_v47 = vpop.xlane.xlu0 %451 }
 0x5ce   :  { %v453_v49 = vcvt.f32.s32 %v452_v47  ;;  %v701_v47 = vadd.f32 %v700_v43, %v699_v41 }
 0x5d0   :  { %v456_v50 = vadd.s32 %v455_v48, %v453_v49 }
 0x5d1   :  { %v645_v51 = vpop.xlane.xlu0 %644 }
 0x5d2   :  { %vm457_vm9 = vcmp.eq.s32.totalorder %v4265_v52, %v456_v50  ;;  %v649_v53 = vrot.slane %v645_v51, 4 }
 0x5d3   :  { %v3352_v54 = vsel %vm457_vm9, 1.0, %v4008_v0 }
 0x5d4   :  { %v650_v55 = vmax.f32 %v645_v51, %v649_v53  ;;  %3536 = vmatmul.mubr.msk.f32.vlgmr.msra.gmra.mxu0 %vm460_vm8, %v3352_v54 }
 0x5d5   :  { %3550 = vmatpush3.msra.mxu0 %v4192_v3  ;;  %3557 = vmatprep.mubr.msk.f32.mxu0 %vm4009_vm0, %v4008_v0  ;;  %v712_v53 = vpop.permute.xlu0 %711 }
 0x5d6   :  { %v651_v39 = vrot.slane %v650_v55, 2  ;;  %3551 = vmatprep.subr.mxu0 %v4008_v0 }
 0x5d7   :  { %3552 = vmatpush3.msra.mxu0 %v4197_v7 }
 0x5d8   :  { %v652_v56 = vmax.f32 %v650_v55, %v651_v39  ;;  %3553 = vmatprep.subr.mxu0 %v4008_v0  ;;  %v714_v39 = vpop.permute.xlu1 %713 }
 0x5d9   :  { %3554 = vmatpush3.msra.mxu0 %v4204_v8 }
 0x5da   :  { %v653_v57 = vrot.slane %v652_v56, 1  ;;  %3555 = vmatprep.subr.mxu0 %v4008_v0 }
 0x5db   :  { %3556 = vmatpush3.msra.mxu0 %v4212_v10 }
 0x5dc   :  { %v654_v58 = vmax.f32 %v652_v56, %v653_v57  ;;  %3567 = vmatprep.subr.mxu0 %v4008_v0 }
 0x5de   :  { %v661_v59 = vsub.f32 %v645_v51, %v654_v58 }
 0x5e0   :  { %v663_v60 = vmul.f32 1.442695, %v661_v59 }
 0x5e2   :  { %3770 = vpow2.f32 %v663_v60 }
 0x5ef   :  { %v3771_v61 = vpop.eup %3770 }
 0x5f0   :  { %v667_v62 = vrot.slane %v3771_v61, 4 }
 0x5f2   :  { %v668_v63 = vadd.f32 %v3771_v61, %v667_v62 }
 0x5f4   :  { %v669_v9 = vrot.slane %v668_v63, 2 }
 0x5f6   :  { %v670_v14 = vadd.f32 %v669_v9, %v668_v63  ;;  %v737_v63 = vpop.permute.xlu1 %736 }
 0x5f8   :  { %v671_v15 = vrot.slane %v670_v14, 1 }
 0x5fa   :  { %v672_v6 = vadd.f32 %v671_v15, %v670_v14  ;;  %v735_v14 = vpop.permute.xlu1 %734 }
 0x5fc   :  { %3772 = vrcp.f32 %v672_v6 }
 0x609   :  { %v3773_v16 = vpop.eup %3772 }
 0x60a   :  { %v680_v19 = vmul.f32 %v3773_v16, %v3771_v61 }
 0x60c   :  { %3355 = vst.msk [vmem:[%s4954_s11 + $0x10] sm:$0xff] %vm269_vm2, %v680_v19  ;;  %v686_v20 = vmul.f32 %v680_v19, %v4168_v18 }
 0x60e   :  { %v688_v24 = vsel %vm274_vm3, %v686_v20, 0.0 }
 0x60f   :  { %v689_v27 = vrot.slane %v688_v24, 4 }
 0x611   :  { %v690_v32 = vadd.f32 %v689_v27, %v688_v24 }
 0x613   :  { %v691_v35 = vrot.slane %v690_v32, 2 }
 0x615   :  { %v692_v38 = vadd.f32 %v691_v35, %v690_v32 }
 0x617   :  { %v693_v42 = vrot.slane %v692_v38, 1 }
 0x619   :  { %v694_v44 = vadd.f32 %v693_v42, %v692_v38 }
 0x694   :  { %v530_v46 = vpop.f32.mrf.mxu0 }
 0x695   :  { %v703_v48 = vrot.slane %v530_v46, 1  ;;  %v706_v49 = vadd.f32 %v694_v44, %v530_v46 }
 0x696   :  { %v3537_v28 = vpop.f32.mrf.mxu0 }
 0x697   :  { %v707_v50 = vadd.f32 %v703_v48, %v701_v47  ;;  %v708_v51 = vadd.f32 %v4183_v37, %v706_v49 }
 0x699   :  { %v709_v54 = vadd.f32 %v4183_v37, %v707_v50  ;;  %v717_v55 = vadd.f32 %v712_v53, %v708_v51 }
 0x69b   :  { %v718_v56 = vadd.f32 %v714_v39, %v709_v54  ;;  %v3357_v57 = vmul.f32 -1.442695, %v717_v55 }
 0x69d   :  { %3774 = vpow2.f32 %v3357_v57  ;;  %v3358_v58 = vmul.f32 -1.442695, %v718_v56 }
 0x69f   :  { %3776 = vpow2.f32 %v3358_v58 }
 0x6aa   :  { %v3775_v59 = vpop.eup %3774 }
 0x6ab   :  { %v725_v60 = vadd.f32 1.0, %v3775_v59 }
 0x6ac   :  { %v3777_v61 = vpop.eup %3776 }
 0x6ad   :  { %v726_v62 = vadd.f32 1.0, %v3777_v61  ;;  %3778 = vrcp.f32 %v725_v60 }
 0x6af   :  { %3780 = vrcp.f32 %v726_v62 }
 0x6ba   :  { %v3779_v9 = vpop.eup %3778 }
 0x6bb   :  { %v740_v15 = vmul.f32 %v3779_v9, %v735_v14  ;;  %v754_v32 = vsub.f32 1.0, %v3779_v9  ;;  %v766_v42 = vmul.f32 %v3779_v9, %v4222_v29 }
 0x6bc   :  { %v3781_v6 = vpop.eup %3780 }
 0x6bd   :  { %744 = vrot.lane.b32.xlu1 %v740_v15, %s4013_s9  ;;  %v741_v16 = vmul.f32 %v3781_v6, %v737_v63  ;;  %v755_v34 = vsub.f32 1.0, %v3781_v6  ;;  %v767_v38 = vmul.f32 %v3781_v6, %v4219_v22 }
 0x6bf   :  { %746 = vrot.lane.b32.xlu0 %v741_v16, %s4013_s9 }
 0x72f   :  { %v745_v19 = vpop.permute.xlu1 %744 }
 0x730   :  { %v750_v20 = vadd.f32 %v745_v19, %v708_v51 }
 0x731   :  { %v747_v23 = vpop.permute.xlu0 %746 }
 0x732   :  { %3782 = vtanh.f32 %v750_v20  ;;  %v751_v24 = vadd.f32 %v747_v23, %v709_v54 }
 0x734   :  { %3784 = vtanh.f32 %v751_v24 }
 0x73f   :  { %v3783_v26 = vpop.eup %3782 }
 0x740   :  { %758 = vrot.lane.b32.xlu1 %v3783_v26, %s4010_s16 }
 0x741   :  { %v3785_v27 = vpop.eup %3784 }
 0x742   :  { %760 = vrot.lane.b32.xlu0 %v3785_v27, %s4010_s16 }
 0x7b2   :  { %v759_v30 = vpop.permute.xlu1 %758 }
 0x7b3   :  { %v764_v36 = vmul.f32 %v759_v30, %v754_v32 }
 0x7b4   :  { %v761_v35 = vpop.permute.xlu0 %760 }
 0x7b5   :  { %v765_v41 = vmul.f32 %v761_v35, %v755_v34  ;;  %v4327_v44 = vadd.f32 %v766_v42, %v764_v36 }
 0x7b7   :  { %v4325_v43 = vadd.f32 %v767_v38, %v765_v41 }
 0x7b9   :  { %v772_v46 = vrot.slane %v4325_v43, 7 }
 0x7bb   :  { %v773_v47 = vsel %vm359_vm4, %v772_v46, %v4327_v44 }
 0x7bc   :  { %774 = vrot.lane.b32.xlu0 %v773_v47, %s4010_s16 }
 0x82e   :  { %v775_v48 = vpop.permute.xlu0 %774 }
 0x82f   :  { %3558 = vmatmul.mubr.msk.f32.vlgmr.msra.gmra.mxu0 %vm116_vm1, %v775_v48 }
 0x830   :  { %3568 = vmatpush3.msra.mxu0 %v4091_v1  ;;  %3575 = vmatprep.mubr.msk.f32.mxu0 %vm4009_vm0, %v4008_v0 }
 0x831   :  { %3569 = vmatprep.subr.mxu0 %v4008_v0 }
 0x832   :  { %3570 = vmatpush3.msra.mxu0 %v4096_v2 }
 0x833   :  { %3571 = vmatprep.subr.mxu0 %v4008_v0 }
 0x834   :  { %3572 = vmatpush3.msra.mxu0 %v4106_v4 }
 0x835   :  { %3573 = vmatprep.subr.mxu0 %v4008_v0 }
 0x836   :  { %3574 = vmatpush3.msra.mxu0 %v4114_v5 }
 0x837   :  { %3576 = vmatmul.mubr.msk.f32.vlgmr.msra.gmra.mxu0 %vm116_vm1, %v775_v48  ;;  %3589 = vmatprep.subr.mxu0 %v4008_v0 }
 0x838   :  { %3590 = vmatpush3.msra.mxu0 %v4281_v45  ;;  %3593 = vmatprep.mubr.msk.f32.mxu0 %vm4009_vm0, %v4008_v0 }
 0x839   :  { %3591 = vmatprep.subr.mxu0 %v4008_v0 }
 0x83a   :  { %3592 = vmatpush3.msra.mxu0 %v4286_v40 }
 0x83b   :  { %3607 = vmatprep.subr.mxu0 %v4008_v0 }
 0x8ef   :  { %v844_v1 = vpop.f32.mrf.mxu0 }
 0x8f0   :  { %v845_v2 = vadd.f32 %v4244_v33, %v844_v1 }
 0x8f1   :  { %v3559_v4 = vpop.f32.mrf.mxu0 }
 0x8f2   :  { %849 = vst.msk [vmem:[#allocation7 + $0x2] sm:$0x3] %vm435_vm5, %v845_v2  ;;  %v850_v5 = vsel %vm435_vm5, %v845_v2, -inf }
 0x8f3   :  { %851 = vmax.xlane.f32.xlu1 %v850_v5 }
 0x8f7   :  { %v1012_v22 = vpop.f32.mrf.mxu0 }
 0x8f8   :  { %v1023_v29 = vrot.slane %v1012_v22, %v4124_v11  ;;  %v1143_v56 = vadd.f32 %v1012_v22, %v4126_v12  ;;  %v1122_v57 = vrot.slane %v1012_v22, 1 }
 0x8f9   :  { %v3577_v49 = vpop.f32.mrf.mxu0 }
 0x8fa   :  { %v1024_v28 = vcombine.high %v1023_v29, %v1023_v29  ;;  %v1145_v58 = vrot.slane %v1143_v56, 1  ;;  %v1031_v41 = vrot.slane %v1023_v29, %v4124_v11 }
 0x8fc   :  { %v1038_v50 = vrot.slane %v1024_v28, %v4124_v11  ;;  %v1042_v42 = vrot.slane %v1031_v41, %v4130_v17 }
 0x8fe   :  { %v1046_v51 = vrot.slane %v1038_v50, %v4130_v17  ;;  %v1049_v46 = vadd.f32 %v1042_v42, %v4137_v21 }
 0x900   :  { %v1050_v53 = vadd.f32 %v1046_v51, %v4144_v25  ;;  %v1051_v48 = vmax.f32 %v1049_v46, 0.0 }
 0x902   :  { %v1052_v54 = vmax.f32 %v1050_v53, 0.0  ;;  %v1053_v5 = vmul.f32 %v4154_v31, %v1051_v48 }
 0x904   :  { %v1054_v55 = vmul.f32 %v4154_v31, %v1052_v54  ;;  %v1055_v49 = vsel %vm116_vm1, %v1053_v5, 0.0 }
 0x906   :  { %v1058_v39 = vsel %vm116_vm1, %v1054_v55, 0.0 }
 0x907   :  { %1059 = vadd.xlane.f32.xlu1 %v1058_v39 }
 0x918   :  { %1125 = vrot.lane.b32.xlu1 %v1122_v57, %s4010_s16 }
 0x91c   :  { %1148 = vrot.lane.b32.xlu1 %v1145_v58, %s4012_s22 }
 0x920   :  { %1146 = vrot.lane.b32.xlu1 %v1143_v56, %s4012_s22 }
 0x97c   :  { %v852_v59 = vpop.xlane.xlu1 %851 }
 0x97d   :  { %vm853_vm10 = vcmp.eq.f32.partialorder %v845_v2, %v852_v59 }
 0x97e   :  { %v854_v25 = vsel %vm853_vm10, %v4265_v52, 16 }
 0x97f   :  { %v855_v60 = vsel %vm435_vm5, %v854_v25, 2147483647 }
 0x980   :  { %v857_v61 = vshra.s32 %v855_v60, 16  ;;  %v856_v47 = vand.u32 65535, %v855_v60 }
 0x982   :  { %v859_v62 = vcvt.s32.f32 %v857_v61  ;;  %v858_v2 = vcvt.s32.f32 %v856_v47 }
 0x984   :  { %860 = vmin.xlane.f32.xlu0 %v859_v62 }
 0x990   :  { %v1060_v63 = vpop.xlane.xlu1 %1059 }
 0x991   :  { %v1067_v9 = vrot.slane %v1060_v63, 4 }
 0x993   :  { %v1068_v14 = vmax.f32 %v1060_v63, %v1067_v9 }
 0x994   :  { %v1126_v5 = vpop.permute.xlu1 %1125 }
 0x995   :  { %v1069_v15 = vrot.slane %v1068_v14, 2 }
 0x997   :  { %v1070_v6 = vmax.f32 %v1068_v14, %v1069_v15 }
 0x999   :  { %v1071_v16 = vrot.slane %v1070_v6, 1 }
 0x99b   :  { %v1072_v19 = vmax.f32 %v1070_v6, %v1071_v16 }
 0x99d   :  { %v1074_v20 = vsub.f32 %v1060_v63, %v1072_v19 }
 0x99f   :  { %v1077_v23 = vmul.f32 1.442695, %v1074_v20 }
 0x9a1   :  { %3786 = vpow2.f32 %v1077_v23 }
 0x9ae   :  { %v3787_v24 = vpop.eup %3786 }
 0x9af   :  { %v1085_v26 = vrot.slane %v3787_v24, 4 }
 0x9b1   :  { %v1086_v27 = vadd.f32 %v3787_v24, %v1085_v26 }
 0x9b3   :  { %v1087_v30 = vrot.slane %v1086_v27, 2 }
 0x9b5   :  { %v1088_v32 = vadd.f32 %v1087_v30, %v1086_v27 }
 0x9b7   :  { %v1089_v34 = vrot.slane %v1088_v32, 1 }
 0x9b9   :  { %v1090_v35 = vadd.f32 %v1089_v34, %v1088_v32 }
 0x9bb   :  { %3788 = vrcp.f32 %v1090_v35 }
 0x9c8   :  { %v3789_v36 = vpop.eup %3788 }
 0x9c9   :  { %v1094_v38 = vmul.f32 %v3789_v36, %v3787_v24 }
 0x9cb   :  { %3364 = vst.msk [vmem:[%s4954_s11 + $0x28] sm:$0xff] %vm269_vm2, %v1094_v38  ;;  %v1099_v6 = vmul.f32 %v1094_v38, %v4161_v13 }
 0x9cd   :  { %v1107_v19 = vsel %vm274_vm3, %v1099_v6, 0.0 }
 0x9ce   :  { %v1108_v23 = vrot.slane %v1107_v19, 4 }
 0x9d0   :  { %v1109_v26 = vadd.f32 %v1108_v23, %v1107_v19 }
 0x9d2   :  { %v1110_v30 = vrot.slane %v1109_v26, 2 }
 0x9d4   :  { %v1111_v34 = vadd.f32 %v1110_v30, %v1109_v26  ;;  %v4440_v26 = vld [vmem:[%s4945_s2] sm:$0xff] }
 0x9d6   :  { %v1112_v36 = vrot.slane %v1111_v34, 1 }
 0x9d8   :  { %v1113_v46 = vadd.f32 %v1112_v36, %v1111_v34 }
 0xa0d   :  { %v861_v1 = vpop.xlane.xlu0 %860 }
 0xa0e   :  { %vm862_vm11 = vcmp.eq.f32.partialorder %v859_v62, %v861_v1  ;;  %v867_v28 = vcvt.f32.s32 %v861_v1 }
 0xa0f   :  { %v863_v4 = vsel %vm862_vm11, %v858_v2, inf }
 0xa10   :  { %864 = vmin.xlane.f32.xlu0 %v863_v4  ;;  %v868_v50 = vshll.u32 %v867_v28, 16 }
 0xa14   :  { %1056 = vadd.xlane.f32.xlu0 %v1055_v49 }
 0xa2a   :  { %1123 = vrot.lane.b32.xlu0 %v1012_v22, %s4010_s16 }
 0xa99   :  { %v865_v29 = vpop.xlane.xlu0 %864 }
 0xa9a   :  { %v866_v51 = vcvt.f32.s32 %v865_v29 }
 0xa9c   :  { %v869_v53 = vadd.s32 %v868_v50, %v866_v51 }
 0xa9d   :  { %v1057_v21 = vpop.xlane.xlu0 %1056 }
 0xa9e   :  { %vm870_vm12 = vcmp.eq.s32.totalorder %v4265_v52, %v869_v53  ;;  %v1061_v54 = vrot.slane %v1057_v21, 4 }
 0xa9f   :  { %v3360_v55 = vsel %vm870_vm12, 1.0, %v4008_v0 }
 0xaa0   :  { %v1062_v39 = vmax.f32 %v1057_v21, %v1061_v54  ;;  %3565 = vmatmul.mubr.msk.f32.vlgmr.msra.gmra.mxu1 %vm460_vm8, %v3360_v55  ;;  %v1149_v54 = vpop.permute.xlu1 %1148 }
 0xaa1   :  { %3579 = vmatpush3.msra.mxu1 %v4192_v3  ;;  %3586 = vmatprep.mubr.msk.f32.mxu1 %vm4009_vm0, %v4008_v0  ;;  %v1124_v1 = vpop.permute.xlu0 %1123 }
 0xaa2   :  { %v1063_v31 = vrot.slane %v1062_v39, 2  ;;  %3580 = vmatprep.subr.mxu1 %v4008_v0 }
 0xaa3   :  { %3581 = vmatpush3.msra.mxu1 %v4197_v7 }
 0xaa4   :  { %v1064_v22 = vmax.f32 %v1062_v39, %v1063_v31  ;;  %3582 = vmatprep.subr.mxu1 %v4008_v0  ;;  %v1147_v39 = vpop.permute.xlu1 %1146 }
 0xaa5   :  { %3583 = vmatpush3.msra.mxu1 %v4204_v8 }
 0xaa6   :  { %v1065_v56 = vrot.slane %v1064_v22, 1  ;;  %3584 = vmatprep.subr.mxu1 %v4008_v0 }
 0xaa7   :  { %3585 = vmatpush3.msra.mxu1 %v4212_v10 }
 0xaa8   :  { %v1066_v57 = vmax.f32 %v1064_v22, %v1065_v56  ;;  %3596 = vmatprep.subr.mxu1 %v4008_v0 }
 0xaaa   :  { %v1073_v58 = vsub.f32 %v1057_v21, %v1066_v57 }
 0xaac   :  { %v1075_v59 = vmul.f32 1.442695, %v1073_v58 }
 0xaae   :  { %3790 = vpow2.f32 %v1075_v59 }
 0xabb   :  { %v3791_v25 = vpop.eup %3790 }
 0xabc   :  { %v1079_v60 = vrot.slane %v3791_v25, 4 }
 0xabe   :  { %v1080_v61 = vadd.f32 %v3791_v25, %v1079_v60 }
 0xac0   :  { %v1081_v7 = vrot.slane %v1080_v61, 2 }
 0xac2   :  { %v1082_v62 = vadd.f32 %v1081_v7, %v1080_v61 }
 0xac4   :  { %v1083_v63 = vrot.slane %v1082_v62, 1 }
 0xac6   :  { %v1084_v9 = vadd.f32 %v1083_v63, %v1082_v62 }
 0xac8   :  { %3792 = vrcp.f32 %v1084_v9 }
 0xad5   :  { %v3793_v8 = vpop.eup %3792 }
 0xad6   :  { %v1092_v14 = vmul.f32 %v3793_v8, %v3791_v25 }
 0xad8   :  { %3363 = vst.msk [vmem:[%s4954_s11 + $0x20] sm:$0xff] %vm269_vm2, %v1092_v14  ;;  %v1098_v15 = vmul.f32 %v1092_v14, %v4168_v18 }
 0xada   :  { %v1100_v16 = vsel %vm274_vm3, %v1098_v15, 0.0 }
 0xadb   :  { %v1101_v20 = vrot.slane %v1100_v16, 4 }
 0xadd   :  { %v1102_v24 = vadd.f32 %v1101_v20, %v1100_v16 }
 0xadf   :  { %v1103_v27 = vrot.slane %v1102_v24, 2 }
 0xae1   :  { %v1104_v32 = vadd.f32 %v1103_v27, %v1102_v24  ;;  %v4433_v24 = vld [vmem:[%s4945_s2 + $0x8] sm:$0xff] }
 0xae3   :  { %v1105_v35 = vrot.slane %v1104_v32, 1 }
 0xae5   :  { %v1106_v41 = vadd.f32 %v1105_v35, %v1104_v32 }
 0xb60   :  { %v942_v42 = vpop.f32.mrf.mxu1 }
 0xb61   :  { %v1115_v18 = vrot.slane %v942_v42, 1  ;;  %v1118_v47 = vadd.f32 %v1106_v41, %v942_v42 }
 0xb62   :  { %v3566_v13 = vpop.f32.mrf.mxu1 }
 0xb63   :  { %v1119_v38 = vadd.f32 %v1115_v18, %v1113_v46  ;;  %v1120_v48 = vadd.f32 %v4183_v37, %v1118_v47  ;;  %v4460_v47 = vld [vmem:[%s4943_s0 + $0x8] sm:$0xff] }
 0xb65   :  { %v1121_v2 = vadd.f32 %v4183_v37, %v1119_v38  ;;  %v1129_v4 = vadd.f32 %v1124_v1, %v1120_v48  ;;  %v4466_v38 = vld [vmem:[%s4946_s3] ss:$0 sm:$0xff] }
 0xb67   :  { %v1130_v49 = vadd.f32 %v1126_v5, %v1121_v2  ;;  %v3365_v28 = vmul.f32 -1.442695, %v1129_v4 }
 0xb69   :  { %3794 = vpow2.f32 %v3365_v28  ;;  %v3366_v29 = vmul.f32 -1.442695, %v1130_v49 }
 0xb6b   :  { %3796 = vpow2.f32 %v3366_v29 }
 0xb76   :  { %v3795_v50 = vpop.eup %3794 }
 0xb77   :  { %v1137_v51 = vadd.f32 1.0, %v3795_v50 }
 0xb78   :  { %v3797_v53 = vpop.eup %3796 }
 0xb79   :  { %v1138_v21 = vadd.f32 1.0, %v3797_v53  ;;  %3798 = vrcp.f32 %v1137_v51 }
 0xb7b   :  { %3800 = vrcp.f32 %v1138_v21 }
 0xb86   :  { %v3799_v55 = vpop.eup %3798 }
 0xb87   :  { %v1152_v31 = vmul.f32 %v3799_v55, %v1147_v39  ;;  %v1166_v7 = vsub.f32 1.0, %v3799_v55  ;;  %v1178_v15 = vmul.f32 %v3799_v55, %v4327_v44  ;;  %v4426_v44 = vld [vmem:[%s4945_s2 + $0x10] sm:$0xff] }
 0xb88   :  { %v3801_v22 = vpop.eup %3800 }
 0xb89   :  { %1156 = vrot.lane.b32.xlu1 %v1152_v31, %s4013_s9  ;;  %v1153_v37 = vmul.f32 %v3801_v22, %v1149_v54  ;;  %v1167_v62 = vsub.f32 1.0, %v3801_v22  ;;  %v1179_v8 = vmul.f32 %v3801_v22, %v4325_v43  ;;  %v4417_v43 = vld [vmem:[%s4945_s2 + $0x18] sm:$0xff] }
 0xb8b   :  { %1158 = vrot.lane.b32.xlu0 %v1153_v37, %s4013_s9 }
 0xbfb   :  { %v1157_v56 = vpop.permute.xlu1 %1156 }
 0xbfc   :  { %v1162_v57 = vadd.f32 %v1157_v56, %v1120_v48 }
 0xbfd   :  { %v1159_v58 = vpop.permute.xlu0 %1158 }
 0xbfe   :  { %3802 = vtanh.f32 %v1162_v57  ;;  %v1163_v59 = vadd.f32 %v1159_v58, %v1121_v2 }
 0xc00   :  { %3804 = vtanh.f32 %v1163_v59 }
 0xc0b   :  { %v3803_v25 = vpop.eup %3802 }
 0xc0c   :  { %1170 = vrot.lane.b32.xlu1 %v3803_v25, %s4010_s16 }
 0xc0d   :  { %v3805_v60 = vpop.eup %3804 }
 0xc0e   :  { %1172 = vrot.lane.b32.xlu0 %v3805_v60, %s4010_s16 }
 0xc7e   :  { %v1171_v61 = vpop.permute.xlu1 %1170 }
 0xc7f   :  { %v1176_v9 = vmul.f32 %v1171_v61, %v1166_v7 }
 0xc80   :  { %v1173_v63 = vpop.permute.xlu0 %1172 }
 0xc81   :  { %v1177_v14 = vmul.f32 %v1173_v63, %v1167_v62  ;;  %v4407_v16 = vadd.f32 %v1178_v15, %v1176_v9 }
 0xc83   :  { %v4405_v6 = vadd.f32 %v1179_v8, %v1177_v14  ;;  %v4485_v14 = vld [vmem:[%s4943_s0] sm:$0xff] }
 0xc85   :  { %v1184_v19 = vrot.slane %v4405_v6, 7 }
 0xc87   :  { %v1185_v20 = vsel %vm359_vm4, %v1184_v19, %v4407_v16 }
 0xc88   :  { %1186 = vrot.lane.b32.xlu0 %v1185_v20, %s4010_s16 }
 0xcfa   :  { %v1187_v23 = vpop.permute.xlu0 %1186 }
 0xcfb   :  { %3587 = vmatmul.mubr.msk.f32.vlgmr.msra.gmra.mxu1 %vm116_vm1, %v1187_v23 }
 0xcfc   :  { %3597 = vmatpush3.msra.mxu1 %v4417_v43  ;;  %3604 = vmatprep.mubr.msk.f32.mxu1 %vm4009_vm0, %v4008_v0 }
 0xcfd   :  { %3598 = vmatprep.subr.mxu1 %v4008_v0 }
 0xcfe   :  { %3599 = vmatpush3.msra.mxu1 %v4426_v44 }
 0xcff   :  { %3600 = vmatprep.subr.mxu1 %v4008_v0 }
 0xd00   :  { %3601 = vmatpush3.msra.mxu1 %v4433_v24 }
 0xd01   :  { %3602 = vmatprep.subr.mxu1 %v4008_v0 }
 0xd02   :  { %3603 = vmatpush3.msra.mxu1 %v4440_v26 }
 0xd03   :  { %3605 = vmatmul.mubr.msk.f32.vlgmr.msra.gmra.mxu1 %vm116_vm1, %v1187_v23  ;;  %3618 = vmatprep.subr.mxu1 %v4008_v0 }
 0xd04   :  { %3619 = vmatpush3.msra.mxu1 %v4281_v45  ;;  %3622 = vmatprep.mubr.msk.f32.mxu1 %vm4009_vm0, %v4008_v0 }
 0xd05   :  { %3620 = vmatprep.subr.mxu1 %v4008_v0 }
 0xd06   :  { %3621 = vmatpush3.msra.mxu1 %v4286_v40 }
 0xd07   :  { %3636 = vmatprep.subr.mxu1 %v4008_v0 }
 0xdbb   :  { %v1256_v27 = vpop.f32.mrf.mxu1 }
 0xdbc   :  { %v1257_v30 = vadd.f32 %v4244_v33, %v1256_v27 }
 0xdbd   :  { %v3588_v32 = vpop.f32.mrf.mxu1 }
 0xdbe   :  { %1261 = vst.msk [vmem:[#allocation7 + $0x4] sm:$0x3] %vm435_vm5, %v1257_v30  ;;  %v1262_v34 = vsel %vm435_vm5, %v1257_v30, -inf }
 0xdbf   :  { %1263 = vmax.xlane.f32.xlu1 %v1262_v34 }
 0xdc3   :  { %v1424_v35 = vpop.f32.mrf.mxu1 }
 0xdc4   :  { %v1435_v36 = vrot.slane %v1424_v35, %v4124_v11  ;;  %v1555_v2 = vadd.f32 %v1424_v35, %v4126_v12  ;;  %v1534_v4 = vrot.slane %v1424_v35, 1 }
 0xdc5   :  { %v3606_v41 = vpop.f32.mrf.mxu1 }
 0xdc6   :  { %v1436_v42 = vcombine.high %v1435_v36, %v1435_v36  ;;  %v1557_v5 = vrot.slane %v1555_v2, 1  ;;  %v1443_v9 = vrot.slane %v1435_v36, %v4124_v11 }
 0xdc8   :  { %v1450_v46 = vrot.slane %v1436_v42, %v4124_v11  ;;  %v1454_v8 = vrot.slane %v1443_v9, %v4130_v17 }
 0xdca   :  { %v1458_v18 = vrot.slane %v1450_v46, %v4130_v17  ;;  %v1461_v15 = vadd.f32 %v4485_v14, %v1454_v8 }
 0xdcc   :  { %v1462_v33 = vadd.f32 %v4460_v47, %v1458_v18  ;;  %v1463_v20 = vmax.f32 %v1461_v15, 0.0 }
 0xdce   :  { %v1464_v13 = vmax.f32 %v1462_v33, 0.0  ;;  %v1465_v32 = vmul.f32 %v4466_v38, %v1463_v20 }
 0xdd0   :  { %v1466_v48 = vmul.f32 %v4466_v38, %v1464_v13  ;;  %v1467_v34 = vsel %vm116_vm1, %v1465_v32, 0.0 }
 0xdd2   :  { %v1470_v1 = vsel %vm116_vm1, %v1466_v48, 0.0 }
 0xdd3   :  { %1471 = vadd.xlane.f32.xlu1 %v1470_v1 }
 0xde4   :  { %1537 = vrot.lane.b32.xlu1 %v1534_v4, %s4010_s16 }
 0xde8   :  { %1560 = vrot.lane.b32.xlu1 %v1557_v5, %s4012_s22 }
 0xdec   :  { %1558 = vrot.lane.b32.xlu1 %v1555_v2, %s4012_s22  ;;  %v4501_v2 = vld [vmem:[%s4949_s6 + $0x10] sm:$0xff] }
 0xe48   :  { %v1264_v49 = vpop.xlane.xlu1 %1263 }
 0xe49   :  { %vm1265_vm13 = vcmp.eq.f32.partialorder %v1257_v30, %v1264_v49 }
 0xe4a   :  { %v1266_v28 = vsel %vm1265_vm13, %v4265_v52, 16 }
 0xe4b   :  { %v1267_v29 = vsel %vm435_vm5, %v1266_v28, 2147483647 }
 0xe4c   :  { %v1269_v50 = vshra.s32 %v1267_v29, 16  ;;  %v1268_v19 = vand.u32 65535, %v1267_v29 }
 0xe4e   :  { %v1271_v51 = vcvt.s32.f32 %v1269_v50  ;;  %v1270_v27 = vcvt.s32.f32 %v1268_v19 }
 0xe50   :  { %1272 = vmin.xlane.f32.xlu0 %v1271_v51 }
 0xe5c   :  { %v1472_v53 = vpop.xlane.xlu1 %1471 }
 0xe5d   :  { %v1479_v21 = vrot.slane %v1472_v53, 4 }
 0xe5f   :  { %v1480_v54 = vmax.f32 %v1472_v53, %v1479_v21 }
 0xe61   :  { %v1481_v55 = vrot.slane %v1480_v54, 2 }
 0xe63   :  { %v1482_v39 = vmax.f32 %v1480_v54, %v1481_v55 }
 0xe65   :  { %v1483_v31 = vrot.slane %v1482_v39, 1 }
 0xe67   :  { %v1484_v22 = vmax.f32 %v1482_v39, %v1483_v31 }
 0xe69   :  { %v1486_v37 = vsub.f32 %v1472_v53, %v1484_v22 }
 0xe6b   :  { %v1489_v56 = vmul.f32 1.442695, %v1486_v37 }
 0xe6d   :  { %3806 = vpow2.f32 %v1489_v56  ;;  %v4521_v56 = vld [vmem:[#allocation2 + $0x8] sm:$0xff] }
 0xe7a   :  { %v3807_v57 = vpop.eup %3806 }
 0xe7b   :  { %v1497_v58 = vrot.slane %v3807_v57, 4 }
 0xe7d   :  { %v1498_v59 = vadd.f32 %v3807_v57, %v1497_v58 }
 0xe7f   :  { %v1499_v25 = vrot.slane %v1498_v59, 2 }
 0xe81   :  { %v1500_v60 = vadd.f32 %v1499_v25, %v1498_v59 }
 0xe83   :  { %v1501_v61 = vrot.slane %v1500_v60, 1 }
 0xe85   :  { %v1502_v7 = vadd.f32 %v1501_v61, %v1500_v60 }
 0xe87   :  { %3808 = vrcp.f32 %v1502_v7 }
 0xe94   :  { %v3809_v62 = vpop.eup %3808 }
 0xe95   :  { %v1506_v63 = vmul.f32 %v3809_v62, %v3807_v57 }
 0xe97   :  { %3372 = vst.msk [vmem:[%s4954_s11 + $0x38] sm:$0xff] %vm269_vm2, %v1506_v63  ;;  %v1511_v57 = vmul.f32 %v4521_v56, %v1506_v63 }
 0xe99   :  { %v1519_v59 = vsel %vm274_vm3, %v1511_v57, 0.0 }
 0xe9a   :  { %v1520_v60 = vrot.slane %v1519_v59, 4 }
 0xe9c   :  { %v1521_v7 = vadd.f32 %v1520_v60, %v1519_v59 }
 0xe9e   :  { %v1522_v9 = vrot.slane %v1521_v7, 2 }
 0xea0   :  { %v1523_v15 = vadd.f32 %v1522_v9, %v1521_v7 }
 0xea2   :  { %v1524_v20 = vrot.slane %v1523_v15, 1 }
 0xed9   :  { %v1273_v23 = vpop.xlane.xlu0 %1272 }
 0xeda   :  { %vm1274_vm14 = vcmp.eq.f32.partialorder %v1271_v51, %v1273_v23  ;;  %v1279_v36 = vcvt.f32.s32 %v1273_v23 }
 0xedb   :  { %v1275_v30 = vsel %vm1274_vm14, %v1270_v27, inf }
 0xedc   :  { %1276 = vmin.xlane.f32.xlu0 %v1275_v30  ;;  %v1280_v42 = vshll.u32 %v1279_v36, 16  ;;  %v1525_v30 = vadd.f32 %v1524_v20, %v1523_v15 }
 0xee0   :  { %1468 = vadd.xlane.f32.xlu0 %v1467_v34 }
 0xef6   :  { %1535 = vrot.lane.b32.xlu0 %v1424_v35, %s4010_s16 }
 0xf65   :  { %v1277_v41 = vpop.xlane.xlu0 %1276 }
 0xf66   :  { %v1278_v46 = vcvt.f32.s32 %v1277_v41  ;;  %v4529_v41 = vld [vmem:[%s4947_s4] ss:$0 sm:$0xff] }
 0xf68   :  { %v1281_v18 = vadd.s32 %v1280_v42, %v1278_v46 }
 0xf69   :  { %v1469_v33 = vpop.xlane.xlu0 %1468 }
 0xf6a   :  { %vm1282_vm15 = vcmp.eq.s32.totalorder %v4265_v52, %v1281_v18  ;;  %v1473_v13 = vrot.slane %v1469_v33, 4 }
 0xf6b   :  { %v3368_v48 = vsel %vm1282_vm15, 1.0, %v4008_v0 }
 0xf6c   :  { %v1474_v1 = vmax.f32 %v1469_v33, %v1473_v13  ;;  %3594 = vmatmul.mubr.msk.f32.vlgmr.msra.gmra.mxu0 %vm460_vm8, %v3368_v48  ;;  %v1538_v13 = vpop.permute.xlu1 %1537 }
 0xf6d   :  { %3608 = vmatpush3.msra.mxu0 %v4192_v3  ;;  %3615 = vmatprep.mubr.msk.f32.mxu0 %vm4009_vm0, %v4008_v0  ;;  %v4508_v3 = vld [vmem:[%s4949_s6 + $0x8] sm:$0xff]  ;;  %v1536_v46 = vpop.permute.xlu0 %1535 }
 0xf6e   :  { %v1475_v35 = vrot.slane %v1474_v1, 2  ;;  %3609 = vmatprep.subr.mxu0 %v4008_v0 }
 0xf6f   :  { %3610 = vmatpush3.msra.mxu0 %v4501_v2 }
 0xf70   :  { %v1476_v4 = vmax.f32 %v1474_v1, %v1475_v35  ;;  %3611 = vmatprep.subr.mxu0 %v4008_v0 }
 0xf71   :  { %3612 = vmatpush3.msra.mxu0 %v4508_v3 }
 0xf72   :  { %v1477_v5 = vrot.slane %v1476_v4, 1  ;;  %3613 = vmatprep.subr.mxu0 %v4008_v0 }
 0xf73   :  { %3614 = vmatpush3.msra.mxu0 %v4212_v10  ;;  %v4518_v10 = vld [vmem:[#allocation2] sm:$0xff] }
 0xf74   :  { %v1478_v49 = vmax.f32 %v1476_v4, %v1477_v5  ;;  %3625 = vmatprep.subr.mxu0 %v4008_v0 }
 0xf76   :  { %v1485_v28 = vsub.f32 %v1469_v33, %v1478_v49 }
 0xf78   :  { %v1487_v29 = vmul.f32 1.442695, %v1485_v28 }
 0xf7a   :  { %3810 = vpow2.f32 %v1487_v29  ;;  %v1561_v29 = vpop.permute.xlu1 %1560 }
 0xf87   :  { %v3811_v50 = vpop.eup %3810 }
 0xf88   :  { %v1491_v51 = vrot.slane %v3811_v50, 4 }
 0xf8a   :  { %v1492_v53 = vadd.f32 %v3811_v50, %v1491_v51  ;;  %v1559_v51 = vpop.permute.xlu1 %1558 }
 0xf8c   :  { %v1493_v21 = vrot.slane %v1492_v53, 2 }
 0xf8e   :  { %v1494_v54 = vadd.f32 %v1493_v21, %v1492_v53 }
 0xf90   :  { %v1495_v55 = vrot.slane %v1494_v54, 1 }
 0xf92   :  { %v1496_v39 = vadd.f32 %v1495_v55, %v1494_v54 }
 0xf94   :  { %3812 = vrcp.f32 %v1496_v39 }
 0xfa1   :  { %v3813_v31 = vpop.eup %3812 }
 0xfa2   :  { %v1504_v22 = vmul.f32 %v3813_v31, %v3811_v50 }
 0xfa4   :  { %3371 = vst.msk [vmem:[%s4954_s11 + $0x30] sm:$0xff] %vm269_vm2, %v1504_v22  ;;  %v1510_v37 = vmul.f32 %v4518_v10, %v1504_v22 }
 0xfa6   :  { %v1512_v58 = vsel %vm274_vm3, %v1510_v37, 0.0 }
 0xfa7   :  { %v1513_v25 = vrot.slane %v1512_v58, 4 }
 0xfa9   :  { %v1514_v61 = vadd.f32 %v1513_v25, %v1512_v58 }
 0xfab   :  { %v1515_v62 = vrot.slane %v1514_v61, 2 }
 0xfad   :  { %v1516_v8 = vadd.f32 %v1515_v62, %v1514_v61 }
 0xfaf   :  { %v1517_v19 = vrot.slane %v1516_v8, 1 }
 0xfb1   :  { %v1518_v23 = vadd.f32 %v1517_v19, %v1516_v8 }
0x102c   :  { %v1354_v27 = vpop.f32.mrf.mxu0 }
0x102d   :  { %v1527_v32 = vrot.slane %v1354_v27, 1  ;;  %v1530_v34 = vadd.f32 %v1518_v23, %v1354_v27 }
0x102e   :  { %v3595_v63 = vpop.f32.mrf.mxu0 }
0x102f   :  { %v1531_v36 = vadd.f32 %v1527_v32, %v1525_v30  ;;  %v1532_v42 = vadd.f32 %v4529_v41, %v1530_v34 }
0x1031   :  { %v1533_v18 = vadd.f32 %v4529_v41, %v1531_v36  ;;  %v1541_v33 = vadd.f32 %v1536_v46, %v1532_v42 }
0x1033   :  { %v1542_v48 = vadd.f32 %v1538_v13, %v1533_v18  ;;  %v3373_v1 = vmul.f32 -1.442695, %v1541_v33 }
0x1035   :  { %3814 = vpow2.f32 %v3373_v1  ;;  %v3374_v35 = vmul.f32 -1.442695, %v1542_v48 }
0x1037   :  { %3816 = vpow2.f32 %v3374_v35 }
0x1042   :  { %v3815_v4 = vpop.eup %3814 }
0x1043   :  { %v1549_v5 = vadd.f32 1.0, %v3815_v4 }
0x1044   :  { %v3817_v49 = vpop.eup %3816 }
0x1045   :  { %v1550_v28 = vadd.f32 1.0, %v3817_v49  ;;  %3818 = vrcp.f32 %v1549_v5 }
0x1047   :  { %3820 = vrcp.f32 %v1550_v28 }
0x1052   :  { %v3819_v50 = vpop.eup %3818 }
0x1053   :  { %v1564_v53 = vmul.f32 %v3819_v50, %v1559_v51  ;;  %v1578_v59 = vsub.f32 1.0, %v3819_v50  ;;  %v1590_v9 = vmul.f32 %v3819_v50, %v4407_v16  ;;  %v4568_v16 = vld [vmem:[%s4950_s7] ss:$0 sm:$0xff] }
0x1054   :  { %v3821_v21 = vpop.eup %3820 }
0x1055   :  { %1568 = vrot.lane.b32.xlu1 %v1564_v53, %s4013_s9  ;;  %v1565_v54 = vmul.f32 %v3821_v21, %v1561_v29  ;;  %v1579_v25 = vsub.f32 1.0, %v3821_v21  ;;  %v1591_v7 = vmul.f32 %v3821_v21, %v4405_v6 }
0x1057   :  { %1570 = vrot.lane.b32.xlu0 %v1565_v54, %s4013_s9 }
0x10c7   :  { %v1569_v55 = vpop.permute.xlu1 %1568 }
0x10c8   :  { %v1574_v39 = vadd.f32 %v1569_v55, %v1532_v42 }
0x10c9   :  { %v1571_v31 = vpop.permute.xlu0 %1570 }
0x10ca   :  { %3822 = vtanh.f32 %v1574_v39  ;;  %v1575_v22 = vadd.f32 %v1571_v31, %v1533_v18 }
0x10cc   :  { %3824 = vtanh.f32 %v1575_v22 }
0x10d7   :  { %v3823_v37 = vpop.eup %3822 }
0x10d8   :  { %1582 = vrot.lane.b32.xlu1 %v3823_v37, %s4010_s16 }
0x10d9   :  { %v3825_v57 = vpop.eup %3824 }
0x10da   :  { %1584 = vrot.lane.b32.xlu0 %v3825_v57, %s4010_s16 }
0x114a   :  { %v1583_v58 = vpop.permute.xlu1 %1582 }
0x114b   :  { %v1588_v61 = vmul.f32 %v1583_v58, %v1578_v59 }
0x114c   :  { %v1585_v60 = vpop.permute.xlu0 %1584 }
0x114d   :  { %v1589_v62 = vmul.f32 %v1585_v60, %v1579_v25  ;;  %v4541_v15 = vadd.f32 %v1590_v9, %v1588_v61 }
0x114f   :  { %v4539_v8 = vadd.f32 %v1591_v7, %v1589_v62 }
0x1151   :  { %v1596_v19 = vrot.slane %v4539_v8, 7 }
0x1153   :  { %v1597_v20 = vsel %vm359_vm4, %v1596_v19, %v4541_v15 }
0x1154   :  { %1598 = vrot.lane.b32.xlu0 %v1597_v20, %s4010_s16 }
0x11c6   :  { %v1599_v23 = vpop.permute.xlu0 %1598 }
0x11c7   :  { %3616 = vmatmul.mubr.msk.f32.vlgmr.msra.gmra.mxu0 %vm116_vm1, %v1599_v23 }
0x11c8   :  { %3626 = vmatpush3.msra.mxu0 %v4417_v43  ;;  %3633 = vmatprep.mubr.msk.f32.mxu0 %vm4009_vm0, %v4008_v0 }
0x11c9   :  { %3627 = vmatprep.subr.mxu0 %v4008_v0 }
0x11ca   :  { %3628 = vmatpush3.msra.mxu0 %v4426_v44 }
0x11cb   :  { %3629 = vmatprep.subr.mxu0 %v4008_v0 }
0x11cc   :  { %3630 = vmatpush3.msra.mxu0 %v4433_v24 }
0x11cd   :  { %3631 = vmatprep.subr.mxu0 %v4008_v0 }
0x11ce   :  { %3632 = vmatpush3.msra.mxu0 %v4440_v26 }
0x11cf   :  { %3634 = vmatmul.mubr.msk.f32.vlgmr.msra.gmra.mxu0 %vm116_vm1, %v1599_v23  ;;  %3647 = vmatprep.subr.mxu0 %v4008_v0 }
0x11d0   :  { %3648 = vmatpush3.msra.mxu0 %v4281_v45  ;;  %3651 = vmatprep.mubr.msk.f32.mxu0 %vm4009_vm0, %v4008_v0 }
0x11d1   :  { %3649 = vmatprep.subr.mxu0 %v4008_v0 }
0x11d2   :  { %3650 = vmatpush3.msra.mxu0 %v4286_v40 }
0x11d3   :  { %3665 = vmatprep.subr.mxu0 %v4008_v0 }
0x1287   :  { %v1668_v6 = vpop.f32.mrf.mxu0 }
0x1288   :  { %v1669_v27 = vadd.f32 %v4568_v16, %v1668_v6 }
0x1289   :  { %v3617_v30 = vpop.f32.mrf.mxu0 }
0x128a   :  { %1673 = vst.msk [vmem:[#allocation7 + $0x6] sm:$0x3] %vm435_vm5, %v1669_v27  ;;  %v1674_v45 = vsel %vm435_vm5, %v1669_v27, -inf }
0x128b   :  { %1675 = vmax.xlane.f32.xlu1 %v1674_v45 }
0x128f   :  { %v1836_v32 = vpop.f32.mrf.mxu0 }
0x1290   :  { %v1847_v34 = vrot.slane %v1836_v32, %v4124_v11  ;;  %v1967_v48 = vadd.f32 %v1836_v32, %v4126_v12  ;;  %v1946_v1 = vrot.slane %v1836_v32, 1 }
0x1291   :  { %v3635_v40 = vpop.f32.mrf.mxu0 }
0x1292   :  { %v1848_v63 = vcombine.high %v1847_v34, %v1847_v34  ;;  %v1969_v35 = vrot.slane %v1967_v48, 1  ;;  %v1855_v9 = vrot.slane %v1847_v34, %v4124_v11 }
0x1294   :  { %v1862_v36 = vrot.slane %v1848_v63, %v4124_v11  ;;  %v1866_v19 = vrot.slane %v1855_v9, %v4130_v17 }
0x1296   :  { %v1870_v42 = vrot.slane %v1862_v36, %v4130_v17  ;;  %v1873_v20 = vadd.f32 %v4485_v14, %v1866_v19 }
0x1298   :  { %v1874_v46 = vadd.f32 %v4460_v47, %v1870_v42  ;;  %v1875_v6 = vmax.f32 %v1873_v20, 0.0 }
0x129a   :  { %v1876_v18 = vmax.f32 %v1874_v46, 0.0  ;;  %v1877_v40 = vmul.f32 %v4466_v38, %v1875_v6 }
0x129c   :  { %v1878_v33 = vmul.f32 %v4466_v38, %v1876_v18  ;;  %v1879_v63 = vsel %vm116_vm1, %v1877_v40, 0.0 }
0x129e   :  { %v1882_v13 = vsel %vm116_vm1, %v1878_v33, 0.0 }
0x129f   :  { %1883 = vadd.xlane.f32.xlu1 %v1882_v13 }
0x12b0   :  { %1949 = vrot.lane.b32.xlu1 %v1946_v1, %s4010_s16 }
0x12b4   :  { %1972 = vrot.lane.b32.xlu1 %v1969_v35, %s4012_s22  ;;  %v4601_v35 = vld [vmem:[%s4949_s6 + $0x18] sm:$0xff] }
0x12b8   :  { %1970 = vrot.lane.b32.xlu1 %v1967_v48, %s4012_s22 }
0x1314   :  { %v1676_v4 = vpop.xlane.xlu1 %1675 }
0x1315   :  { %vm1677_vm6 = vcmp.eq.f32.partialorder %v1669_v27, %v1676_v4 }
0x1316   :  { %v1678_v5 = vsel %vm1677_vm6, %v4265_v52, 16 }
0x1317   :  { %v1679_v49 = vsel %vm435_vm5, %v1678_v5, 2147483647 }
0x1318   :  { %v1681_v28 = vshra.s32 %v1679_v49, 16  ;;  %v1680_v23 = vand.u32 65535, %v1679_v49  ;;  %v4614_v49 = vld [vmem:[%s4949_s6] sm:$0xff] }
0x131a   :  { %v1683_v29 = vcvt.s32.f32 %v1681_v28  ;;  %v1682_v30 = vcvt.s32.f32 %v1680_v23 }
0x131c   :  { %1684 = vmin.xlane.f32.xlu0 %v1683_v29 }
0x1328   :  { %v1884_v50 = vpop.xlane.xlu1 %1883 }
0x1329   :  { %v1891_v51 = vrot.slane %v1884_v50, 4 }
0x132b   :  { %v1892_v53 = vmax.f32 %v1884_v50, %v1891_v51 }
0x132d   :  { %v1893_v21 = vrot.slane %v1892_v53, 2 }
0x132f   :  { %v1894_v54 = vmax.f32 %v1892_v53, %v1893_v21 }
0x1331   :  { %v1895_v55 = vrot.slane %v1894_v54, 1 }
0x1333   :  { %v1896_v39 = vmax.f32 %v1894_v54, %v1895_v55 }
0x1335   :  { %v1898_v31 = vsub.f32 %v1884_v50, %v1896_v39 }
0x1337   :  { %v1901_v22 = vmul.f32 1.442695, %v1898_v31 }
0x1339   :  { %3826 = vpow2.f32 %v1901_v22 }
0x1346   :  { %v3827_v37 = vpop.eup %3826 }
0x1347   :  { %v1909_v57 = vrot.slane %v3827_v37, 4 }
0x1349   :  { %v1910_v58 = vadd.f32 %v3827_v37, %v1909_v57 }
0x134b   :  { %v1911_v59 = vrot.slane %v1910_v58, 2 }
0x134d   :  { %v1912_v25 = vadd.f32 %v1911_v59, %v1910_v58 }
0x134f   :  { %v1913_v60 = vrot.slane %v1912_v25, 1 }
0x1351   :  { %v1914_v61 = vadd.f32 %v1913_v60, %v1912_v25 }
0x1353   :  { %3828 = vrcp.f32 %v1914_v61 }
0x1360   :  { %v3829_v7 = vpop.eup %3828 }
0x1361   :  { %v1918_v62 = vmul.f32 %v3829_v7, %v3827_v37 }
0x1363   :  { %3380 = vst.msk [vmem:[%s4954_s11 + $0x48] sm:$0xff] %vm269_vm2, %v1918_v62  ;;  %v1923_v58 = vmul.f32 %v4521_v56, %v1918_v62 }
0x1365   :  { %v1931_v25 = vsel %vm274_vm3, %v1923_v58, 0.0 }
0x1366   :  { %v1932_v61 = vrot.slane %v1931_v25, 4 }
0x1368   :  { %v1933_v9 = vadd.f32 %v1932_v61, %v1931_v25 }
0x136a   :  { %v1934_v20 = vrot.slane %v1933_v9, 2 }
0x136c   :  { %v1935_v6 = vadd.f32 %v1934_v20, %v1933_v9 }
0x13a5   :  { %v1685_v27 = vpop.xlane.xlu0 %1684 }
0x13a6   :  { %vm1686_vm7 = vcmp.eq.f32.partialorder %v1683_v29, %v1685_v27  ;;  %v1691_v36 = vcvt.f32.s32 %v1685_v27 }
0x13a7   :  { %v1687_v45 = vsel %vm1686_vm7, %v1682_v30, inf  ;;  %v1936_v30 = vrot.slane %v1935_v6, 1 }
0x13a8   :  { %1688 = vmin.xlane.f32.xlu0 %v1687_v45  ;;  %v1692_v42 = vshll.u32 %v1691_v36, 16 }
0x13ac   :  { %1880 = vadd.xlane.f32.xlu0 %v1879_v63  ;;  %v1937_v63 = vadd.f32 %v1936_v30, %v1935_v6 }
0x13c2   :  { %1947 = vrot.lane.b32.xlu0 %v1836_v32, %s4010_s16 }
0x1431   :  { %v1689_v34 = vpop.xlane.xlu0 %1688 }
0x1432   :  { %v1690_v46 = vcvt.f32.s32 %v1689_v34 }
0x1434   :  { %v1693_v18 = vadd.s32 %v1692_v42, %v1690_v46 }
0x1435   :  { %v1881_v33 = vpop.xlane.xlu0 %1880 }
0x1436   :  { %vm1694_vm9 = vcmp.eq.s32.totalorder %v4265_v52, %v1693_v18  ;;  %v1885_v13 = vrot.slane %v1881_v33, 4 }
0x1437   :  { %v3376_v48 = vsel %vm1694_vm9, 1.0, %v4008_v0 }
0x1438   :  { %v1886_v1 = vmax.f32 %v1881_v33, %v1885_v13  ;;  %3623 = vmatmul.mubr.msk.f32.vlgmr.msra.gmra.mxu1 %vm460_vm8, %v3376_v48  ;;  %v1950_v48 = vpop.permute.xlu1 %1949 }
0x1439   :  { %3637 = vmatpush3.msra.mxu1 %v4601_v35  ;;  %3644 = vmatprep.mubr.msk.f32.mxu1 %vm4009_vm0, %v4008_v0  ;;  %v1948_v18 = vpop.permute.xlu0 %1947 }
0x143a   :  { %v1887_v32 = vrot.slane %v1886_v1, 2  ;;  %3638 = vmatprep.subr.mxu1 %v4008_v0 }
0x143b   :  { %3639 = vmatpush3.msra.mxu1 %v4501_v2 }
0x143c   :  { %v1888_v4 = vmax.f32 %v1886_v1, %v1887_v32  ;;  %3640 = vmatprep.subr.mxu1 %v4008_v0 }
0x143d   :  { %3641 = vmatpush3.msra.mxu1 %v4508_v3 }
0x143e   :  { %v1889_v5 = vrot.slane %v1888_v4, 1  ;;  %3642 = vmatprep.subr.mxu1 %v4008_v0 }
0x143f   :  { %3643 = vmatpush3.msra.mxu1 %v4614_v49 }
0x1440   :  { %v1890_v28 = vmax.f32 %v1888_v4, %v1889_v5  ;;  %3654 = vmatprep.subr.mxu1 %v4008_v0 }
0x1442   :  { %v1897_v29 = vsub.f32 %v1881_v33, %v1890_v28 }
0x1444   :  { %v1899_v50 = vmul.f32 1.442695, %v1897_v29 }
0x1446   :  { %3830 = vpow2.f32 %v1899_v50 }
0x1453   :  { %v3831_v51 = vpop.eup %3830 }
0x1454   :  { %v1903_v53 = vrot.slane %v3831_v51, 4 }
0x1456   :  { %v1904_v21 = vadd.f32 %v3831_v51, %v1903_v53 }
0x1458   :  { %v1905_v54 = vrot.slane %v1904_v21, 2 }
0x145a   :  { %v1906_v55 = vadd.f32 %v1905_v54, %v1904_v21 }
0x145c   :  { %v1907_v39 = vrot.slane %v1906_v55, 1 }
0x145e   :  { %v1908_v31 = vadd.f32 %v1907_v39, %v1906_v55 }
0x1460   :  { %3832 = vrcp.f32 %v1908_v31 }
0x146d   :  { %v3833_v22 = vpop.eup %3832 }
0x146e   :  { %v1916_v37 = vmul.f32 %v3833_v22, %v3831_v51  ;;  %v1973_v51 = vpop.permute.xlu1 %1972 }
0x1470   :  { %3379 = vst.msk [vmem:[%s4954_s11 + $0x40] sm:$0xff] %vm269_vm2, %v1916_v37  ;;  %v1922_v57 = vmul.f32 %v4518_v10, %v1916_v37 }
0x1472   :  { %v1924_v59 = vsel %vm274_vm3, %v1922_v57, 0.0  ;;  %v1971_v21 = vpop.permute.xlu1 %1970 }
0x1473   :  { %v1925_v60 = vrot.slane %v1924_v59, 4 }
0x1475   :  { %v1926_v7 = vadd.f32 %v1925_v60, %v1924_v59 }
0x1477   :  { %v1927_v19 = vrot.slane %v1926_v7, 2 }
0x1479   :  { %v1928_v23 = vadd.f32 %v1927_v19, %v1926_v7 }
0x147b   :  { %v1929_v27 = vrot.slane %v1928_v23, 1 }
0x147d   :  { %v1930_v45 = vadd.f32 %v1929_v27, %v1928_v23 }
0x14f8   :  { %v1766_v40 = vpop.f32.mrf.mxu1 }
0x14f9   :  { %v1939_v36 = vrot.slane %v1766_v40, 1  ;;  %v1942_v34 = vadd.f32 %v1930_v45, %v1766_v40 }
0x14fa   :  { %v3624_v62 = vpop.f32.mrf.mxu1 }
0x14fb   :  { %v1943_v42 = vadd.f32 %v1939_v36, %v1937_v63  ;;  %v1944_v46 = vadd.f32 %v4529_v41, %v1942_v34 }
0x14fd   :  { %v1945_v33 = vadd.f32 %v4529_v41, %v1943_v42  ;;  %v1953_v13 = vadd.f32 %v1948_v18, %v1944_v46 }
0x14ff   :  { %v1954_v1 = vadd.f32 %v1950_v48, %v1945_v33  ;;  %v3381_v32 = vmul.f32 -1.442695, %v1953_v13 }
0x1501   :  { %3834 = vpow2.f32 %v3381_v32  ;;  %v3382_v4 = vmul.f32 -1.442695, %v1954_v1 }
0x1503   :  { %3836 = vpow2.f32 %v3382_v4 }
0x150e   :  { %v3835_v5 = vpop.eup %3834 }
0x150f   :  { %v1961_v28 = vadd.f32 1.0, %v3835_v5 }
0x1510   :  { %v3837_v29 = vpop.eup %3836 }
0x1511   :  { %v1962_v50 = vadd.f32 1.0, %v3837_v29  ;;  %3838 = vrcp.f32 %v1961_v28 }
0x1513   :  { %3840 = vrcp.f32 %v1962_v50 }
0x151e   :  { %v3839_v53 = vpop.eup %3838 }
0x151f   :  { %v1976_v54 = vmul.f32 %v3839_v53, %v1971_v21  ;;  %v1990_v60 = vsub.f32 1.0, %v3839_v53  ;;  %v2002_v23 = vmul.f32 %v3839_v53, %v4541_v15 }
0x1520   :  { %v3841_v55 = vpop.eup %3840 }
0x1521   :  { %1980 = vrot.lane.b32.xlu1 %v1976_v54, %s4013_s9  ;;  %v1977_v39 = vmul.f32 %v3841_v55, %v1973_v51  ;;  %v1991_v61 = vsub.f32 1.0, %v3841_v55  ;;  %v2003_v19 = vmul.f32 %v3841_v55, %v4539_v8 }
0x1523   :  { %1982 = vrot.lane.b32.xlu0 %v1977_v39, %s4013_s9 }
0x1593   :  { %v1981_v31 = vpop.permute.xlu1 %1980 }
0x1594   :  { %v1986_v22 = vadd.f32 %v1981_v31, %v1944_v46 }
0x1595   :  { %v1983_v37 = vpop.permute.xlu0 %1982 }
0x1596   :  { %3842 = vtanh.f32 %v1986_v22  ;;  %v1987_v57 = vadd.f32 %v1983_v37, %v1945_v33 }
0x1598   :  { %3844 = vtanh.f32 %v1987_v57 }
0x15a3   :  { %v3843_v58 = vpop.eup %3842 }
0x15a4   :  { %1994 = vrot.lane.b32.xlu1 %v3843_v58, %s4010_s16 }
0x15a5   :  { %v3845_v59 = vpop.eup %3844 }
0x15a6   :  { %1996 = vrot.lane.b32.xlu0 %v3845_v59, %s4010_s16 }
0x1616   :  { %v1995_v25 = vpop.permute.xlu1 %1994 }
0x1617   :  { %v2000_v9 = vmul.f32 %v1995_v25, %v1990_v60 }
0x1618   :  { %v1997_v7 = vpop.permute.xlu0 %1996 }
0x1619   :  { %v2001_v20 = vmul.f32 %v1997_v7, %v1991_v61  ;;  %v4636_v27 = vadd.f32 %v2002_v23, %v2000_v9 }
0x161b   :  { %v4634_v6 = vadd.f32 %v2003_v19, %v2001_v20 }
0x161d   :  { %v2008_v30 = vrot.slane %v4634_v6, 7 }
0x161f   :  { %v2009_v45 = vsel %vm359_vm4, %v2008_v30, %v4636_v27 }
0x1620   :  { %2010 = vrot.lane.b32.xlu0 %v2009_v45, %s4010_s16 }
0x1692   :  { %v2011_v40 = vpop.permute.xlu0 %2010 }
0x1693   :  { %3645 = vmatmul.mubr.msk.f32.vlgmr.msra.gmra.mxu1 %vm116_vm1, %v2011_v40 }
0x1694   :  { %3655 = vmatpush3.msra.mxu1 %v4417_v43  ;;  %3662 = vmatprep.mubr.msk.f32.mxu1 %vm4009_vm0, %v4008_v0  ;;  %v4654_v43 = vld [vmem:[#allocation5 + $0x8] sm:$0xff] }
0x1695   :  { %3656 = vmatprep.subr.mxu1 %v4008_v0 }
0x1696   :  { %3657 = vmatpush3.msra.mxu1 %v4426_v44  ;;  %v4660_v44 = vld [vmem:[#allocation5] sm:$0xff] }
0x1697   :  { %3658 = vmatprep.subr.mxu1 %v4008_v0 }
0x1698   :  { %3659 = vmatpush3.msra.mxu1 %v4433_v24 }
0x1699   :  { %3660 = vmatprep.subr.mxu1 %v4008_v0 }
0x169a   :  { %3661 = vmatpush3.msra.mxu1 %v4440_v26 }
0x169b   :  { %3663 = vmatmul.mubr.msk.f32.vlgmr.msra.gmra.mxu1 %vm116_vm1, %v2011_v40  ;;  %3676 = vmatprep.subr.mxu1 %v4008_v0 }
0x169c   :  { %3677 = vmatpush3.msra.mxu1 %v4654_v43  ;;  %3680 = vmatprep.mubr.msk.f32.mxu1 %vm4009_vm0, %v4008_v0 }
0x169d   :  { %3678 = vmatprep.subr.mxu1 %v4008_v0 }
0x169e   :  { %3679 = vmatpush3.msra.mxu1 %v4660_v44 }
0x169f   :  { %3694 = vmatprep.subr.mxu1 %v4008_v0 }
0x1753   :  { %v2080_v24 = vpop.f32.mrf.mxu1 }
0x1754   :  { %v2081_v26 = vadd.f32 %v4568_v16, %v2080_v24 }
0x1755   :  { %v3646_v8 = vpop.f32.mrf.mxu1 }
0x1756   :  { %2085 = vst.msk [vmem:[#allocation7 + $0x8] sm:$0x3] %vm435_vm5, %v2081_v26  ;;  %v2086_v15 = vsel %vm435_vm5, %v2081_v26, -inf }
0x1757   :  { %2087 = vmax.xlane.f32.xlu1 %v2086_v15 }
0x175b   :  { %v2248_v63 = vpop.f32.mrf.mxu1 }
0x175c   :  { %v2259_v36 = vrot.slane %v2248_v63, %v4124_v11  ;;  %v2379_v1 = vadd.f32 %v2248_v63, %v4126_v12  ;;  %v2358_v32 = vrot.slane %v2248_v63, 1 }
0x175d   :  { %v3664_v34 = vpop.f32.mrf.mxu1 }
0x175e   :  { %v2260_v62 = vcombine.high %v2259_v36, %v2259_v36  ;;  %v2381_v4 = vrot.slane %v2379_v1, 1  ;;  %v2267_v20 = vrot.slane %v2259_v36, %v4124_v11 }
0x1760   :  { %v2274_v42 = vrot.slane %v2260_v62, %v4124_v11  ;;  %v2278_v23 = vrot.slane %v2267_v20, %v4130_v17 }
0x1762   :  { %v2282_v46 = vrot.slane %v2274_v42, %v4130_v17  ;;  %v2285_v30 = vadd.f32 %v4485_v14, %v2278_v23 }
0x1764   :  { %v2286_v18 = vadd.f32 %v4460_v47, %v2282_v46  ;;  %v2287_v40 = vmax.f32 %v2285_v30, 0.0 }
0x1766   :  { %v2288_v33 = vmax.f32 %v2286_v18, 0.0  ;;  %v2289_v15 = vmul.f32 %v4466_v38, %v2287_v40 }
0x1768   :  { %v2290_v13 = vmul.f32 %v4466_v38, %v2288_v33  ;;  %v2291_v34 = vsel %vm116_vm1, %v2289_v15, 0.0 }
0x176a   :  { %v2294_v48 = vsel %vm116_vm1, %v2290_v13, 0.0 }
0x176b   :  { %2295 = vadd.xlane.f32.xlu1 %v2294_v48 }
0x177c   :  { %2361 = vrot.lane.b32.xlu1 %v2358_v32, %s4010_s16 }
0x1780   :  { %2384 = vrot.lane.b32.xlu1 %v2381_v4, %s4012_s22 }
0x1784   :  { %2382 = vrot.lane.b32.xlu1 %v2379_v1, %s4012_s22 }
0x17e0   :  { %v2088_v5 = vpop.xlane.xlu1 %2087 }
0x17e1   :  { %vm2089_vm10 = vcmp.eq.f32.partialorder %v2081_v26, %v2088_v5 }
0x17e2   :  { %v2090_v47 = vsel %vm2089_vm10, %v4265_v52, 16 }
0x17e3   :  { %v2091_v28 = vsel %vm435_vm5, %v2090_v47, 2147483647 }
0x17e4   :  { %v2093_v29 = vshra.s32 %v2091_v28, 16  ;;  %v2092_v45 = vand.u32 65535, %v2091_v28 }
0x17e6   :  { %v2095_v50 = vcvt.s32.f32 %v2093_v29  ;;  %v2094_v26 = vcvt.s32.f32 %v2092_v45 }
0x17e8   :  { %2096 = vmin.xlane.f32.xlu0 %v2095_v50 }
0x17f4   :  { %v2296_v51 = vpop.xlane.xlu1 %2295 }
0x17f5   :  { %v2303_v53 = vrot.slane %v2296_v51, 4 }
0x17f7   :  { %v2304_v21 = vmax.f32 %v2296_v51, %v2303_v53 }
0x17f8   :  { %v2362_v15 = vpop.permute.xlu1 %2361 }
0x17f9   :  { %v2305_v54 = vrot.slane %v2304_v21, 2 }
0x17fb   :  { %v2306_v55 = vmax.f32 %v2304_v21, %v2305_v54 }
0x17fd   :  { %v2307_v39 = vrot.slane %v2306_v55, 1 }
0x17ff   :  { %v2308_v31 = vmax.f32 %v2306_v55, %v2307_v39 }
0x1801   :  { %v2310_v22 = vsub.f32 %v2296_v51, %v2308_v31 }
0x1803   :  { %v2313_v37 = vmul.f32 1.442695, %v2310_v22 }
0x1805   :  { %3846 = vpow2.f32 %v2313_v37 }
0x1812   :  { %v3847_v57 = vpop.eup %3846 }
0x1813   :  { %v2321_v58 = vrot.slane %v3847_v57, 4 }
0x1815   :  { %v2322_v59 = vadd.f32 %v3847_v57, %v2321_v58 }
0x1817   :  { %v2323_v25 = vrot.slane %v2322_v59, 2 }
0x1819   :  { %v2324_v60 = vadd.f32 %v2323_v25, %v2322_v59 }
0x181b   :  { %v2325_v61 = vrot.slane %v2324_v60, 1 }
0x181d   :  { %v2326_v7 = vadd.f32 %v2325_v61, %v2324_v60 }
0x181f   :  { %3848 = vrcp.f32 %v2326_v7 }
0x182c   :  { %v3849_v9 = vpop.eup %3848 }
0x182d   :  { %v2330_v19 = vmul.f32 %v3849_v9, %v3847_v57 }
0x182f   :  { %3388 = vst.msk [vmem:[%s4954_s11 + $0x58] sm:$0xff] %vm269_vm2, %v2330_v19  ;;  %v2335_v55 = vmul.f32 %v4521_v56, %v2330_v19 }
0x1831   :  { %v2343_v31 = vsel %vm274_vm3, %v2335_v55, 0.0 }
0x1832   :  { %v2344_v37 = vrot.slane %v2343_v31, 4 }
0x1834   :  { %v2345_v58 = vadd.f32 %v2344_v37, %v2343_v31 }
0x1836   :  { %v2346_v25 = vrot.slane %v2345_v58, 2 }
0x1838   :  { %v2347_v61 = vadd.f32 %v2346_v25, %v2345_v58  ;;  %v4753_v58 = vld [vmem:[%s4945_s2] sm:$0xff] }
0x183a   :  { %v2348_v9 = vrot.slane %v2347_v61, 1 }
0x183c   :  { %v2349_v30 = vadd.f32 %v2348_v9, %v2347_v61 }
0x1871   :  { %v2097_v24 = vpop.xlane.xlu0 %2096 }
0x1872   :  { %vm2098_vm11 = vcmp.eq.f32.partialorder %v2095_v50, %v2097_v24  ;;  %v2103_v62 = vcvt.f32.s32 %v2097_v24 }
0x1873   :  { %v2099_v8 = vsel %vm2098_vm11, %v2094_v26, inf }
0x1874   :  { %2100 = vmin.xlane.f32.xlu0 %v2099_v8  ;;  %v2104_v42 = vshll.u32 %v2103_v62, 16 }
0x1878   :  { %2292 = vadd.xlane.f32.xlu0 %v2291_v34 }
0x188e   :  { %2359 = vrot.lane.b32.xlu0 %v2248_v63, %s4010_s16 }
0x18fd   :  { %v2101_v36 = vpop.xlane.xlu0 %2100 }
0x18fe   :  { %v2102_v46 = vcvt.f32.s32 %v2101_v36 }
0x1900   :  { %v2105_v18 = vadd.s32 %v2104_v42, %v2102_v46 }
0x1901   :  { %v2293_v14 = vpop.xlane.xlu0 %2292 }
0x1902   :  { %vm2106_vm12 = vcmp.eq.s32.totalorder %v4265_v52, %v2105_v18  ;;  %v2297_v33 = vrot.slane %v2293_v14, 4 }
0x1903   :  { %v3384_v13 = vsel %vm2106_vm12, 1.0, %v4008_v0 }
0x1904   :  { %v2298_v48 = vmax.f32 %v2293_v14, %v2297_v33  ;;  %3652 = vmatmul.mubr.msk.f32.vlgmr.msra.gmra.mxu0 %vm460_vm8, %v3384_v13  ;;  %v2385_v33 = vpop.permute.xlu1 %2384 }
0x1905   :  { %3666 = vmatpush3.msra.mxu0 %v4601_v35  ;;  %3673 = vmatprep.mubr.msk.f32.mxu0 %vm4009_vm0, %v4008_v0  ;;  %v2360_v24 = vpop.permute.xlu0 %2359 }
0x1906   :  { %v2299_v38 = vrot.slane %v2298_v48, 2  ;;  %3667 = vmatprep.subr.mxu0 %v4008_v0 }
0x1907   :  { %3668 = vmatpush3.msra.mxu0 %v4501_v2 }
0x1908   :  { %v2300_v63 = vmax.f32 %v2298_v48, %v2299_v38  ;;  %3669 = vmatprep.subr.mxu0 %v4008_v0  ;;  %v2383_v48 = vpop.permute.xlu1 %2382 }
0x1909   :  { %3670 = vmatpush3.msra.mxu0 %v4508_v3 }
0x190a   :  { %v2301_v1 = vrot.slane %v2300_v63, 1  ;;  %3671 = vmatprep.subr.mxu0 %v4008_v0 }
0x190b   :  { %3672 = vmatpush3.msra.mxu0 %v4614_v49 }
0x190c   :  { %v2302_v32 = vmax.f32 %v2300_v63, %v2301_v1  ;;  %3683 = vmatprep.subr.mxu0 %v4008_v0 }
0x190e   :  { %v2309_v4 = vsub.f32 %v2293_v14, %v2302_v32 }
0x1910   :  { %v2311_v5 = vmul.f32 1.442695, %v2309_v4 }
0x1912   :  { %3850 = vpow2.f32 %v2311_v5 }
0x191f   :  { %v3851_v47 = vpop.eup %3850 }
0x1920   :  { %v2315_v28 = vrot.slane %v3851_v47, 4 }
0x1922   :  { %v2316_v29 = vadd.f32 %v3851_v47, %v2315_v28 }
0x1924   :  { %v2317_v2 = vrot.slane %v2316_v29, 2 }
0x1926   :  { %v2318_v50 = vadd.f32 %v2317_v2, %v2316_v29 }
0x1928   :  { %v2319_v51 = vrot.slane %v2318_v50, 1 }
0x192a   :  { %v2320_v53 = vadd.f32 %v2319_v51, %v2318_v50 }
0x192c   :  { %3852 = vrcp.f32 %v2320_v53 }
0x1939   :  { %v3853_v3 = vpop.eup %3852 }
0x193a   :  { %v2328_v21 = vmul.f32 %v3853_v3, %v3851_v47 }
0x193c   :  { %3387 = vst.msk [vmem:[%s4954_s11 + $0x50] sm:$0xff] %vm269_vm2, %v2328_v21  ;;  %v2334_v54 = vmul.f32 %v4518_v10, %v2328_v21 }
0x193e   :  { %v2336_v39 = vsel %vm274_vm3, %v2334_v54, 0.0 }
0x193f   :  { %v2337_v22 = vrot.slane %v2336_v39, 4 }
0x1941   :  { %v2338_v57 = vadd.f32 %v2337_v22, %v2336_v39 }
0x1943   :  { %v2339_v59 = vrot.slane %v2338_v57, 2 }
0x1945   :  { %v2340_v60 = vadd.f32 %v2339_v59, %v2338_v57  ;;  %v4746_v57 = vld [vmem:[%s4945_s2 + $0x8] sm:$0xff] }
0x1947   :  { %v2341_v7 = vrot.slane %v2340_v60, 1 }
0x1949   :  { %v2342_v20 = vadd.f32 %v2341_v7, %v2340_v60 }
0x19c4   :  { %v2178_v23 = vpop.f32.mrf.mxu0 }
0x19c5   :  { %v2351_v10 = vrot.slane %v2178_v23, 1  ;;  %v2354_v45 = vadd.f32 %v2342_v20, %v2178_v23 }
0x19c6   :  { %v3653_v56 = vpop.f32.mrf.mxu0 }
0x19c7   :  { %v2355_v19 = vadd.f32 %v2351_v10, %v2349_v30  ;;  %v2356_v40 = vadd.f32 %v4529_v41, %v2354_v45  ;;  %v4773_v30 = vld [vmem:[%s4943_s0 + $0x8] sm:$0xff]  ;;  %v4779_v45 = vld [vmem:[%s4946_s3] ss:$0 sm:$0xff] }
0x19c9   :  { %v2357_v26 = vadd.f32 %v4529_v41, %v2355_v19  ;;  %v2365_v8 = vadd.f32 %v2360_v24, %v2356_v40 }
0x19cb   :  { %v2366_v34 = vadd.f32 %v2362_v15, %v2357_v26  ;;  %v3389_v62 = vmul.f32 -1.442695, %v2365_v8 }
0x19cd   :  { %3854 = vpow2.f32 %v3389_v62  ;;  %v3390_v36 = vmul.f32 -1.442695, %v2366_v34 }
0x19cf   :  { %3856 = vpow2.f32 %v3390_v36 }
0x19da   :  { %v3855_v42 = vpop.eup %3854 }
0x19db   :  { %v2373_v46 = vadd.f32 1.0, %v3855_v42 }
0x19dc   :  { %v3857_v18 = vpop.eup %3856 }
0x19dd   :  { %v2374_v14 = vadd.f32 1.0, %v3857_v18  ;;  %3858 = vrcp.f32 %v2373_v46 }
0x19df   :  { %3860 = vrcp.f32 %v2374_v14 }
0x19ea   :  { %v3859_v13 = vpop.eup %3858 }
0x19eb   :  { %v2388_v38 = vmul.f32 %v3859_v13, %v2383_v48  ;;  %v2402_v2 = vsub.f32 1.0, %v3859_v13  ;;  %v2414_v54 = vmul.f32 %v3859_v13, %v4636_v27  ;;  %v4739_v27 = vld [vmem:[%s4945_s2 + $0x10] sm:$0xff] }
0x19ec   :  { %v3861_v63 = vpop.eup %3860 }
0x19ed   :  { %2392 = vrot.lane.b32.xlu1 %v2388_v38, %s4013_s9  ;;  %v2389_v41 = vmul.f32 %v3861_v63, %v2385_v33  ;;  %v2403_v50 = vsub.f32 1.0, %v3861_v63  ;;  %v2415_v3 = vmul.f32 %v3861_v63, %v4634_v6  ;;  %v4730_v6 = vld [vmem:[%s4945_s2 + $0x18] sm:$0xff] }
0x19ef   :  { %2394 = vrot.lane.b32.xlu0 %v2389_v41, %s4013_s9 }
0x1a5f   :  { %v2393_v1 = vpop.permute.xlu1 %2392 }
0x1a60   :  { %v2398_v32 = vadd.f32 %v2393_v1, %v2356_v40 }
0x1a61   :  { %v2395_v4 = vpop.permute.xlu0 %2394 }
0x1a62   :  { %3862 = vtanh.f32 %v2398_v32  ;;  %v2399_v5 = vadd.f32 %v2395_v4, %v2357_v26 }
0x1a64   :  { %3864 = vtanh.f32 %v2399_v5 }
0x1a6f   :  { %v3863_v47 = vpop.eup %3862 }
0x1a70   :  { %2406 = vrot.lane.b32.xlu1 %v3863_v47, %s4010_s16 }
0x1a71   :  { %v3865_v28 = vpop.eup %3864 }
0x1a72   :  { %2408 = vrot.lane.b32.xlu0 %v3865_v28, %s4010_s16 }
0x1ae2   :  { %v2407_v29 = vpop.permute.xlu1 %2406 }
0x1ae3   :  { %v2412_v53 = vmul.f32 %v2407_v29, %v2402_v2 }
0x1ae4   :  { %v2409_v51 = vpop.permute.xlu0 %2408 }
0x1ae5   :  { %v2413_v21 = vmul.f32 %v2409_v51, %v2403_v50  ;;  %v4720_v39 = vadd.f32 %v2414_v54, %v2412_v53  ;;  %v4798_v53 = vld [vmem:[%s4943_s0] sm:$0xff] }
0x1ae7   :  { %v4718_v55 = vadd.f32 %v2415_v3, %v2413_v21 }
0x1ae9   :  { %v2420_v31 = vrot.slane %v4718_v55, 7 }
0x1aeb   :  { %v2421_v22 = vsel %vm359_vm4, %v2420_v31, %v4720_v39 }
0x1aec   :  { %2422 = vrot.lane.b32.xlu0 %v2421_v22, %s4010_s16 }
0x1b5e   :  { %v2423_v37 = vpop.permute.xlu0 %2422 }
0x1b5f   :  { %3674 = vmatmul.mubr.msk.f32.vlgmr.msra.gmra.mxu0 %vm116_vm1, %v2423_v37 }
0x1b60   :  { %3684 = vmatpush3.msra.mxu0 %v4730_v6  ;;  %3691 = vmatprep.mubr.msk.f32.mxu0 %vm4009_vm0, %v4008_v0 }
0x1b61   :  { %3685 = vmatprep.subr.mxu0 %v4008_v0 }
0x1b62   :  { %3686 = vmatpush3.msra.mxu0 %v4739_v27 }
0x1b63   :  { %3687 = vmatprep.subr.mxu0 %v4008_v0 }
0x1b64   :  { %3688 = vmatpush3.msra.mxu0 %v4746_v57 }
0x1b65   :  { %3689 = vmatprep.subr.mxu0 %v4008_v0 }
0x1b66   :  { %3690 = vmatpush3.msra.mxu0 %v4753_v58 }
0x1b67   :  { %3692 = vmatmul.mubr.msk.f32.vlgmr.msra.gmra.mxu0 %vm116_vm1, %v2423_v37  ;;  %3705 = vmatprep.subr.mxu0 %v4008_v0 }
0x1b68   :  { %3706 = vmatpush3.msra.mxu0 %v4654_v43  ;;  %3709 = vmatprep.mubr.msk.f32.mxu0 %vm4009_vm0, %v4008_v0 }
0x1b69   :  { %3707 = vmatprep.subr.mxu0 %v4008_v0 }
0x1b6a   :  { %3708 = vmatpush3.msra.mxu0 %v4660_v44 }
0x1b6b   :  { %3723 = vmatprep.subr.mxu0 %v4008_v0 }
0x1c1f   :  { %v2492_v59 = vpop.f32.mrf.mxu0 }
0x1c20   :  { %v2493_v25 = vadd.f32 %v4568_v16, %v2492_v59 }
0x1c21   :  { %v3675_v60 = vpop.f32.mrf.mxu0 }
0x1c22   :  { %2497 = vst.msk [vmem:[#allocation7 + $0xa] sm:$0x3] %vm435_vm5, %v2493_v25  ;;  %v2498_v61 = vsel %vm435_vm5, %v2493_v25, -inf }
0x1c23   :  { %2499 = vmax.xlane.f32.xlu1 %v2498_v61 }
0x1c27   :  { %v2660_v7 = vpop.f32.mrf.mxu0 }
0x1c28   :  { %v2671_v43 = vrot.slane %v2660_v7, %v4124_v11  ;;  %v2791_v40 = vadd.f32 %v2660_v7, %v4126_v12  ;;  %v2770_v24 = vrot.slane %v2660_v7, 1 }
0x1c29   :  { %v3693_v9 = vpop.f32.mrf.mxu0 }
0x1c2a   :  { %v2672_v20 = vcombine.high %v2671_v43, %v2671_v43  ;;  %v2793_v26 = vrot.slane %v2791_v40, 1  ;;  %v2679_v50 = vrot.slane %v2671_v43, %v4124_v11 }
0x1c2c   :  { %v2686_v23 = vrot.slane %v2672_v20, %v4124_v11  ;;  %v2690_v51 = vrot.slane %v2679_v50, %v4130_v17 }
0x1c2e   :  { %v2694_v44 = vrot.slane %v2686_v23, %v4130_v17  ;;  %v2697_v3 = vadd.f32 %v4798_v53, %v2690_v51 }
0x1c30   :  { %v2698_v16 = vadd.f32 %v4773_v30, %v2694_v44  ;;  %v2699_v54 = vmax.f32 %v2697_v3, 0.0 }
0x1c32   :  { %v2700_v10 = vmax.f32 %v2698_v16, 0.0  ;;  %v2701_v59 = vmul.f32 %v4779_v45, %v2699_v54 }
0x1c34   :  { %v2702_v56 = vmul.f32 %v4779_v45, %v2700_v10 }
0x1c36   :  { %v2706_v19 = vsel %vm116_vm1, %v2702_v56, 0.0  ;;  %v4814_v56 = vld [vmem:[%s4949_s6 + $0x10] sm:$0xff] }
0x1c37   :  { %2707 = vadd.xlane.f32.xlu1 %v2706_v19 }
0x1c48   :  { %2773 = vrot.lane.b32.xlu1 %v2770_v24, %s4010_s16 }
0x1c4c   :  { %2796 = vrot.lane.b32.xlu1 %v2793_v26, %s4012_s22 }
0x1c50   :  { %2794 = vrot.lane.b32.xlu1 %v2791_v40, %s4012_s22 }
0x1cac   :  { %v2500_v8 = vpop.xlane.xlu1 %2499 }
0x1cad   :  { %vm2501_vm13 = vcmp.eq.f32.partialorder %v2493_v25, %v2500_v8  ;;  %v2703_v25 = vsel %vm116_vm1, %v2701_v59, 0.0 }
0x1cae   :  { %v2502_v15 = vsel %vm2501_vm13, %v4265_v52, 16 }
0x1caf   :  { %v2503_v34 = vsel %vm435_vm5, %v2502_v15, 2147483647 }
0x1cb0   :  { %v2505_v62 = vshra.s32 %v2503_v34, 16  ;;  %v2504_v21 = vand.u32 65535, %v2503_v34 }
0x1cb2   :  { %v2507_v36 = vcvt.s32.f32 %v2505_v62  ;;  %v2506_v22 = vcvt.s32.f32 %v2504_v21 }
0x1cb4   :  { %2508 = vmin.xlane.f32.xlu0 %v2507_v36 }
0x1cc0   :  { %v2708_v42 = vpop.xlane.xlu1 %2707 }
0x1cc1   :  { %v2715_v46 = vrot.slane %v2708_v42, 4 }
0x1cc3   :  { %v2716_v18 = vmax.f32 %v2708_v42, %v2715_v46 }
0x1cc5   :  { %v2717_v14 = vrot.slane %v2716_v18, 2 }
0x1cc7   :  { %v2718_v33 = vmax.f32 %v2716_v18, %v2717_v14 }
0x1cc9   :  { %v2719_v13 = vrot.slane %v2718_v33, 1 }
0x1ccb   :  { %v2720_v48 = vmax.f32 %v2718_v33, %v2719_v13 }
0x1ccd   :  { %v2722_v38 = vsub.f32 %v2708_v42, %v2720_v48  ;;  %v4834_v48 = vld [vmem:[#allocation2 + $0x8] sm:$0xff] }
0x1ccf   :  { %v2725_v63 = vmul.f32 1.442695, %v2722_v38 }
0x1cd1   :  { %3866 = vpow2.f32 %v2725_v63 }
0x1cde   :  { %v3867_v41 = vpop.eup %3866 }
0x1cdf   :  { %v2733_v1 = vrot.slane %v3867_v41, 4 }
0x1ce1   :  { %v2734_v32 = vadd.f32 %v3867_v41, %v2733_v1 }
0x1ce3   :  { %v2735_v4 = vrot.slane %v2734_v32, 2 }
0x1ce5   :  { %v2736_v5 = vadd.f32 %v2735_v4, %v2734_v32 }
0x1ce7   :  { %v2737_v47 = vrot.slane %v2736_v5, 1 }
0x1ce9   :  { %v2738_v28 = vadd.f32 %v2737_v47, %v2736_v5 }
0x1ceb   :  { %3868 = vrcp.f32 %v2738_v28 }
0x1cf8   :  { %v3869_v29 = vpop.eup %3868 }
0x1cf9   :  { %v2742_v2 = vmul.f32 %v3869_v29, %v3867_v41 }
0x1cfb   :  { %3396 = vst.msk [vmem:[%s4954_s11 + $0x68] sm:$0xff] %vm269_vm2, %v2742_v2  ;;  %v2747_v38 = vmul.f32 %v4834_v48, %v2742_v2 }
0x1cfd   :  { %v2755_v41 = vsel %vm274_vm3, %v2747_v38, 0.0 }
0x1cfe   :  { %v2756_v32 = vrot.slane %v2755_v41, 4 }
0x1d00   :  { %v2757_v5 = vadd.f32 %v2756_v32, %v2755_v41 }
0x1d02   :  { %v2758_v28 = vrot.slane %v2757_v5, 2 }
0x1d04   :  { %v2759_v50 = vadd.f32 %v2758_v28, %v2757_v5 }
0x1d06   :  { %v2760_v3 = vrot.slane %v2759_v50, 1 }
0x1d3d   :  { %v2509_v31 = vpop.xlane.xlu0 %2508 }
0x1d3e   :  { %vm2510_vm14 = vcmp.eq.f32.partialorder %v2507_v36, %v2509_v31  ;;  %v2515_v60 = vcvt.f32.s32 %v2509_v31  ;;  %v2761_v31 = vadd.f32 %v2760_v3, %v2759_v50 }
0x1d3f   :  { %v2511_v37 = vsel %vm2510_vm14, %v2506_v22, inf }
0x1d40   :  { %2512 = vmin.xlane.f32.xlu0 %v2511_v37  ;;  %v2516_v43 = vshll.u32 %v2515_v60, 16 }
0x1d44   :  { %2704 = vadd.xlane.f32.xlu0 %v2703_v25  ;;  %v4842_v25 = vld [vmem:[%s4947_s4] ss:$0 sm:$0xff] }
0x1d5a   :  { %2771 = vrot.lane.b32.xlu0 %v2660_v7, %s4010_s16 }
0x1dc9   :  { %v2513_v61 = vpop.xlane.xlu0 %2512 }
0x1dca   :  { %v2514_v9 = vcvt.f32.s32 %v2513_v61 }
0x1dcc   :  { %v2517_v20 = vadd.s32 %v2516_v43, %v2514_v9 }
0x1dcd   :  { %v2705_v23 = vpop.xlane.xlu0 %2704 }
0x1dce   :  { %vm2518_vm15 = vcmp.eq.s32.totalorder %v4265_v52, %v2517_v20  ;;  %v2709_v44 = vrot.slane %v2705_v23, 4  ;;  %v2774_v20 = vpop.permute.xlu1 %2773 }
0x1dcf   :  { %v3392_v16 = vsel %vm2518_vm15, 1.0, %v4008_v0 }
0x1dd0   :  { %v2710_v10 = vmax.f32 %v2705_v23, %v2709_v44  ;;  %3681 = vmatmul.mubr.msk.f32.vlgmr.msra.gmra.mxu1 %vm460_vm8, %v3392_v16 }
0x1dd1   :  { %3695 = vmatpush3.msra.mxu1 %v4601_v35  ;;  %3702 = vmatprep.mubr.msk.f32.mxu1 %vm4009_vm0, %v4008_v0  ;;  %v4821_v35 = vld [vmem:[%s4949_s6 + $0x8] sm:$0xff]  ;;  %v2772_v61 = vpop.permute.xlu0 %2771 }
0x1dd2   :  { %v2711_v7 = vrot.slane %v2710_v10, 2  ;;  %3696 = vmatprep.subr.mxu1 %v4008_v0 }
0x1dd3   :  { %3697 = vmatpush3.msra.mxu1 %v4814_v56 }
0x1dd4   :  { %v2712_v19 = vmax.f32 %v2710_v10, %v2711_v7  ;;  %3698 = vmatprep.subr.mxu1 %v4008_v0 }
0x1dd5   :  { %3699 = vmatpush3.msra.mxu1 %v4821_v35 }
0x1dd6   :  { %v2713_v40 = vrot.slane %v2712_v19, 1  ;;  %3700 = vmatprep.subr.mxu1 %v4008_v0 }
0x1dd7   :  { %3701 = vmatpush3.msra.mxu1 %v4614_v49  ;;  %v4831_v49 = vld [vmem:[#allocation2] sm:$0xff] }
0x1dd8   :  { %v2714_v24 = vmax.f32 %v2712_v19, %v2713_v40  ;;  %3712 = vmatprep.subr.mxu1 %v4008_v0 }
0x1dda   :  { %v2721_v26 = vsub.f32 %v2705_v23, %v2714_v24  ;;  %v2797_v24 = vpop.permute.xlu1 %2796 }
0x1ddc   :  { %v2723_v8 = vmul.f32 1.442695, %v2721_v26 }
0x1dde   :  { %3870 = vpow2.f32 %v2723_v8  ;;  %v2795_v8 = vpop.permute.xlu1 %2794 }
0x1deb   :  { %v3871_v15 = vpop.eup %3870 }
0x1dec   :  { %v2727_v34 = vrot.slane %v3871_v15, 4 }
0x1dee   :  { %v2728_v62 = vadd.f32 %v3871_v15, %v2727_v34 }
0x1df0   :  { %v2729_v36 = vrot.slane %v2728_v62, 2 }
0x1df2   :  { %v2730_v42 = vadd.f32 %v2729_v36, %v2728_v62 }
0x1df4   :  { %v2731_v46 = vrot.slane %v2730_v42, 1 }
0x1df6   :  { %v2732_v18 = vadd.f32 %v2731_v46, %v2730_v42 }
0x1df8   :  { %3872 = vrcp.f32 %v2732_v18 }
0x1e05   :  { %v3873_v14 = vpop.eup %3872 }
0x1e06   :  { %v2740_v33 = vmul.f32 %v3873_v14, %v3871_v15 }
0x1e08   :  { %3395 = vst.msk [vmem:[%s4954_s11 + $0x60] sm:$0xff] %vm269_vm2, %v2740_v33  ;;  %v2746_v13 = vmul.f32 %v4831_v49, %v2740_v33 }
0x1e0a   :  { %v2748_v63 = vsel %vm274_vm3, %v2746_v13, 0.0 }
0x1e0b   :  { %v2749_v1 = vrot.slane %v2748_v63, 4 }
0x1e0d   :  { %v2750_v4 = vadd.f32 %v2749_v1, %v2748_v63 }
0x1e0f   :  { %v2751_v47 = vrot.slane %v2750_v4, 2 }
0x1e11   :  { %v2752_v29 = vadd.f32 %v2751_v47, %v2750_v4 }
0x1e13   :  { %v2753_v51 = vrot.slane %v2752_v29, 1 }
0x1e15   :  { %v2754_v21 = vadd.f32 %v2753_v51, %v2752_v29 }
0x1e90   :  { %v2590_v54 = vpop.f32.mrf.mxu1 }
0x1e91   :  { %v2763_v22 = vrot.slane %v2590_v54, 1  ;;  %v2766_v37 = vadd.f32 %v2754_v21, %v2590_v54 }
0x1e92   :  { %v3682_v2 = vpop.f32.mrf.mxu1 }
0x1e93   :  { %v2767_v59 = vadd.f32 %v2763_v22, %v2761_v31  ;;  %v2768_v60 = vadd.f32 %v4842_v25, %v2766_v37 }
0x1e95   :  { %v2769_v43 = vadd.f32 %v4842_v25, %v2767_v59  ;;  %v2777_v9 = vadd.f32 %v2772_v61, %v2768_v60 }
0x1e97   :  { %v2778_v23 = vadd.f32 %v2774_v20, %v2769_v43  ;;  %v3397_v44 = vmul.f32 -1.442695, %v2777_v9 }
0x1e99   :  { %3874 = vpow2.f32 %v3397_v44  ;;  %v3398_v16 = vmul.f32 -1.442695, %v2778_v23 }
0x1e9b   :  { %3876 = vpow2.f32 %v3398_v16 }
0x1ea6   :  { %v3875_v10 = vpop.eup %3874 }
0x1ea7   :  { %v2785_v7 = vadd.f32 1.0, %v3875_v10 }
0x1ea8   :  { %v3877_v19 = vpop.eup %3876 }
0x1ea9   :  { %v2786_v40 = vadd.f32 1.0, %v3877_v19  ;;  %3878 = vrcp.f32 %v2785_v7 }
0x1eab   :  { %3880 = vrcp.f32 %v2786_v40 }
0x1eb6   :  { %v3879_v26 = vpop.eup %3878 }
0x1eb7   :  { %v2800_v15 = vmul.f32 %v3879_v26, %v2795_v8  ;;  %v2814_v38 = vsub.f32 1.0, %v3879_v26  ;;  %v2826_v5 = vmul.f32 %v3879_v26, %v4720_v39  ;;  %v4874_v39 = vld [vmem:[%s4950_s7] ss:$0 sm:$0xff] }
0x1eb8   :  { %v3881_v34 = vpop.eup %3880 }
0x1eb9   :  { %2804 = vrot.lane.b32.xlu1 %v2800_v15, %s4013_s9  ;;  %v2801_v62 = vmul.f32 %v3881_v34, %v2797_v24  ;;  %v2815_v63 = vsub.f32 1.0, %v3881_v34  ;;  %v2827_v32 = vmul.f32 %v3881_v34, %v4718_v55 }
0x1ebb   :  { %2806 = vrot.lane.b32.xlu0 %v2801_v62, %s4013_s9 }
0x1f2b   :  { %v2805_v36 = vpop.permute.xlu1 %2804 }
0x1f2c   :  { %v2810_v42 = vadd.f32 %v2805_v36, %v2768_v60 }
0x1f2d   :  { %v2807_v46 = vpop.permute.xlu0 %2806 }
0x1f2e   :  { %3882 = vtanh.f32 %v2810_v42  ;;  %v2811_v18 = vadd.f32 %v2807_v46, %v2769_v43 }
0x1f30   :  { %3884 = vtanh.f32 %v2811_v18 }
0x1f3b   :  { %v3883_v14 = vpop.eup %3882 }
0x1f3c   :  { %2818 = vrot.lane.b32.xlu1 %v3883_v14, %s4010_s16 }
0x1f3d   :  { %v3885_v33 = vpop.eup %3884 }
0x1f3e   :  { %2820 = vrot.lane.b32.xlu0 %v3885_v33, %s4010_s16 }
0x1fae   :  { %v2819_v13 = vpop.permute.xlu1 %2818 }
0x1faf   :  { %v2824_v1 = vmul.f32 %v2819_v13, %v2814_v38 }
0x1fb0   :  { %v2821_v41 = vpop.permute.xlu0 %2820 }
0x1fb1   :  { %v2825_v4 = vmul.f32 %v2821_v41, %v2815_v63  ;;  %v4854_v28 = vadd.f32 %v2826_v5, %v2824_v1 }
0x1fb3   :  { %v4852_v47 = vadd.f32 %v2827_v32, %v2825_v4 }
0x1fb5   :  { %v2832_v29 = vrot.slane %v4852_v47, 7 }
0x1fb7   :  { %v2833_v50 = vsel %vm359_vm4, %v2832_v29, %v4854_v28 }
0x1fb8   :  { %2834 = vrot.lane.b32.xlu0 %v2833_v50, %s4010_s16 }
0x202a   :  { %v2835_v51 = vpop.permute.xlu0 %2834 }
0x202b   :  { %3703 = vmatmul.mubr.msk.f32.vlgmr.msra.gmra.mxu1 %vm116_vm1, %v2835_v51 }
0x202c   :  { %3713 = vmatpush3.msra.mxu1 %v4730_v6  ;;  %3720 = vmatprep.mubr.msk.f32.mxu1 %vm4009_vm0, %v4008_v0 }
0x202d   :  { %3714 = vmatprep.subr.mxu1 %v4008_v0 }
0x202e   :  { %3715 = vmatpush3.msra.mxu1 %v4739_v27 }
0x202f   :  { %3716 = vmatprep.subr.mxu1 %v4008_v0 }
0x2030   :  { %3717 = vmatpush3.msra.mxu1 %v4746_v57 }
0x2031   :  { %3718 = vmatprep.subr.mxu1 %v4008_v0 }
0x2032   :  { %3719 = vmatpush3.msra.mxu1 %v4753_v58 }
0x2033   :  { %3721 = vmatmul.mubr.msk.f32.vlgmr.msra.gmra.mxu1 %vm116_vm1, %v2835_v51 }
0x20eb   :  { %v2904_v55 = vpop.f32.mrf.mxu1 }
0x20ec   :  { %v2905_v6 = vadd.f32 %v4874_v39, %v2904_v55 }
0x20ed   :  { %v3704_v3 = vpop.f32.mrf.mxu1 }
0x20ee   :  { %2909 = vst.msk [vmem:[#allocation7 + $0xc] sm:$0x3] %vm435_vm5, %v2905_v6  ;;  %v2910_v27 = vsel %vm435_vm5, %v2905_v6, -inf }
0x20ef   :  { %2911 = vmax.xlane.f32.xlu1 %v2910_v27 }
0x20f3   :  { %v3072_v57 = vpop.f32.mrf.mxu1 }
0x20f4   :  { %v3083_v21 = vrot.slane %v3072_v57, %v4124_v11  ;;  %v3182_v61 = vrot.slane %v3072_v57, 1  ;;  %v3203_v43 = vadd.f32 %v3072_v57, %v4126_v12 }
0x20f5   :  { %v3722_v58 = vpop.f32.mrf.mxu1 }
0x20f6   :  { %v3084_v54 = vcombine.high %v3083_v21, %v3083_v21  ;;  %v3205_v9 = vrot.slane %v3203_v43, 1  ;;  %v3091_v38 = vrot.slane %v3083_v21, %v4124_v11 }
0x20f8   :  { %v3098_v31 = vrot.slane %v3084_v54, %v4124_v11  ;;  %v3102_v63 = vrot.slane %v3091_v38, %v4130_v17 }
0x20fa   :  { %v3106_v22 = vrot.slane %v3098_v31, %v4130_v17  ;;  %v3109_v41 = vadd.f32 %v4798_v53, %v3102_v63  ;;  %v3937_v31 = vld [vmem:[%s4949_s6] sm:$0xff] }
0x20fc   :  { %v3110_v37 = vadd.f32 %v4773_v30, %v3106_v22  ;;  %v3111_v32 = vmax.f32 %v3109_v41, 0.0 }
0x20fe   :  { %v3112_v2 = vmax.f32 %v3110_v37, 0.0  ;;  %v3113_v50 = vmul.f32 %v4779_v45, %v3111_v32 }
0x2100   :  { %v3114_v59 = vmul.f32 %v4779_v45, %v3112_v2  ;;  %v3115_v51 = vsel %vm116_vm1, %v3113_v50, 0.0  ;;  %v3936_v45 = vld [vmem:[%s4949_s6 + $0x18] sm:$0xff]  ;;  %s4014_s6 = smov [#allocation7]  }
0x2102   :  { %v3118_v60 = vsel %vm116_vm1, %v3114_v59, 0.0 }
0x2103   :  { %3119 = vadd.xlane.f32.xlu1 %v3118_v60 }
0x2114   :  { %3185 = vrot.lane.b32.xlu1 %v3182_v61, %s4010_s16 }
0x2118   :  { %3208 = vrot.lane.b32.xlu1 %v3205_v9, %s4012_s22 }
0x211c   :  { %3206 = vrot.lane.b32.xlu1 %v3203_v43, %s4012_s22 }
0x2178   :  { %v2912_v20 = vpop.xlane.xlu1 %2911 }
0x2179   :  { %vm2913_vm6 = vcmp.eq.f32.partialorder %v2905_v6, %v2912_v20 }
0x217a   :  { %v2914_v30 = vsel %vm2913_vm6, %v4265_v52, 16 }
0x217b   :  { %v2915_v23 = vsel %vm435_vm5, %v2914_v30, 2147483647 }
0x217c   :  { %v2917_v44 = vshra.s32 %v2915_v23, 16  ;;  %v2916_v1 = vand.u32 65535, %v2915_v23 }
0x217e   :  { %v2919_v16 = vcvt.s32.f32 %v2917_v44  ;;  %v2918_v5 = vcvt.s32.f32 %v2916_v1 }
0x2180   :  { %2920 = vmin.xlane.f32.xlu0 %v2919_v16 }
0x218c   :  { %v3120_v10 = vpop.xlane.xlu1 %3119 }
0x218d   :  { %v3127_v7 = vrot.slane %v3120_v10, 4 }
0x218f   :  { %v3128_v19 = vmax.f32 %v3120_v10, %v3127_v7 }
0x2190   :  { %v3186_v63 = vpop.permute.xlu1 %3185 }
0x2191   :  { %v3129_v12 = vrot.slane %v3128_v19, 2 }
0x2193   :  { %v3130_v40 = vmax.f32 %v3128_v19, %v3129_v12 }
0x2195   :  { %v3131_v24 = vrot.slane %v3130_v40, 1 }
0x2197   :  { %v3132_v26 = vmax.f32 %v3130_v40, %v3131_v24 }
0x2199   :  { %v3134_v8 = vsub.f32 %v3120_v10, %v3132_v26 }
0x219b   :  { %v3137_v15 = vmul.f32 1.442695, %v3134_v8 }
0x219d   :  { %3886 = vpow2.f32 %v3137_v15 }
0x21aa   :  { %v3887_v34 = vpop.eup %3886 }
0x21ab   :  { %v3145_v62 = vrot.slane %v3887_v34, 4 }
0x21ad   :  { %v3146_v36 = vadd.f32 %v3887_v34, %v3145_v62 }
0x21af   :  { %v3147_v42 = vrot.slane %v3146_v36, 2 }
0x21b1   :  { %v3148_v46 = vadd.f32 %v3147_v42, %v3146_v36 }
0x21b3   :  { %v3149_v18 = vrot.slane %v3148_v46, 1 }
0x21b5   :  { %v3150_v14 = vadd.f32 %v3149_v18, %v3148_v46 }
0x21b7   :  { %3888 = vrcp.f32 %v3150_v14 }
0x21c4   :  { %v3889_v33 = vpop.eup %3888 }
0x21c5   :  { %v3154_v13 = vmul.f32 %v3889_v33, %v3887_v34 }
0x21c7   :  { %3404 = vst.msk [vmem:[%s4954_s11 + $0x78] sm:$0xff] %vm269_vm2, %v3154_v13  ;;  %v3159_v23 = vmul.f32 %v4834_v48, %v3154_v13 }
0x2209   :  { %v2921_v4 = vpop.xlane.xlu0 %2920 }
0x220a   :  { %vm2922_vm7 = vcmp.eq.f32.partialorder %v2919_v16, %v2921_v4  ;;  %v2927_v55 = vcvt.f32.s32 %v2921_v4  ;;  %v3167_v16 = vsel %vm274_vm3, %v3159_v23, 0.0 }
0x220b   :  { %v2923_v29 = vsel %vm2922_vm7, %v2918_v5, inf  ;;  %v3168_v7 = vrot.slane %v3167_v16, 4 }
0x220c   :  { %2924 = vmin.xlane.f32.xlu0 %v2923_v29  ;;  %v2928_v6 = vshll.u32 %v2927_v55, 16 }
0x220d   :  { %v3169_v12 = vadd.f32 %v3168_v7, %v3167_v16 }
0x220f   :  { %v3170_v24 = vrot.slane %v3169_v12, 2 }
0x2210   :  { %3116 = vadd.xlane.f32.xlu0 %v3115_v51  ;;  %v3209_v51 = vpop.permute.xlu1 %3208 }
0x2211   :  { %v3171_v8 = vadd.f32 %v3170_v24, %v3169_v12 }
0x2213   :  { %v3172_v34 = vrot.slane %v3171_v8, 1 }
0x2215   :  { %v3173_v42 = vadd.f32 %v3172_v34, %v3171_v8 }
0x2226   :  { %3183 = vrot.lane.b32.xlu0 %v3072_v57, %s4010_s16 }
0x2295   :  { %v2925_v11 = vpop.xlane.xlu0 %2924 }
0x2296   :  { %v2926_v17 = vcvt.f32.s32 %v2925_v11  ;;  %v3207_v11 = vpop.permute.xlu1 %3206 }
0x2298   :  { %v2929_v3 = vadd.s32 %v2928_v6, %v2926_v17 }
0x2299   :  { %v3117_v53 = vpop.xlane.xlu0 %3116 }
0x229a   :  { %vm2930_vm9 = vcmp.eq.s32.totalorder %v4265_v52, %v2929_v3  ;;  %v3121_v27 = vrot.slane %v3117_v53, 4 }
0x229b   :  { %v3400_v21 = vsel %vm2930_vm9, 1.0, %v4008_v0 }
0x229c   :  { %v3122_v58 = vmax.f32 %v3117_v53, %v3121_v27  ;;  %3710 = vmatmul.mubr.msk.f32.vlgmr.msra.gmra.mxu0 %vm460_vm8, %v3400_v21 }
0x229d   :  { %3724 = vmatpush3.msra.mxu0 %v3936_v45  ;;  %3731 = vmatprep.mubr.msk.f32.mxu0 %vm4009_vm0, %v4008_v0  ;;  %v3184_v33 = vpop.permute.xlu0 %3183 }
0x229e   :  { %v3123_v57 = vrot.slane %v3122_v58, 2  ;;  %3725 = vmatprep.subr.mxu0 %v4008_v0 }
0x229f   :  { %3726 = vmatpush3.msra.mxu0 %v4814_v56 }
0x22a0   :  { %v3124_v52 = vmax.f32 %v3122_v58, %v3123_v57  ;;  %3727 = vmatprep.subr.mxu0 %v4008_v0 }
0x22a1   :  { %3728 = vmatpush3.msra.mxu0 %v4821_v35 }
0x22a2   :  { %v3125_v54 = vrot.slane %v3124_v52, 1  ;;  %3729 = vmatprep.subr.mxu0 %v4008_v0 }
0x22a3   :  { %3730 = vmatpush3.msra.mxu0 %v3937_v31 }
0x22a4   :  { %v3126_v22 = vmax.f32 %v3124_v52, %v3125_v54 }
0x22a6   :  { %v3133_v37 = vsub.f32 %v3117_v53, %v3126_v22 }
0x22a8   :  { %v3135_v2 = vmul.f32 1.442695, %v3133_v37 }
0x22aa   :  { %3890 = vpow2.f32 %v3135_v2 }
0x22b7   :  { %v3891_v59 = vpop.eup %3890 }
0x22b8   :  { %v3139_v60 = vrot.slane %v3891_v59, 4 }
0x22ba   :  { %v3140_v56 = vadd.f32 %v3891_v59, %v3139_v60 }
0x22bc   :  { %v3141_v61 = vrot.slane %v3140_v56, 2 }
0x22be   :  { %v3142_v43 = vadd.f32 %v3141_v61, %v3140_v56 }
0x22c0   :  { %v3143_v9 = vrot.slane %v3142_v43, 1 }
0x22c2   :  { %v3144_v20 = vadd.f32 %v3143_v9, %v3142_v43 }
0x22c4   :  { %3892 = vrcp.f32 %v3144_v20 }
0x22d1   :  { %v3893_v35 = vpop.eup %3892 }
0x22d2   :  { %v3152_v30 = vmul.f32 %v3893_v35, %v3891_v59 }
0x22d4   :  { %3403 = vst.msk [vmem:[%s4954_s11 + $0x70] sm:$0xff] %vm269_vm2, %v3152_v30  ;;  %v3158_v0 = vmul.f32 %v4831_v49, %v3152_v30  ;;  %s3327_s11 = sshll.u32 %s4014_s6, 4  ;;  %s3328_s11 = int_to_ptr.vmem [resolvable:$true] %s3327_s11 }
0x22d5   :  { %p3983_p11 = scmp.lt.s32.totalorder %s3328_s11, %s3328_s11 }
0x22d6   :  { %v3160_v44 = vsel %vm274_vm3, %v3158_v0, 0.0 }
0x22d7   :  { %v3161_v10 = vrot.slane %v3160_v44, 4 }
0x22d9   :  { %v3162_v19 = vadd.f32 %v3161_v10, %v3160_v44 }
0x22db   :  { %v3163_v40 = vrot.slane %v3162_v19, 2 }
0x22dd   :  { %v3164_v26 = vadd.f32 %v3163_v40, %v3162_v19 }
0x22df   :  { %v3165_v15 = vrot.slane %v3164_v26, 1 }
0x22e1   :  { %v3166_v62 = vadd.f32 %v3165_v15, %v3164_v26 }
0x235c   :  { %v3002_v36 = vpop.f32.mrf.mxu0 }
0x235d   :  { %v3175_v49 = vrot.slane %v3002_v36, 1  ;;  %v3178_v46 = vadd.f32 %v3166_v62, %v3002_v36 }
0x235e   :  { %v3711_v48 = vpop.f32.mrf.mxu0 }
0x235f   :  { %v3179_v18 = vadd.f32 %v3175_v49, %v3173_v42  ;;  %v3180_v14 = vadd.f32 %v4842_v25, %v3178_v46 }
0x2361   :  { %v3181_v13 = vadd.f32 %v4842_v25, %v3179_v18  ;;  %v3189_v38 = vadd.f32 %v3184_v33, %v3180_v14 }
0x2363   :  { %v3190_v41 = vadd.f32 %v3186_v63, %v3181_v13  ;;  %v3405_v1 = vmul.f32 -1.442695, %v3189_v38 }
0x2365   :  { %3894 = vpow2.f32 %v3405_v1  ;;  %v3406_v32 = vmul.f32 -1.442695, %v3190_v41 }
0x2367   :  { %3896 = vpow2.f32 %v3406_v32 }
0x2372   :  { %v3895_v4 = vpop.eup %3894 }
0x2373   :  { %v3197_v5 = vadd.f32 1.0, %v3895_v4 }
0x2374   :  { %v3897_v29 = vpop.eup %3896 }
0x2375   :  { %v3198_v50 = vadd.f32 1.0, %v3897_v29  ;;  %3898 = vrcp.f32 %v3197_v5 }
0x2377   :  { %3900 = vrcp.f32 %v3198_v50 }
0x2382   :  { %v3899_v55 = vpop.eup %3898 }
0x2383   :  { %v3212_v6 = vmul.f32 %v3899_v55, %v3207_v11  ;;  %v3226_v52 = vsub.f32 1.0, %v3899_v55  ;;  %v3238_v59 = vmul.f32 %v3899_v55, %v4854_v28 }
0x2384   :  { %v3901_v17 = vpop.eup %3900 }
0x2385   :  { %3216 = vrot.lane.b32.xlu1 %v3212_v6, %s4013_s9  ;;  %v3213_v25 = vmul.f32 %v3901_v17, %v3209_v51  ;;  %v3227_v54 = vsub.f32 1.0, %v3901_v17  ;;  %v3239_v37 = vmul.f32 %v3901_v17, %v4852_v47 }
0x2387   :  { %3218 = vrot.lane.b32.xlu0 %v3213_v25, %s4013_s9  ;;  %s3978_s9 = scalar_lea.vmem %s3328_s11, 256 }
0x2388   :  { %p3979_p10 = scmp.ne.s32.totalorder %s3328_s11, %s3978_s9  ;;  %p3984_p12 = scmp.lt.s32.totalorder %s3978_s9, %s3978_s9 }
0x238a   :  { %p3985_p13 = por %p3984_p12, %p3983_p11 }
0x238c   :  { %p3986_p0 = pnand %p3985_p13, %p3979_p10 }
0x23f7   :  { %v3217_v3 = vpop.permute.xlu1 %3216 }
0x23f8   :  { %v3222_v53 = vadd.f32 %v3217_v3, %v3180_v14 }
0x23f9   :  { %v3219_v27 = vpop.permute.xlu0 %3218 }
0x23fa   :  { %3902 = vtanh.f32 %v3222_v53  ;;  %v3223_v21 = vadd.f32 %v3219_v27, %v3181_v13 }
0x23fc   :  { %3904 = vtanh.f32 %v3223_v21 }
0x2407   :  { %v3903_v58 = vpop.eup %3902 }
0x2408   :  { %3230 = vrot.lane.b32.xlu1 %v3903_v58, %s4010_s16 }
0x2409   :  { %v3905_v45 = vpop.eup %3904 }
0x240a   :  { %3232 = vrot.lane.b32.xlu0 %v3905_v45, %s4010_s16 }
0x247a   :  { %v3231_v57 = vpop.permute.xlu1 %3230 }
0x247b   :  { %v3236_v22 = vmul.f32 %v3231_v57, %v3226_v52 }
0x247c   :  { %v3233_v31 = vpop.permute.xlu0 %3232 }
0x247d   :  { %v3237_v2 = vmul.f32 %v3233_v31, %v3227_v54  ;;  %v3240_v56 = vadd.f32 %v3238_v59, %v3236_v22 }
0x247f   :  { %v3241_v60 = vadd.f32 %v3239_v37, %v3237_v2 }
0x2481   :  { %v3244_v61 = vrot.slane %v3241_v60, 7 }
0x2483   :  { %v3245_v43 = vsel %vm359_vm4, %v3244_v61, %v3240_v56 }
0x2484   :  { %3246 = vrot.lane.b32.xlu0 %v3245_v43, %s4010_s16 }
0x24f6   :  { %v3247_v9 = vpop.permute.xlu0 %3246 }
0x24f7   :  { %3732 = vmatmul.mubr.msk.f32.vlgmr.msra.gmra.mxu0 %vm116_vm1, %v3247_v9 }
0x25b7   :  { %v3316_v20 = vpop.f32.mrf.mxu0 }
0x25b8   :  { %v3317_v35 = vadd.f32 %v4874_v39, %v3316_v20 }
0x25b9   :  { %v3733_v47 = vpop.f32.mrf.mxu0 }
0x25ba   :  { %3321 = vst.msk [vmem:[#allocation7 + $0xe] sm:$0x3] %vm435_vm5, %v3317_v35 }
0x25bb   :  { %3989 = shalt.err (!%p3986_p0)
}
0x25bc   :  { %s4015_s16 = smov 2  }
0x25bd   :  { %3333 = dma.vmem_to_hbm [thread:$0]  %s3328_s11, 256, %s4953_s10, [#allocation4], %s4012_s22, %s4012_s22, %s4015_s16  }
0x25be   :  { %4002 = dma.done.wait [#allocation4], 256  }
0x25bf   :  { %4003 = vsyncadd [#allocation4], 4294967040 }
0x25c0   :  { %3341 = vsyncpa [#allocation3], 1 }
0x25c1   :  { %3342 = vsyncpa [#allocation6], 1 }
0x25c2   :  { %3343 = vsyncpa [#allocation4], 1 }

</bundles_post_ra>
